<compile_context>
chip_gen: v7x
topology: tpu7x:2x2x1
jax: 0.10.0
libtpu: 0.0.40
codegen_flags: <defaults>
</compile_context>

<pallas_src>
import functools

import jax
import jax.numpy as jnp
from jax import lax
from jax.experimental import pallas as pl
from jax.experimental.pallas import tpu as pltpu


COMPUTE_DTYPE = jnp.bfloat16   # MXU operand dtype; accumulation is always f32


def _layernorm(x, w, b, eps=1e-5):
    # x: (M, C) f32, w/b: (1, C) f32  -- matches torch.nn.LayerNorm(dim)
    mu = jnp.mean(x, axis=-1, keepdims=True)
    var = jnp.mean(jnp.square(x - mu), axis=-1, keepdims=True)
    return (x - mu) * lax.rsqrt(var + eps) * w + b


def encoder_kernel(
    x_ref, pos_ref,
    ln1_w_ref, ln1_b_ref, wqkv_ref, wproj_ref, bproj_ref,
    ln2_w_ref, ln2_b_ref, w1_ref, b1_ref, w2_ref, b2_ref,
    out_ref,
    *, num_heads,
):
    d = pl.program_id(1)
    Bt, N, C = x_ref.shape
    H = num_heads
    hd = C // H
    M = Bt * N

    # Output block is resident across the depth axis -> use it as the carry.
    @pl.when(d == 0)
    def _():
        out_ref[...] = x_ref[...]

    # Positional embedding is re-added before every block, as in the
    # reference loop `x = block(x + pos)`.
    x = out_ref[...].reshape(M, C) + pos_ref[...].reshape(M, C)     # (M, C) f32

    # ---------------- Attention branch (pre-LN) ----------------
    xn = _layernorm(x, ln1_w_ref[0], ln1_b_ref[0]).astype(COMPUTE_DTYPE)

    # qkv = Linear(dim, 3*dim, bias=False); 1/sqrt(hd) already baked into the
    # q columns of wqkv by the wrapper.  One full-width matmul, K = C.
    qkv = jnp.dot(xn, wqkv_ref[0], preferred_element_type=jnp.float32)
    qkv = qkv.astype(COMPUTE_DTYPE)                                  # (M, 3C)

    # Build head-major (G, N, hd) operands (G = Bt*H) so the score and PV
    # matmuls are single batched einsums rather than H unrolled small matmuls
    # fighting for vregs.
    qs, ks, vs = [], [], []
    for bt in range(Bt):
        r0 = bt * N
        for h in range(H):
            c0 = h * hd
            qs.append(qkv[r0:r0 + N, c0:c0 + hd])
            ks.append(qkv[r0:r0 + N, C + c0:C + c0 + hd])
            vs.append(qkv[r0:r0 + N, 2 * C + c0:2 * C + c0 + hd])
    q3 = jnp.stack(qs)                                               # (G, N, hd)
    k3 = jnp.stack(ks)
    v3 = jnp.stack(vs)

    s = jnp.einsum("gqd,gkd->gqk", q3, k3,
                   preferred_element_type=jnp.float32)               # (G, N, N)
    s = s - jnp.max(s, axis=-1, keepdims=True)
    p = jnp.exp(s)
    p = p * pl.reciprocal(jnp.sum(p, axis=-1, keepdims=True), approx=True)

    o3 = jnp.einsum("gqk,gkd->gqd", p.astype(COMPUTE_DTYPE), v3,
                    preferred_element_type=jnp.float32)              # (G, N, hd)

    # Concat heads back to (M, C) and run ONE output projection with K = C
    # (replaces H small K=hd matmuls).
    o_rows = []
    for bt in range(Bt):
        o_rows.append(
            jnp.concatenate([o3[bt * H + h] for h in range(H)], axis=-1))
    o_cat = o_rows[0] if Bt == 1 else jnp.concatenate(o_rows, axis=0)
    attn = jnp.dot(o_cat.astype(COMPUTE_DTYPE), wproj_ref[0],
                   preferred_element_type=jnp.float32) + bproj_ref[0]

    x = x + attn                                                     # residual 1

    # ---------------- MLP branch (pre-LN) ----------------
    xn2 = _layernorm(x, ln2_w_ref[0], ln2_b_ref[0]).astype(COMPUTE_DTYPE)
    h1 = jnp.dot(xn2, w1_ref[0], preferred_element_type=jnp.float32) + b1_ref[0]
    h1 = jax.nn.gelu(h1, approximate=True)        # tanh GELU -> EUP slot
    h2 = jnp.dot(h1.astype(COMPUTE_DTYPE), w2_ref[0],
                 preferred_element_type=jnp.float32) + b2_ref[0]

    out_ref[...] = (x + h2).reshape(Bt, N, C)                        # residual 2


_PARAM_ORDER = (
    "ln1_w", "ln1_b", "wqkv", "wproj", "bproj",
    "ln2_w", "ln2_b", "w1", "b1", "w2", "b2",
)


def _vmem_budget_bytes():
    """~85% of physical VMEM (leaves headroom for Mosaic internal scratch)."""
    cap = None
    try:
        cap = getattr(pltpu.get_tpu_info(), "vmem_capacity_bytes", None)
    except Exception:
        cap = None
    if not cap:
        cap = 64 * 1024 * 1024          # conservative fallback: v7x per-core VMEM
    return int(cap * 0.85)


def _block_weight_bytes(C, hidden):
    bf16, f32 = 2, 4
    return bf16 * (3 * C * C + C * C + C * hidden + hidden * C) \
        + f32 * (6 * C + hidden)


def _vmem_estimate_bytes(Bt, N, C, hidden, H, weight_buffers=2):
    f32 = 4
    M = Bt * N
    w = weight_buffers * _block_weight_bytes(C, hidden)
    acts = f32 * 2 * 3 * M * C                       # x / pos / out, double-buffered
    temps = f32 * (3 * M * C                         # qkv
                   + 3 * Bt * H * N * N              # scores / probs
                   + 2 * M * hidden                  # MLP hidden
                   + 4 * M * C)                      # misc temporaries
    return w + acts + temps


def _pick_batch_tile(B, N, C, hidden, H, budget):
    """Largest divisor of B whose working set fits the VMEM budget (amortizes
    weight streaming over Bt batch rows per fetch)."""
    best = 1
    for bt in range(1, B + 1):
        if B % bt:
            continue
        if bt * H > 64:                  # bound the in-kernel head/sample unroll
            break
        if _vmem_estimate_bytes(bt, N, C, hidden, H) <= 0.8 * budget:
            best = bt
    return best


def transformer_encoder(x, pos, params, num_heads, batch_tile=None):
    """x, pos: (B, N, C) f32.  params: stacked (depth, ...) arrays."""
    B, N, C = x.shape
    depth = params["wqkv"].shape[0]
    hidden = params["w1"].shape[-1]
    assert C % num_heads == 0

    budget = _vmem_budget_bytes()
    Bt = batch_tile or _pick_batch_tile(B, N, C, hidden, num_heads, budget)
    assert B % Bt == 0

    # If double-buffered weights would dominate the (v7x-sized) budget, drop
    # the big MLP weights to single buffering; keep full double buffering when
    # there is room (v5e/v6e: 128 MiB physical VMEM).
    single_buffer_mlp = 2 * _block_weight_bytes(C, hidden) > 0.4 * budget

    def act_spec():
        return pl.BlockSpec((Bt, N, C), lambda b, d: (b, 0, 0))

    def weight_spec(arr, buffers=2):
        shape = (1,) + arr.shape[1:]
        idx = lambda b, d, _n=arr.ndim: (d,) + (0,) * (_n - 1)
        if buffers == 2:
            return pl.BlockSpec(shape, idx)
        return pl.BlockSpec(shape, idx, pipeline_mode=pl.Buffered(buffers))

    in_specs = [act_spec(), act_spec()]
    for k in _PARAM_ORDER:
        bufs = 1 if (single_buffer_mlp and k in ("w1", "w2")) else 2
        in_specs.append(weight_spec(params[k], bufs))

    est = _vmem_estimate_bytes(Bt, N, C, hidden, num_heads,
                               weight_buffers=1 if single_buffer_mlp else 2)
    vmem_limit = int(min(max(est, 32 * 1024 * 1024), budget))

    return pl.pallas_call(
        functools.partial(encoder_kernel, num_heads=num_heads),
        out_shape=jax.ShapeDtypeStruct((B, N, C), jnp.float32),
        grid=(B // Bt, depth),
        in_specs=in_specs,
        out_specs=act_spec(),
        input_output_aliases={0: 0},        # x aliases the output buffer
        compiler_params=pltpu.CompilerParams(
            dimension_semantics=("parallel", "arbitrary"),
            vmem_limit_bytes=vmem_limit),
    )(x, pos, *[params[k] for k in _PARAM_ORDER])


def init_block_params(key, dim, num_heads, mlp_ratio=4.0):
    """One block's params, pre-transposed to (in_features, out_features)."""
    hidden = int(dim * mlp_ratio)
    ks = jax.random.split(key, 7)

    def rn(k, shape, scale=0.02):
        return (scale * jax.random.normal(k, shape)).astype(jnp.float32)

    return dict(
        ln1_w=jnp.ones((1, dim), jnp.float32),
        ln1_b=jnp.zeros((1, dim), jnp.float32),
        # nn.Linear weights are (out, in); stored here pre-transposed (in, out).
        # qkv output-column order matches the PyTorch reshape (3, num_heads, hd).
        wqkv=rn(ks[0], (dim, 3 * dim)),     # qkv_bias=False -> no bias
        wproj=rn(ks[1], (dim, dim)),
        bproj=rn(ks[2], (1, dim)),
        ln2_w=jnp.ones((1, dim), jnp.float32),
        ln2_b=jnp.zeros((1, dim), jnp.float32),
        w1=rn(ks[3], (dim, hidden)),
        b1=rn(ks[4], (1, hidden)),
        w2=rn(ks[5], (hidden, dim)),
        b2=rn(ks[6], (1, dim)),
    )


def prepare_encoder_params(block_params_list, dim, num_heads):
    """Stack per-block params along depth, bake the qk scale into wqkv's q
    columns, and cast matmul weights to bf16 (biases / LN params stay f32)."""
    hd = dim // num_heads
    scale = float(hd) ** (-0.5)

    def stack(k):
        return jnp.stack([p[k] for p in block_params_list], axis=0)

    wqkv = stack("wqkv")                                   # (depth, C, 3C)
    wqkv = wqkv.at[:, :, :dim].multiply(scale)             # fold 1/sqrt(hd) into q

    return dict(
        ln1_w=stack("ln1_w"), ln1_b=stack("ln1_b"),
        wqkv=wqkv.astype(COMPUTE_DTYPE),
        wproj=stack("wproj").astype(COMPUTE_DTYPE),
        bproj=stack("bproj"),
        ln2_w=stack("ln2_w"), ln2_b=stack("ln2_b"),
        w1=stack("w1").astype(COMPUTE_DTYPE), b1=stack("b1"),
        w2=stack("w2").astype(COMPUTE_DTYPE), b2=stack("b2"),
    )


if __name__ == "__main__":
    # Small but lane-friendly shapes: C is a multiple of 128 so output blocks
    # are lane-dense (real workloads should pad N/C to multiples of 128/256).
    B, N, C = 2, 32, 128
    num_heads = 4
    depth = 2
    mlp_ratio = 4.0

    key = jax.random.PRNGKey(0)
    kx, kp, kw = jax.random.split(key, 3)

    x = jax.random.normal(kx, (B, N, C), dtype=jnp.float32)
    pos = jax.random.normal(kp, (B, N, C), dtype=jnp.float32)

    block_keys = jax.random.split(kw, depth)
    block_params_list = [
        init_block_params(block_keys[i], C, num_heads, mlp_ratio)
        for i in range(depth)
    ]
    params = prepare_encoder_params(block_params_list, C, num_heads)

    fwd = jax.jit(functools.partial(transformer_encoder, num_heads=num_heads))
    out = jax.block_until_ready(fwd(x, pos, params))

    assert out.shape == (B, N, C)
    assert bool(jnp.all(jnp.isfinite(out)))
    print("KERNEL_OK")
</pallas_src>

<mosaic_0001>
module attributes {stable_mosaic.version = 11 : i64} {
  func.func @encoder_kernel(%arg0: i32, %arg1: i32, %arg2: memref<2x32x128xf32, #tpu.memory_space<vmem>>, %arg3: memref<2x32x128xf32, #tpu.memory_space<vmem>>, %arg4: memref<1x1x128xf32, #tpu.memory_space<vmem>>, %arg5: memref<1x1x128xf32, #tpu.memory_space<vmem>>, %arg6: memref<1x128x384xbf16, #tpu.memory_space<vmem>>, %arg7: memref<1x128x128xbf16, #tpu.memory_space<vmem>>, %arg8: memref<1x1x128xf32, #tpu.memory_space<vmem>>, %arg9: memref<1x1x128xf32, #tpu.memory_space<vmem>>, %arg10: memref<1x1x128xf32, #tpu.memory_space<vmem>>, %arg11: memref<1x128x512xbf16, #tpu.memory_space<vmem>>, %arg12: memref<1x1x512xf32, #tpu.memory_space<vmem>>, %arg13: memref<1x512x128xbf16, #tpu.memory_space<vmem>>, %arg14: memref<1x1x128xf32, #tpu.memory_space<vmem>>, %arg15: memref<2x32x128xf32, #tpu.memory_space<vmem>>) attributes {dimension_semantics = [#tpu.dimension_semantics<parallel>, #tpu.dimension_semantics<arbitrary>], iteration_bounds = array<i64: 1, 2>, scalar_prefetch = 0 : i64, scratch_operands = 0 : i64, tpu.core_type = #tpu.core_type<tc>, window_params = [{transform_indices = @transform_0, window_bounds = array<i64: 2, 32, 128>}, {transform_indices = @transform_1, window_bounds = array<i64: 2, 32, 128>}, {transform_indices = @transform_2, window_bounds = array<i64: 1, 1, 128>}, {transform_indices = @transform_3, window_bounds = array<i64: 1, 1, 128>}, {transform_indices = @transform_4, window_bounds = array<i64: 1, 128, 384>}, {transform_indices = @transform_5, window_bounds = array<i64: 1, 128, 128>}, {transform_indices = @transform_6, window_bounds = array<i64: 1, 1, 128>}, {transform_indices = @transform_7, window_bounds = array<i64: 1, 1, 128>}, {transform_indices = @transform_8, window_bounds = array<i64: 1, 1, 128>}, {transform_indices = @transform_9, window_bounds = array<i64: 1, 128, 512>}, {transform_indices = @transform_10, window_bounds = array<i64: 1, 1, 512>}, {transform_indices = @transform_11, window_bounds = array<i64: 1, 512, 128>}, {transform_indices = @transform_12, window_bounds = array<i64: 1, 1, 128>}, {transform_indices = @transform_13, window_bounds = array<i64: 2, 32, 128>}]} {
    %c0_i32 = arith.constant 0 : i32
    %0 = arith.cmpi eq, %arg1, %c0_i32 : i32
    %1 = arith.extui %0 : i1 to i32
    %c0_i32_0 = arith.constant 0 : i32
    %2 = arith.cmpi ne, %1, %c0_i32_0 : i32
    scf.if %2 {
      %c0_63 = arith.constant 0 : index
      %c0_64 = arith.constant 0 : index
      %c0_65 = arith.constant 0 : index
      %189 = vector.load %arg2[%c0_63, %c0_64, %c0_65] : memref<2x32x128xf32, #tpu.memory_space<vmem>>, vector<2x32x128xf32>
      %c0_66 = arith.constant 0 : index
      %c0_67 = arith.constant 0 : index
      %c0_68 = arith.constant 0 : index
      %190 = vector.load %arg15[%c0_66, %c0_67, %c0_68] : memref<2x32x128xf32, #tpu.memory_space<vmem>>, vector<2x32x128xf32>
      tpu.vector_store %arg15[%c0_66, %c0_67, %c0_68], %189 {strides = array<i32>} : memref<2x32x128xf32, #tpu.memory_space<vmem>>, vector<2x32x128xf32>,
    } else {
    }
    %c0 = arith.constant 0 : index
    %c0_1 = arith.constant 0 : index
    %c0_2 = arith.constant 0 : index
    %3 = vector.load %arg15[%c0, %c0_1, %c0_2] : memref<2x32x128xf32, #tpu.memory_space<vmem>>, vector<2x32x128xf32>
    %4 = vector.shape_cast %3 : vector<2x32x128xf32> to vector<64x128xf32>
    %c0_3 = arith.constant 0 : index
    %c0_4 = arith.constant 0 : index
    %c0_5 = arith.constant 0 : index
    %5 = vector.load %arg3[%c0_3, %c0_4, %c0_5] : memref<2x32x128xf32, #tpu.memory_space<vmem>>, vector<2x32x128xf32>
    %6 = vector.shape_cast %5 : vector<2x32x128xf32> to vector<64x128xf32>
    %7 = arith.addf %4, %6 : vector<64x128xf32>
    %c0_6 = arith.constant 0 : index
    %c0_7 = arith.constant 0 : index
    %c0_8 = arith.constant 0 : index
    %8 = vector.load %arg4[%c0_6, %c0_7, %c0_8] : memref<1x1x128xf32, #tpu.memory_space<vmem>>, vector<1x1x128xf32>
    %9 = vector.shape_cast %8 : vector<1x1x128xf32> to vector<1x128xf32>
    %c0_9 = arith.constant 0 : index
    %c0_10 = arith.constant 0 : index
    %c0_11 = arith.constant 0 : index
    %10 = vector.load %arg5[%c0_9, %c0_10, %c0_11] : memref<1x1x128xf32, #tpu.memory_space<vmem>>, vector<1x1x128xf32>
    %11 = vector.shape_cast %10 : vector<1x1x128xf32> to vector<1x128xf32>
    %cst = arith.constant dense<0.000000e+00> : vector<64xf32>
    %12 = vector.multi_reduction <add>, %7, %cst [1] : vector<64x128xf32> to vector<64xf32>
    %13 = vector.shape_cast %12 : vector<64xf32> to vector<64x1xf32>
    %cst_12 = arith.constant 1.280000e+02 : f32
    %14 = vector.broadcast %cst_12 : f32 to vector<64x1xf32>
    %15 = arith.divf %13, %14 : vector<64x1xf32>
    %16 = vector.broadcast %15 : vector<64x1xf32> to vector<64x128xf32>
    %17 = arith.subf %7, %16 : vector<64x128xf32>
    %18 = arith.mulf %17, %17 : vector<64x128xf32>
    %cst_13 = arith.constant dense<0.000000e+00> : vector<64xf32>
    %19 = vector.multi_reduction <add>, %18, %cst_13 [1] : vector<64x128xf32> to vector<64xf32>
    %20 = vector.shape_cast %19 : vector<64xf32> to vector<64x1xf32>
    %cst_14 = arith.constant 1.280000e+02 : f32
    %21 = vector.broadcast %cst_14 : f32 to vector<64x1xf32>
    %22 = arith.divf %20, %21 : vector<64x1xf32>
    %23 = vector.broadcast %15 : vector<64x1xf32> to vector<64x128xf32>
    %24 = arith.subf %7, %23 : vector<64x128xf32>
    %cst_15 = arith.constant 9.99999974E-6 : f32
    %25 = vector.broadcast %cst_15 : f32 to vector<64x1xf32>
    %26 = arith.addf %22, %25 : vector<64x1xf32>
    %27 = math.rsqrt %26 : vector<64x1xf32>
    %28 = vector.broadcast %27 : vector<64x1xf32> to vector<64x128xf32>
    %29 = arith.mulf %24, %28 : vector<64x128xf32>
    %30 = vector.broadcast %9 : vector<1x128xf32> to vector<64x128xf32>
    %31 = arith.mulf %29, %30 : vector<64x128xf32>
    %32 = vector.broadcast %11 : vector<1x128xf32> to vector<64x128xf32>
    %33 = arith.addf %31, %32 : vector<64x128xf32>
    %34 = arith.truncf %33 : vector<64x128xf32> to vector<64x128xbf16>
    %c0_16 = arith.constant 0 : index
    %c0_17 = arith.constant 0 : index
    %c0_18 = arith.constant 0 : index
    %35 = vector.load %arg6[%c0_16, %c0_17, %c0_18] : memref<1x128x384xbf16, #tpu.memory_space<vmem>>, vector<1x128x384xbf16>
    %36 = vector.shape_cast %35 : vector<1x128x384xbf16> to vector<128x384xbf16>
    %cst_19 = arith.constant dense<0.000000e+00> : vector<64x384xf32>
    %37 = tpu.matmul %34, %36, %cst_19 {dimension_numbers = #tpu.dot_dimension_numbers<[1], [0], [0], [1], [0, 0, 1, 1], [], []>} : vector<64x128xbf16>, vector<128x384xbf16>, vector<64x384xf32> -> vector<64x384xf32>
    %38 = arith.truncf %37 : vector<64x384xf32> to vector<64x384xbf16>
    %39 = vector.extract_strided_slice %38 {offsets = [0, 0], sizes = [32, 32], strides = [1, 1]} : vector<64x384xbf16> to vector<32x32xbf16>
    %40 = vector.extract_strided_slice %38 {offsets = [0, 128], sizes = [32, 32], strides = [1, 1]} : vector<64x384xbf16> to vector<32x32xbf16>
    %41 = vector.extract_strided_slice %38 {offsets = [0, 256], sizes = [32, 32], strides = [1, 1]} : vector<64x384xbf16> to vector<32x32xbf16>
    %42 = vector.extract_strided_slice %38 {offsets = [0, 32], sizes = [32, 32], strides = [1, 1]} : vector<64x384xbf16> to vector<32x32xbf16>
    %43 = vector.extract_strided_slice %38 {offsets = [0, 160], sizes = [32, 32], strides = [1, 1]} : vector<64x384xbf16> to vector<32x32xbf16>
    %44 = vector.extract_strided_slice %38 {offsets = [0, 288], sizes = [32, 32], strides = [1, 1]} : vector<64x384xbf16> to vector<32x32xbf16>
    %45 = vector.extract_strided_slice %38 {offsets = [0, 64], sizes = [32, 32], strides = [1, 1]} : vector<64x384xbf16> to vector<32x32xbf16>
    %46 = vector.extract_strided_slice %38 {offsets = [0, 192], sizes = [32, 32], strides = [1, 1]} : vector<64x384xbf16> to vector<32x32xbf16>
    %47 = vector.extract_strided_slice %38 {offsets = [0, 320], sizes = [32, 32], strides = [1, 1]} : vector<64x384xbf16> to vector<32x32xbf16>
    %48 = vector.extract_strided_slice %38 {offsets = [0, 96], sizes = [32, 32], strides = [1, 1]} : vector<64x384xbf16> to vector<32x32xbf16>
    %49 = vector.extract_strided_slice %38 {offsets = [0, 224], sizes = [32, 32], strides = [1, 1]} : vector<64x384xbf16> to vector<32x32xbf16>
    %50 = vector.extract_strided_slice %38 {offsets = [0, 352], sizes = [32, 32], strides = [1, 1]} : vector<64x384xbf16> to vector<32x32xbf16>
    %51 = vector.extract_strided_slice %38 {offsets = [32, 0], sizes = [32, 32], strides = [1, 1]} : vector<64x384xbf16> to vector<32x32xbf16>
    %52 = vector.extract_strided_slice %38 {offsets = [32, 128], sizes = [32, 32], strides = [1, 1]} : vector<64x384xbf16> to vector<32x32xbf16>
    %53 = vector.extract_strided_slice %38 {offsets = [32, 256], sizes = [32, 32], strides = [1, 1]} : vector<64x384xbf16> to vector<32x32xbf16>
    %54 = vector.extract_strided_slice %38 {offsets = [32, 32], sizes = [32, 32], strides = [1, 1]} : vector<64x384xbf16> to vector<32x32xbf16>
    %55 = vector.extract_strided_slice %38 {offsets = [32, 160], sizes = [32, 32], strides = [1, 1]} : vector<64x384xbf16> to vector<32x32xbf16>
    %56 = vector.extract_strided_slice %38 {offsets = [32, 288], sizes = [32, 32], strides = [1, 1]} : vector<64x384xbf16> to vector<32x32xbf16>
    %57 = vector.extract_strided_slice %38 {offsets = [32, 64], sizes = [32, 32], strides = [1, 1]} : vector<64x384xbf16> to vector<32x32xbf16>
    %58 = vector.extract_strided_slice %38 {offsets = [32, 192], sizes = [32, 32], strides = [1, 1]} : vector<64x384xbf16> to vector<32x32xbf16>
    %59 = vector.extract_strided_slice %38 {offsets = [32, 320], sizes = [32, 32], strides = [1, 1]} : vector<64x384xbf16> to vector<32x32xbf16>
    %60 = vector.extract_strided_slice %38 {offsets = [32, 96], sizes = [32, 32], strides = [1, 1]} : vector<64x384xbf16> to vector<32x32xbf16>
    %61 = vector.extract_strided_slice %38 {offsets = [32, 224], sizes = [32, 32], strides = [1, 1]} : vector<64x384xbf16> to vector<32x32xbf16>
    %62 = vector.extract_strided_slice %38 {offsets = [32, 352], sizes = [32, 32], strides = [1, 1]} : vector<64x384xbf16> to vector<32x32xbf16>
    %63 = vector.shape_cast %39 : vector<32x32xbf16> to vector<1x32x32xbf16>
    %64 = vector.shape_cast %42 : vector<32x32xbf16> to vector<1x32x32xbf16>
    %65 = vector.shape_cast %45 : vector<32x32xbf16> to vector<1x32x32xbf16>
    %66 = vector.shape_cast %48 : vector<32x32xbf16> to vector<1x32x32xbf16>
    %67 = vector.shape_cast %51 : vector<32x32xbf16> to vector<1x32x32xbf16>
    %68 = vector.shape_cast %54 : vector<32x32xbf16> to vector<1x32x32xbf16>
    %69 = vector.shape_cast %57 : vector<32x32xbf16> to vector<1x32x32xbf16>
    %70 = vector.shape_cast %60 : vector<32x32xbf16> to vector<1x32x32xbf16>
    %71 = tpu.concatenate %63, %64, %65, %66, %67, %68, %69, %70 in 0 : vector<1x32x32xbf16>, vector<1x32x32xbf16>, vector<1x32x32xbf16>, vector<1x32x32xbf16>, vector<1x32x32xbf16>, vector<1x32x32xbf16>, vector<1x32x32xbf16>, vector<1x32x32xbf16> -> vector<8x32x32xbf16>
    %72 = vector.shape_cast %40 : vector<32x32xbf16> to vector<1x32x32xbf16>
    %73 = vector.shape_cast %43 : vector<32x32xbf16> to vector<1x32x32xbf16>
    %74 = vector.shape_cast %46 : vector<32x32xbf16> to vector<1x32x32xbf16>
    %75 = vector.shape_cast %49 : vector<32x32xbf16> to vector<1x32x32xbf16>
    %76 = vector.shape_cast %52 : vector<32x32xbf16> to vector<1x32x32xbf16>
    %77 = vector.shape_cast %55 : vector<32x32xbf16> to vector<1x32x32xbf16>
    %78 = vector.shape_cast %58 : vector<32x32xbf16> to vector<1x32x32xbf16>
    %79 = vector.shape_cast %61 : vector<32x32xbf16> to vector<1x32x32xbf16>
    %80 = tpu.concatenate %72, %73, %74, %75, %76, %77, %78, %79 in 0 : vector<1x32x32xbf16>, vector<1x32x32xbf16>, vector<1x32x32xbf16>, vector<1x32x32xbf16>, vector<1x32x32xbf16>, vector<1x32x32xbf16>, vector<1x32x32xbf16>, vector<1x32x32xbf16> -> vector<8x32x32xbf16>
    %81 = vector.shape_cast %41 : vector<32x32xbf16> to vector<1x32x32xbf16>
    %82 = vector.shape_cast %44 : vector<32x32xbf16> to vector<1x32x32xbf16>
    %83 = vector.shape_cast %47 : vector<32x32xbf16> to vector<1x32x32xbf16>
    %84 = vector.shape_cast %50 : vector<32x32xbf16> to vector<1x32x32xbf16>
    %85 = vector.shape_cast %53 : vector<32x32xbf16> to vector<1x32x32xbf16>
    %86 = vector.shape_cast %56 : vector<32x32xbf16> to vector<1x32x32xbf16>
    %87 = vector.shape_cast %59 : vector<32x32xbf16> to vector<1x32x32xbf16>
    %88 = vector.shape_cast %62 : vector<32x32xbf16> to vector<1x32x32xbf16>
    %89 = tpu.concatenate %81, %82, %83, %84, %85, %86, %87, %88 in 0 : vector<1x32x32xbf16>, vector<1x32x32xbf16>, vector<1x32x32xbf16>, vector<1x32x32xbf16>, vector<1x32x32xbf16>, vector<1x32x32xbf16>, vector<1x32x32xbf16>, vector<1x32x32xbf16> -> vector<8x32x32xbf16>
    "tpu.trace_start"() <{level = 10 : i32, message = "gqd,gkd->gqk"}> : () -> ()
    %cst_20 = arith.constant dense<0.000000e+00> : vector<8x32x32xf32>
    %90 = tpu.matmul %71, %80, %cst_20 {dimension_numbers = #tpu.dot_dimension_numbers<[2], [2], [1], [1], [0, 0, 0, 1, 1, 1], [0], [0]>} : vector<8x32x32xbf16>, vector<8x32x32xbf16>, vector<8x32x32xf32> -> vector<8x32x32xf32>
    "tpu.trace_stop"() : () -> ()
    %cst_21 = arith.constant dense<0xFF800000> : vector<8x32xf32>
    %91 = vector.multi_reduction <maximumf>, %90, %cst_21 [2] : vector<8x32x32xf32> to vector<8x32xf32>
    %92 = vector.shape_cast %91 : vector<8x32xf32> to vector<8x32x1xf32>
    %93 = vector.broadcast %92 : vector<8x32x1xf32> to vector<8x32x32xf32>
    %94 = arith.subf %90, %93 : vector<8x32x32xf32>
    %95 = math.exp %94 : vector<8x32x32xf32>
    %cst_22 = arith.constant dense<0.000000e+00> : vector<8x32xf32>
    %96 = vector.multi_reduction <add>, %95, %cst_22 [2] : vector<8x32x32xf32> to vector<8x32xf32>
    %97 = vector.shape_cast %96 : vector<8x32xf32> to vector<8x32x1xf32>
    %98 = tpu.reciprocal %97 {approx = true} : vector<8x32x1xf32> -> vector<8x32x1xf32>
    %99 = vector.broadcast %98 : vector<8x32x1xf32> to vector<8x32x32xf32>
    %100 = arith.mulf %95, %99 : vector<8x32x32xf32>
    %101 = arith.truncf %100 : vector<8x32x32xf32> to vector<8x32x32xbf16>
    "tpu.trace_start"() <{level = 10 : i32, message = "gqk,gkd->gqd"}> : () -> ()
    %cst_23 = arith.constant dense<0.000000e+00> : vector<8x32x32xf32>
    %102 = tpu.matmul %101, %89, %cst_23 {dimension_numbers = #tpu.dot_dimension_numbers<[2], [1], [1], [2], [0, 0, 0, 1, 1, 2], [0], [0]>} : vector<8x32x32xbf16>, vector<8x32x32xbf16>, vector<8x32x32xf32> -> vector<8x32x32xf32>
    "tpu.trace_stop"() : () -> ()
    %103 = vector.extract_strided_slice %102 {offsets = [0, 0, 0], sizes = [1, 32, 32], strides = [1, 1, 1]} : vector<8x32x32xf32> to vector<1x32x32xf32>
    %104 = vector.shape_cast %103 : vector<1x32x32xf32> to vector<32x32xf32>
    %105 = vector.extract_strided_slice %102 {offsets = [1, 0, 0], sizes = [1, 32, 32], strides = [1, 1, 1]} : vector<8x32x32xf32> to vector<1x32x32xf32>
    %106 = vector.shape_cast %105 : vector<1x32x32xf32> to vector<32x32xf32>
    %107 = vector.extract_strided_slice %102 {offsets = [2, 0, 0], sizes = [1, 32, 32], strides = [1, 1, 1]} : vector<8x32x32xf32> to vector<1x32x32xf32>
    %108 = vector.shape_cast %107 : vector<1x32x32xf32> to vector<32x32xf32>
    %109 = vector.extract_strided_slice %102 {offsets = [3, 0, 0], sizes = [1, 32, 32], strides = [1, 1, 1]} : vector<8x32x32xf32> to vector<1x32x32xf32>
    %110 = vector.shape_cast %109 : vector<1x32x32xf32> to vector<32x32xf32>
    %111 = tpu.concatenate %104, %106, %108, %110 in 1 : vector<32x32xf32>, vector<32x32xf32>, vector<32x32xf32>, vector<32x32xf32> -> vector<32x128xf32>
    %112 = vector.extract_strided_slice %102 {offsets = [4, 0, 0], sizes = [1, 32, 32], strides = [1, 1, 1]} : vector<8x32x32xf32> to vector<1x32x32xf32>
    %113 = vector.shape_cast %112 : vector<1x32x32xf32> to vector<32x32xf32>
    %114 = vector.extract_strided_slice %102 {offsets = [5, 0, 0], sizes = [1, 32, 32], strides = [1, 1, 1]} : vector<8x32x32xf32> to vector<1x32x32xf32>
    %115 = vector.shape_cast %114 : vector<1x32x32xf32> to vector<32x32xf32>
    %116 = vector.extract_strided_slice %102 {offsets = [6, 0, 0], sizes = [1, 32, 32], strides = [1, 1, 1]} : vector<8x32x32xf32> to vector<1x32x32xf32>
    %117 = vector.shape_cast %116 : vector<1x32x32xf32> to vector<32x32xf32>
    %118 = vector.extract_strided_slice %102 {offsets = [7, 0, 0], sizes = [1, 32, 32], strides = [1, 1, 1]} : vector<8x32x32xf32> to vector<1x32x32xf32>
    %119 = vector.shape_cast %118 : vector<1x32x32xf32> to vector<32x32xf32>
    %120 = tpu.concatenate %113, %115, %117, %119 in 1 : vector<32x32xf32>, vector<32x32xf32>, vector<32x32xf32>, vector<32x32xf32> -> vector<32x128xf32>
    %121 = tpu.concatenate %111, %120 in 0 : vector<32x128xf32>, vector<32x128xf32> -> vector<64x128xf32>
    %122 = arith.truncf %121 : vector<64x128xf32> to vector<64x128xbf16>
    %c0_24 = arith.constant 0 : index
    %c0_25 = arith.constant 0 : index
    %c0_26 = arith.constant 0 : index
    %123 = vector.load %arg7[%c0_24, %c0_25, %c0_26] : memref<1x128x128xbf16, #tpu.memory_space<vmem>>, vector<1x128x128xbf16>
    %124 = vector.shape_cast %123 : vector<1x128x128xbf16> to vector<128x128xbf16>
    %cst_27 = arith.constant dense<0.000000e+00> : vector<64x128xf32>
    %125 = tpu.matmul %122, %124, %cst_27 {dimension_numbers = #tpu.dot_dimension_numbers<[1], [0], [0], [1], [0, 0, 1, 1], [], []>} : vector<64x128xbf16>, vector<128x128xbf16>, vector<64x128xf32> -> vector<64x128xf32>
    %c0_28 = arith.constant 0 : index
    %c0_29 = arith.constant 0 : index
    %c0_30 = arith.constant 0 : index
    %126 = vector.load %arg8[%c0_28, %c0_29, %c0_30] : memref<1x1x128xf32, #tpu.memory_space<vmem>>, vector<1x1x128xf32>
    %127 = vector.shape_cast %126 : vector<1x1x128xf32> to vector<1x128xf32>
    %128 = vector.broadcast %127 : vector<1x128xf32> to vector<64x128xf32>
    %129 = arith.addf %125, %128 : vector<64x128xf32>
    %130 = arith.addf %7, %129 : vector<64x128xf32>
    %c0_31 = arith.constant 0 : index
    %c0_32 = arith.constant 0 : index
    %c0_33 = arith.constant 0 : index
    %131 = vector.load %arg9[%c0_31, %c0_32, %c0_33] : memref<1x1x128xf32, #tpu.memory_space<vmem>>, vector<1x1x128xf32>
    %132 = vector.shape_cast %131 : vector<1x1x128xf32> to vector<1x128xf32>
    %c0_34 = arith.constant 0 : index
    %c0_35 = arith.constant 0 : index
    %c0_36 = arith.constant 0 : index
    %133 = vector.load %arg10[%c0_34, %c0_35, %c0_36] : memref<1x1x128xf32, #tpu.memory_space<vmem>>, vector<1x1x128xf32>
    %134 = vector.shape_cast %133 : vector<1x1x128xf32> to vector<1x128xf32>
    %cst_37 = arith.constant dense<0.000000e+00> : vector<64xf32>
    %135 = vector.multi_reduction <add>, %130, %cst_37 [1] : vector<64x128xf32> to vector<64xf32>
    %136 = vector.shape_cast %135 : vector<64xf32> to vector<64x1xf32>
    %cst_38 = arith.constant 1.280000e+02 : f32
    %137 = vector.broadcast %cst_38 : f32 to vector<64x1xf32>
    %138 = arith.divf %136, %137 : vector<64x1xf32>
    %139 = vector.broadcast %138 : vector<64x1xf32> to vector<64x128xf32>
    %140 = arith.subf %130, %139 : vector<64x128xf32>
    %141 = arith.mulf %140, %140 : vector<64x128xf32>
    %cst_39 = arith.constant dense<0.000000e+00> : vector<64xf32>
    %142 = vector.multi_reduction <add>, %141, %cst_39 [1] : vector<64x128xf32> to vector<64xf32>
    %143 = vector.shape_cast %142 : vector<64xf32> to vector<64x1xf32>
    %cst_40 = arith.constant 1.280000e+02 : f32
    %144 = vector.broadcast %cst_40 : f32 to vector<64x1xf32>
    %145 = arith.divf %143, %144 : vector<64x1xf32>
    %146 = vector.broadcast %138 : vector<64x1xf32> to vector<64x128xf32>
    %147 = arith.subf %130, %146 : vector<64x128xf32>
    %cst_41 = arith.constant 9.99999974E-6 : f32
    %148 = vector.broadcast %cst_41 : f32 to vector<64x1xf32>
    %149 = arith.addf %145, %148 : vector<64x1xf32>
    %150 = math.rsqrt %149 : vector<64x1xf32>
    %151 = vector.broadcast %150 : vector<64x1xf32> to vector<64x128xf32>
    %152 = arith.mulf %147, %151 : vector<64x128xf32>
    %153 = vector.broadcast %132 : vector<1x128xf32> to vector<64x128xf32>
    %154 = arith.mulf %152, %153 : vector<64x128xf32>
    %155 = vector.broadcast %134 : vector<1x128xf32> to vector<64x128xf32>
    %156 = arith.addf %154, %155 : vector<64x128xf32>
    %157 = arith.truncf %156 : vector<64x128xf32> to vector<64x128xbf16>
    %c0_42 = arith.constant 0 : index
    %c0_43 = arith.constant 0 : index
    %c0_44 = arith.constant 0 : index
    %158 = vector.load %arg11[%c0_42, %c0_43, %c0_44] : memref<1x128x512xbf16, #tpu.memory_space<vmem>>, vector<1x128x512xbf16>
    %159 = vector.shape_cast %158 : vector<1x128x512xbf16> to vector<128x512xbf16>
    %cst_45 = arith.constant dense<0.000000e+00> : vector<64x512xf32>
    %160 = tpu.matmul %157, %159, %cst_45 {dimension_numbers = #tpu.dot_dimension_numbers<[1], [0], [0], [1], [0, 0, 1, 1], [], []>} : vector<64x128xbf16>, vector<128x512xbf16>, vector<64x512xf32> -> vector<64x512xf32>
    %c0_46 = arith.constant 0 : index
    %c0_47 = arith.constant 0 : index
    %c0_48 = arith.constant 0 : index
    %161 = vector.load %arg12[%c0_46, %c0_47, %c0_48] : memref<1x1x512xf32, #tpu.memory_space<vmem>>, vector<1x1x512xf32>
    %162 = vector.shape_cast %161 : vector<1x1x512xf32> to vector<1x512xf32>
    %163 = vector.broadcast %162 : vector<1x512xf32> to vector<64x512xf32>
    %164 = arith.addf %160, %163 : vector<64x512xf32>
    %165 = arith.mulf %164, %164 : vector<64x512xf32>
    %166 = arith.mulf %164, %165 : vector<64x512xf32>
    %cst_49 = arith.constant 4.471500e-02 : f32
    %167 = vector.broadcast %cst_49 : f32 to vector<64x512xf32>
    %168 = arith.mulf %167, %166 : vector<64x512xf32>
    %169 = arith.addf %164, %168 : vector<64x512xf32>
    %cst_50 = arith.constant 0.797884583 : f32
    %170 = vector.broadcast %cst_50 : f32 to vector<64x512xf32>
    %171 = arith.mulf %170, %169 : vector<64x512xf32>
    %172 = math.tanh %171 : vector<64x512xf32>
    %cst_51 = arith.constant 1.000000e+00 : f32
    %173 = vector.broadcast %cst_51 : f32 to vector<64x512xf32>
    %174 = arith.addf %173, %172 : vector<64x512xf32>
    %cst_52 = arith.constant 5.000000e-01 : f32
    %175 = vector.broadcast %cst_52 : f32 to vector<64x512xf32>
    %176 = arith.mulf %175, %174 : vector<64x512xf32>
    %177 = arith.mulf %164, %176 : vector<64x512xf32>
    %178 = arith.truncf %177 : vector<64x512xf32> to vector<64x512xbf16>
    %c0_53 = arith.constant 0 : index
    %c0_54 = arith.constant 0 : index
    %c0_55 = arith.constant 0 : index
    %179 = vector.load %arg13[%c0_53, %c0_54, %c0_55] : memref<1x512x128xbf16, #tpu.memory_space<vmem>>, vector<1x512x128xbf16>
    %180 = vector.shape_cast %179 : vector<1x512x128xbf16> to vector<512x128xbf16>
    %cst_56 = arith.constant dense<0.000000e+00> : vector<64x128xf32>
    %181 = tpu.matmul %178, %180, %cst_56 {dimension_numbers = #tpu.dot_dimension_numbers<[1], [0], [0], [1], [0, 0, 1, 1], [], []>} : vector<64x512xbf16>, vector<512x128xbf16>, vector<64x128xf32> -> vector<64x128xf32>
    %c0_57 = arith.constant 0 : index
    %c0_58 = arith.constant 0 : index
    %c0_59 = arith.constant 0 : index
    %182 = vector.load %arg14[%c0_57, %c0_58, %c0_59] : memref<1x1x128xf32, #tpu.memory_space<vmem>>, vector<1x1x128xf32>
    %183 = vector.shape_cast %182 : vector<1x1x128xf32> to vector<1x128xf32>
    %184 = vector.broadcast %183 : vector<1x128xf32> to vector<64x128xf32>
    %185 = arith.addf %181, %184 : vector<64x128xf32>
    %186 = arith.addf %130, %185 : vector<64x128xf32>
    %187 = vector.shape_cast %186 : vector<64x128xf32> to vector<2x32x128xf32>
    %c0_60 = arith.constant 0 : index
    %c0_61 = arith.constant 0 : index
    %c0_62 = arith.constant 0 : index
    %188 = vector.load %arg15[%c0_60, %c0_61, %c0_62] : memref<2x32x128xf32, #tpu.memory_space<vmem>>, vector<2x32x128xf32>
    tpu.vector_store %arg15[%c0_60, %c0_61, %c0_62], %187 {strides = array<i32>} : memref<2x32x128xf32, #tpu.memory_space<vmem>>, vector<2x32x128xf32>,
    return
  }
  func.func @transform_0(%arg0: i32, %arg1: i32) -> (i32, i32, i32) {
    %c0_i32 = arith.constant 0 : i32
    %c0_i32_0 = arith.constant 0 : i32
    %c0_i32_1 = arith.constant 0 : i32
    return %arg0, %c0_i32, %c0_i32_0 : i32, i32, i32
  }
  func.func @transform_1(%arg0: i32, %arg1: i32) -> (i32, i32, i32) {
    %c0_i32 = arith.constant 0 : i32
    %c0_i32_0 = arith.constant 0 : i32
    %c0_i32_1 = arith.constant 0 : i32
    return %arg0, %c0_i32, %c0_i32_0 : i32, i32, i32
  }
  func.func @transform_2(%arg0: i32, %arg1: i32) -> (i32, i32, i32) {
    %c0_i32 = arith.constant 0 : i32
    %c0_i32_0 = arith.constant 0 : i32
    %c0_i32_1 = arith.constant 0 : i32
    return %arg1, %c0_i32, %c0_i32_0 : i32, i32, i32
  }
  func.func @transform_3(%arg0: i32, %arg1: i32) -> (i32, i32, i32) {
    %c0_i32 = arith.constant 0 : i32
    %c0_i32_0 = arith.constant 0 : i32
    %c0_i32_1 = arith.constant 0 : i32
    return %arg1, %c0_i32, %c0_i32_0 : i32, i32, i32
  }
  func.func @transform_4(%arg0: i32, %arg1: i32) -> (i32, i32, i32) {
    %c0_i32 = arith.constant 0 : i32
    %c0_i32_0 = arith.constant 0 : i32
    %c0_i32_1 = arith.constant 0 : i32
    return %arg1, %c0_i32, %c0_i32_0 : i32, i32, i32
  }
  func.func @transform_5(%arg0: i32, %arg1: i32) -> (i32, i32, i32) {
    %c0_i32 = arith.constant 0 : i32
    %c0_i32_0 = arith.constant 0 : i32
    %c0_i32_1 = arith.constant 0 : i32
    return %arg1, %c0_i32, %c0_i32_0 : i32, i32, i32
  }
  func.func @transform_6(%arg0: i32, %arg1: i32) -> (i32, i32, i32) {
    %c0_i32 = arith.constant 0 : i32
    %c0_i32_0 = arith.constant 0 : i32
    %c0_i32_1 = arith.constant 0 : i32
    return %arg1, %c0_i32, %c0_i32_0 : i32, i32, i32
  }
  func.func @transform_7(%arg0: i32, %arg1: i32) -> (i32, i32, i32) {
    %c0_i32 = arith.constant 0 : i32
    %c0_i32_0 = arith.constant 0 : i32
    %c0_i32_1 = arith.constant 0 : i32
    return %arg1, %c0_i32, %c0_i32_0 : i32, i32, i32
  }
  func.func @transform_8(%arg0: i32, %arg1: i32) -> (i32, i32, i32) {
    %c0_i32 = arith.constant 0 : i32
    %c0_i32_0 = arith.constant 0 : i32
    %c0_i32_1 = arith.constant 0 : i32
    return %arg1, %c0_i32, %c0_i32_0 : i32, i32, i32
  }
  func.func @transform_9(%arg0: i32, %arg1: i32) -> (i32, i32, i32) {
    %c0_i32 = arith.constant 0 : i32
    %c0_i32_0 = arith.constant 0 : i32
    %c0_i32_1 = arith.constant 0 : i32
    return %arg1, %c0_i32, %c0_i32_0 : i32, i32, i32
  }
  func.func @transform_10(%arg0: i32, %arg1: i32) -> (i32, i32, i32) {
    %c0_i32 = arith.constant 0 : i32
    %c0_i32_0 = arith.constant 0 : i32
    %c0_i32_1 = arith.constant 0 : i32
    return %arg1, %c0_i32, %c0_i32_0 : i32, i32, i32
  }
  func.func @transform_11(%arg0: i32, %arg1: i32) -> (i32, i32, i32) {
    %c0_i32 = arith.constant 0 : i32
    %c0_i32_0 = arith.constant 0 : i32
    %c0_i32_1 = arith.constant 0 : i32
    return %arg1, %c0_i32, %c0_i32_0 : i32, i32, i32
  }
  func.func @transform_12(%arg0: i32, %arg1: i32) -> (i32, i32, i32) {
    %c0_i32 = arith.constant 0 : i32
    %c0_i32_0 = arith.constant 0 : i32
    %c0_i32_1 = arith.constant 0 : i32
    return %arg1, %c0_i32, %c0_i32_0 : i32, i32, i32
  }
  func.func @transform_13(%arg0: i32, %arg1: i32) -> (i32, i32, i32) {
    %c0_i32 = arith.constant 0 : i32
    %c0_i32_0 = arith.constant 0 : i32
    %c0_i32_1 = arith.constant 0 : i32
    return %arg0, %c0_i32, %c0_i32_0 : i32, i32, i32
  }
}

</mosaic_0001>

<bundles_post_ra>
// kernel: transformer_encoder.1
= control target key start
LH: loop header
LB: loop body
LE: loop exit
PB: predicated region body
PF: predicated region fallthrough
CT: control target
= control target key end

     0   :  { %s7103_s0 = inlined_call_operand.hbm [shape: f32[2,32,128], index: 0, kind: input, shape index: {}, may-alias: {0,13}]   ;;  %s7104_s1 = inlined_call_operand.hbm [shape: f32[2,32,128], index: 1, kind: input, shape index: {}]   ;;  %s7105_s2 = inlined_call_operand.vmem [shape: f32[2,1,128], index: 2, kind: input, shape index: {}]   ;;  %s7106_s3 = inlined_call_operand.vmem [shape: f32[2,1,128], index: 3, kind: input, shape index: {}]   ;;  %s7107_s4 = inlined_call_operand.hbm [shape: bf16[2,128,384], index: 4, kind: input, shape index: {}]   ;;  %s7108_s5 = inlined_call_operand.vmem [shape: bf16[2,128,128], index: 5, kind: input, shape index: {}]   ;;  %s7109_s6 = inlined_call_operand.vmem [shape: f32[2,1,128], index: 6, kind: input, shape index: {}]   ;;  %s7110_s7 = inlined_call_operand.vmem [shape: f32[2,1,128], index: 7, kind: input, shape index: {}]   ;;  %s7111_s8 = inlined_call_operand.vmem [shape: f32[2,1,128], index: 8, kind: input, shape index: {}]   ;;  %s7112_s9 = inlined_call_operand.hbm [shape: bf16[2,128,512], index: 9, kind: input, shape index: {}]   ;;  %s7113_s10 = inlined_call_operand.vmem [shape: f32[2,1,512], index: 10, kind: input, shape index: {}]   ;;  %s7114_s11 = inlined_call_operand.hbm [shape: bf16[2,512,128], index: 11, kind: input, shape index: {}]   ;;  %s7115_s12 = inlined_call_operand.vmem [shape: f32[2,1,128], index: 12, kind: input, shape index: {}]   ;;  %s7116_s13 = inlined_call_operand.hbm [shape: f32[2,32,128], index: 13, kind: output, shape index: {}, may-alias: {0,13}]  }
   0x1   :  { %7135 = sst [smem:[#allocation19_spill]] %s7103_s0 }
   0x2   :  { %7136 = sst [smem:[#allocation20_spill]] %s7104_s1 }
   0x3   :  { %7137 = sst [smem:[#allocation21_spill]] %s7107_s4 }
   0x4   :  { %7138 = sst [smem:[#allocation22_spill]] %s7108_s5 }
   0x5   :  { %7139 = sst [smem:[#allocation23_spill]] %s7109_s6 }
   0x6   :  { %7140 = sst [smem:[#allocation24_spill]] %s7110_s7 }
   0x7   :  { %7141 = sst [smem:[#allocation25_spill]] %s7111_s8 }
   0x8   :  { %7142 = sst [smem:[#allocation26_spill]] %s7112_s9 }
   0x9   :  { %7143 = sst [smem:[#allocation27_spill]] %s7113_s10 }
   0xa   :  { %7144 = sst [smem:[#allocation28_spill]] %s7114_s11 }
   0xb   :  { %7145 = sst [smem:[#allocation29_spill]] %s7115_s12 }
   0xc   :  { %7146 = sst [smem:[#allocation30_spill]] %s7116_s13 }
   0xd   :  { %18 = vsyncpa [#allocation3], 0 }
   0xe   :  { %19 = vsyncpa [#allocation6], 0 }
   0xf   :  { %20 = vsyncpa [#allocation4], 0  ;;  %s5620_s25 = smov 0   ;;  %s5622_s26 = smov 0  }
  0x10   :  { %s5624_s27 = smov 0   ;;  %s5626_s28 = smov 0  }
  0x11   :  { %s5628_s29 = smov 0   ;;  %s5630_s30 = smov 0  }
  0x12 LB: > { %7147 = sst [smem:[#allocation15_spill]] %s5516_s27  ;;  %s5649_s14 = sadd.s32 4294967295, %s5528_s30   ;;  %s5528_s30 = sphi %s5630_s30, %s26_s30   ;;  %s5524_s29 = sphi %s5628_s29, %s7194_s29   ;;  %s5520_s28 = sphi %s5626_s28, %s7193_s28   ;;  %s5516_s27 = sphi %s5624_s27, %s7192_s27   ;;  %s5512_s26 = sphi %s5622_s26, %s7196_s26   ;;  %s5508_s25 = sphi %s5620_s25, %s7195_s25  }
  0x13   : > { %7148 = sst [smem:[#allocation16_spill]] %s5524_s29  ;;  %p156_p0 = scmp.ne.s32.totalorder %s5516_s27, %s5512_s26 }
  0x14   : > { %p157_p1 = scmp.eq.s32.totalorder %s5528_s30, 0  ;;  %p162_p2 = scmp.ne.s32.totalorder %s5512_s26, %s5508_s25 }
  0x15   : > { %p7118_p3 = scmp.eq.s32.totalorder %s5649_s14, 0  ;;  %p4259_p5 = scmp.ge.s32.totalorder %s5528_s30, 1 }
  0x16   : > { %p158_p4 = por %p157_p1, %p156_p0  ;;  %p407_p7 = scmp.lt.s32.totalorder %s5528_s30, 3 }
  0x17   : > { %p5660_p6 = por %p7118_p3, %p162_p2  ;;  %s5530_s18 = smov [#allocation2]  }
  0x18   : > { %p5665_p8 = pnand %p4259_p5, %p407_p7  ;;  %s423_s19 = sshll.u32 %s5530_s18, 4  ;;  %s424_s19 = int_to_ptr.vmem [resolvable:$true] %s423_s19 }
  0x19   : > { %s7149_s16 = scalar_select %p5660_p6, 1, 0 }
  0x1a   : > { %s7150_s17 = scalar_select %p5665_p8, 1, 0 }
  0x1b   : > { %p4801_p9 = pneg %p5665_p8  ;;  %p4820_p10 = scmp.lt.s32.totalorder %s5528_s30, 2 }
  0x1c   : > { %s35_s22 = sadd.s32 1, %s5524_s29  ;;  %s7153_s0 = sld [smem:[#allocation19_spill]] }
  0x1d   : > { %p5674_p11 = pnand %p4801_p9, %p7118_p3  ;;  %p5678_p12 = pnand %p4820_p10, %p158_p4 }
  0x1f   : > { %s7151_s20 = scalar_select %p5674_p11, 1, 0 }
  0x20   : > { %s7152_s21 = scalar_select %p5678_p12, 1, 0 }
  0x21   : > { %p7124_p0 = pneg %p5674_p11 }
  0x22   : > { %s5294_s25 = scalar_lea.hbm %s7153_s0, 1024 }
  0x23   : > { %p5295_p13 = scmp.ne.s32.totalorder %s7153_s0, %s5294_s25  ;;  %p5301_p4 = scmp.lt.u32.totalorder %s5294_s25, %s7153_s0 }
  0x25   : > { %p5297_p1 = pnand %p7124_p0, %p5295_p13 }
  0x27   : > { %p5298_p2 = pneg %p5297_p1 }
  0x29   : > { %p5303_p5 = pnand %p5301_p4, %p5298_p2 }
  0x2b   : > { %5306 = shalt.err (!%p5303_p5)
}
  0x2c   : > { %s5307_s10 = scalar_lea.vmem %s424_s19, 1024  ;;  %p5315_p3 = scmp.lt.s32.totalorder %s424_s19, %s424_s19 }
  0x2d   : > { %p5308_p7 = scmp.ne.s32.totalorder %s424_s19, %s5307_s10  ;;  %p5316_p6 = scmp.lt.s32.totalorder %s5307_s10, %s5307_s10 }
  0x2f   : > { %p5310_p9 = pnand %p5308_p7, %p7124_p0  ;;  %p5317_p8 = por %p5316_p6, %p5315_p3 }
  0x31   : > { %p5311_p10 = pneg %p5310_p9 }
  0x33   : > { %p5318_p12 = pnand %p5317_p8, %p5311_p10 }
  0x35   : > { %5321 = shalt.err (!%p5318_p12)
}
  0x36   : > { %s7122_s15 = smov 128   ;;  %s7123_s12 = smov 8  }
  0x37   : > { %4804 = dma.hbm_to_vmem [thread:$0]  (!%p5674_p11), %s7153_s0, 1024, %s424_s19, [#allocation3], %s7122_s15, %s7122_s15, %s7123_s12  }
  0x38   : > { %p36_p3 = scmp.ge.s32.totalorder %s35_s22, 2  ;;  %s466_s10 = sand.u32 1, %s5528_s30  }
  0x39   : > { %s468_s24 = sand.u32 1, %s5516_s27   ;;  %s4781_s8 = smul.u32 3072, %s5524_s29 }
  0x3a   : > { %s7198_s22 = smov (%p36_p3, %s35_s22), 0  ;;  %s4780_s25 = smul.u32 192, %s468_s24 }
  0x3b   : > { %7154 = sst [smem:[#allocation17_spill]] %s7198_s22  ;;  %s146_s18 = ssub.s32 %s5524_s29, %s7198_s22 }
  0x3c   : > { %p147_p6 = scmp.eq.s32.totalorder %s146_s18, 0  ;;  %s7155_s4 = sld [smem:[#allocation21_spill]] }
  0x3d   : > { %s470_s19 = scalar_lea.vmem [#allocation7], %s4780_s25  ;;  %s7156_s23 = sadd.s32 1, %s5516_s27 }
  0x3e   : > { %s477_s13 = sshll.u32 %s470_s19, 4  ;;  %s5727_s12 = sshll.u32 %s468_s24, 8  ;;  %s5725_s13 = int_to_ptr.vmem [resolvable:$true] %s477_s13 }
  0x3f   : > { %s5723_s15 = scalar_select %p147_p6, %s5516_s27, %s7156_s23  }
  0x40   : > { %s5729_s0 = scalar_lea.sflag [#allocation3], %s466_s10  ;;  %p7158_p12 = scmp.ne.s32.totalorder %s7152_s21, 0 }
  0x41   : > { %7157 = sst [smem:[#allocation18_spill]] %s5723_s15 }
  0x42   : > { %s5718_s6 = scalar_lea.hbm %s7155_s4, %s4781_s8  ;;  %p5735_p13 = pneg %p7158_p12 }
  0x43   : > { %s5322_s18 = scalar_lea.hbm %s5718_s6, 3072  ;;  %s5327_s25 = scalar_lea.hbm %s7155_s4, 6144 }
  0x44   : > { %p5323_p8 = scmp.ne.s32.totalorder %s5718_s6, %s5322_s18  ;;  %p5328_p4 = scmp.lt.u32.totalorder %s5718_s6, %s7155_s4 }
  0x45   : > { %s7159_s5 = scalar_select %p5735_p13, 1, 0 }
  0x46   : > { %p5325_p1 = pnand %p5735_p13, %p5323_p8  ;;  %p5329_p5 = scmp.lt.u32.totalorder %s5327_s25, %s5322_s18 }
  0x47   : > { %p5331_p9 = scmp.lt.u32.totalorder %s5322_s18, %s5718_s6 }
  0x48   : > { %p5326_p2 = pneg %p5325_p1  ;;  %p5330_p7 = por %p5329_p5, %p5328_p4 }
  0x4a   : > { %p5332_p10 = por %p5331_p9, %p5330_p7 }
  0x4c   : > { %p5333_p3 = pnand %p5332_p10, %p5326_p2 }
  0x4e   : > { %5336 = shalt.err (!%p5333_p3)
}
  0x4f   : > { %s5337_s10 = scalar_lea.vmem %s5725_s13, 3072  ;;  %s5533_s23 = smov [#allocation7]  }
  0x50   : > { %p5338_p6 = scmp.ne.s32.totalorder %s5725_s13, %s5337_s10  ;;  %s5342_s7 = sshll.u32 %s5533_s23, 4  ;;  %s5343_s7 = int_to_ptr.vmem [resolvable:$false] %s5342_s7 }
  0x51   : > { %s5344_s8 = scalar_lea.vmem %s5343_s7, 6144  ;;  %p5345_p0 = scmp.lt.s32.totalorder %s5725_s13, %s5343_s7 }
  0x52   : > { %p5340_p8 = pnand %p5338_p6, %p5735_p13  ;;  %p5346_p11 = scmp.lt.s32.totalorder %s5344_s8, %s5337_s10 }
  0x54   : > { %p5341_p1 = pneg %p5340_p8  ;;  %p5347_p4 = por %p5346_p11, %p5345_p0 }
  0x56   : > { %p5348_p5 = pnand %p5347_p4, %p5341_p1 }
  0x58   : > { %5351 = shalt.err (!%p5348_p5)
}
  0x59   : > { %s5534_s18 = smov 192   ;;  %s5535_s25 = smov 12  }
  0x5a   : > { %4811 = dma.hbm_to_vmem [thread:$0]  (!%p7158_p12), %s5718_s6, 3072, %s5725_s13, %s5729_s0, %s5534_s18, %s5534_s18, %s5535_s25  }
  0x5b   : > { %s4417_s19 = sshll.u32 %s5524_s29, 12  ;;  %s7160_s9 = sld [smem:[#allocation26_spill]] }
  0x5c   : > { %s517_s7 = scalar_lea.vmem [#allocation8], %s5727_s12 }
  0x5d   : > { %s524_s8 = sshll.u32 %s517_s7, 4  ;;  %s5768_s8 = int_to_ptr.vmem [resolvable:$true] %s524_s8 }
  0x61   : > { %s5765_s10 = scalar_lea.hbm %s7160_s9, %s4417_s19  ;;  %s5357_s18 = scalar_lea.hbm %s7160_s9, 8192 }
  0x62   : > { %s5352_s4 = scalar_lea.hbm %s5765_s10, 4096  ;;  %p5358_p7 = scmp.lt.u32.totalorder %s5765_s10, %s7160_s9 }
  0x63   : > { %p5353_p11 = scmp.ne.s32.totalorder %s5765_s10, %s5352_s4  ;;  %p5359_p9 = scmp.lt.u32.totalorder %s5357_s18, %s5352_s4 }
  0x64   : > { %p5361_p3 = scmp.lt.u32.totalorder %s5352_s4, %s5765_s10 }
  0x65   : > { %p5355_p0 = pnand %p5353_p11, %p5735_p13  ;;  %p5360_p10 = por %p5359_p9, %p5358_p7 }
  0x67   : > { %p5356_p2 = pneg %p5355_p0  ;;  %p5362_p6 = por %p5361_p3, %p5360_p10 }
  0x69   : > { %p5363_p8 = pnand %p5362_p6, %p5356_p2 }
  0x6b   : > { %5366 = shalt.err (!%p5363_p8)
}
  0x6c   : > { %s5367_s23 = scalar_lea.vmem %s5768_s8, 4096  ;;  %s5536_s7 = smov [#allocation8]  }
  0x6d   : > { %p5368_p1 = scmp.ne.s32.totalorder %s5768_s8, %s5367_s23  ;;  %s5372_s6 = sshll.u32 %s5536_s7, 4  ;;  %s5373_s6 = int_to_ptr.vmem [resolvable:$false] %s5372_s6 }
  0x6e   : > { %s5374_s13 = scalar_lea.vmem %s5373_s6, 8192  ;;  %p5375_p11 = scmp.lt.s32.totalorder %s5768_s8, %s5373_s6 }
  0x6f   : > { %p5370_p4 = pnand %p5368_p1, %p5735_p13  ;;  %p5376_p0 = scmp.lt.s32.totalorder %s5374_s13, %s5367_s23 }
  0x71   : > { %p5371_p5 = pneg %p5370_p4  ;;  %p5377_p7 = por %p5376_p0, %p5375_p11 }
  0x73   : > { %p5378_p9 = pnand %p5377_p7, %p5371_p5 }
  0x75   : > { %5381 = shalt.err (!%p5378_p9)
}
  0x76   : > { %s5537_s4 = smov 256   ;;  %s5538_s18 = smov 16  }
  0x77   : > { %4814 = dma.hbm_to_vmem [thread:$0]  (!%p7158_p12), %s5765_s10, 4096, %s5768_s8, %s5729_s0, %s5537_s4, %s5537_s4, %s5538_s18  }
  0x78   : > { %s5539_s25 = smov [#allocation5]   ;;  %s7161_s11 = sld [smem:[#allocation28_spill]] }
  0x79   : > { %s440_s24 = sshll.u32 %s5539_s25, 4  ;;  %s7162_s1 = sld [smem:[#allocation20_spill]]  ;;  %s441_s24 = int_to_ptr.vmem [resolvable:$true] %s440_s24 }
  0x7a   : > { %p7163_p10 = scmp.ne.s32.totalorder %s7151_s20, 0 }
  0x7c   : > { %p7164_p3 = pneg %p7163_p10 }
  0x7e   : > { %s5797_s23 = scalar_lea.hbm %s7161_s11, %s4417_s19 }
  0x7f   : > { %s5382_s22 = scalar_lea.hbm %s7162_s1, 1024 }
  0x80   : > { %p5383_p2 = scmp.ne.s32.totalorder %s7162_s1, %s5382_s22  ;;  %p5389_p1 = scmp.lt.u32.totalorder %s5382_s22, %s7162_s1 }
  0x82   : > { %p5385_p6 = pnand %p5383_p2, %p7164_p3 }
  0x84   : > { %p5386_p8 = pneg %p5385_p6 }
  0x86   : > { %p5391_p4 = pnand %p5389_p1, %p5386_p8 }
  0x88   : > { %5394 = shalt.err (!%p5391_p4)
}
  0x89   : > { %s5395_s19 = scalar_lea.vmem %s441_s24, 1024  ;;  %p7165_p11 = pmov %p7164_p3 }
  0x8a   : > { %p5396_p5 = scmp.ne.s32.totalorder %s441_s24, %s5395_s19  ;;  %p5403_p9 = scmp.lt.s32.totalorder %s441_s24, %s441_s24 }
  0x8b   : > { %p5404_p12 = scmp.lt.s32.totalorder %s5395_s19, %s5395_s19 }
  0x8c   : > { %p5398_p0 = pnand %p5396_p5, %p7165_p11 }
  0x8d   : > { %p5405_p13 = por %p5404_p12, %p5403_p9 }
  0x8e   : > { %p5399_p7 = pneg %p5398_p0 }
  0x90   : > { %p5406_p2 = pnand %p5405_p13, %p5399_p7 }
  0x92   : > { %5409 = shalt.err (!%p5406_p2)
}
  0x93   : > { %s7166_s9 = smov 8   ;;  %s7167_s27 = smov 128  }
  0x94   : > { %4807 = dma.hbm_to_vmem [thread:$0]  (!%p7163_p10), %s7162_s1, 1024, %s441_s24, [#allocation6], %s7167_s27, %s7167_s27, %s7166_s9  }
  0x95   : > { %s545_s4 = scalar_lea.vmem [#allocation9], %s5727_s12  ;;  %s5410_s25 = scalar_lea.hbm %s5797_s23, 4096 }
  0x96   : > { %s552_s18 = sshll.u32 %s545_s4, 4  ;;  %p5411_p12 = scmp.ne.s32.totalorder %s5797_s23, %s5410_s25  ;;  %s5823_s18 = int_to_ptr.vmem [resolvable:$true] %s552_s18 }
  0x97   : > { %p7168_p13 = scmp.ne.s32.totalorder %s7159_s5, 0  ;;  %s5415_s6 = scalar_lea.hbm %s7161_s11, 8192 }
  0x98   : > { %p5416_p8 = scmp.lt.u32.totalorder %s5797_s23, %s7161_s11  ;;  %p5417_p1 = scmp.lt.u32.totalorder %s5415_s6, %s5410_s25 }
  0x99   : > { %p5413_p3 = pnand %p5411_p12, %p7168_p13  ;;  %p5419_p10 = scmp.lt.u32.totalorder %s5410_s25, %s5797_s23 }
  0x9a   : > { %p5418_p4 = por %p5417_p1, %p5416_p8 }
  0x9b   : > { %p5414_p6 = pneg %p5413_p3 }
  0x9c   : > { %p5420_p5 = por %p5419_p10, %p5418_p4 }
  0x9e   : > { %p5421_p11 = pnand %p5420_p5, %p5414_p6 }
  0xa0   : > { %5424 = shalt.err (!%p5421_p11)
}
  0xa1   : > { %s5425_s12 = scalar_lea.vmem %s5823_s18, 4096  ;;  %s5540_s24 = smov [#allocation9]  }
  0xa2   : > { %p5426_p0 = scmp.ne.s32.totalorder %s5823_s18, %s5425_s12  ;;  %s5430_s8 = sshll.u32 %s5540_s24, 4  ;;  %s5431_s8 = int_to_ptr.vmem [resolvable:$false] %s5430_s8 }
  0xa3   : > { %s5432_s19 = scalar_lea.vmem %s5431_s8, 8192  ;;  %p5433_p2 = scmp.lt.s32.totalorder %s5823_s18, %s5431_s8 }
  0xa4   : > { %p5428_p7 = pnand %p5426_p0, %p7168_p13  ;;  %p5434_p12 = scmp.lt.s32.totalorder %s5432_s19, %s5425_s12 }
  0xa6   : > { %p5429_p9 = pneg %p5428_p7  ;;  %p5435_p3 = por %p5434_p12, %p5433_p2 }
  0xa8   : > { %p5436_p8 = pnand %p5435_p3, %p5429_p9 }
  0xaa   : > { %5439 = shalt.err (!%p5436_p8)
}
  0xab   : > { %s5541_s9 = smov 64   ;;  %s5542_s27 = smov 4  }
  0xac   : > { %p7169_p6 = scmp.ne.s32.totalorder %s7152_s21, 0  ;;  %p7170_p13 = scmp.ne.s32.totalorder %s7150_s17, 0 }
  0xad   : > { %p7171_p1 = scmp.eq.s32.totalorder (!%p7170_p13), %s5649_s14, 0 }
  0xae   : > { %4817 = dma.hbm_to_vmem [thread:$0]  (!%p7169_p6), %s5797_s23, 4096, %s5823_s18, %s5729_s0, %s5541_s9, %s5541_s9, %s5542_s27  }
  0xaf   : > { %570 = sbr.rel (%p7170_p13) target bundleno = 2936 (0xb78), region = 72 }
  0xb6   : > { %5491 = dma.done.wait (%p7171_p1), [#allocation3], 1024   ;;  %p7172_p4 = pmov %p7171_p1 }
  0xb7   : > { %p7173_p10 = pmov %p7171_p1 }
  0xb8   : > { %5493 = vsyncadd (%p7172_p4), [#allocation3], 4294966272 }
  0xb9   : > { %5495 = dma.done.wait (%p7173_p10), [#allocation6], 1024   ;;  %p7174_p5 = pmov %p7171_p1 }
  0xba   : > { %s580_s21 = sand.u32 1, %s5649_s14   ;;  %s582_s0 = sand.u32 1, %s5512_s26  }
  0xbb   : > { %5497 = vsyncadd (%p7174_p5), [#allocation6], 4294966272  ;;  %s4782_s5 = smul.u32 192, %s582_s0  ;;  %s581_s17 = scalar_lea.sflag [#allocation3], %s580_s21 }
  0xbc   : > { %p7175_p11 = scmp.ne.s32.totalorder %s7149_s16, 0 }
  0xbd   : > { %s5859_s23 = scalar_lea.vmem [#allocation7], %s4782_s5 }
  0xbe   : > { %5499 = dma.done.wait (%p7175_p11), %s581_s17, 11264  }
  0xbf   : > { %5501 = vsyncadd (%p7175_p11), %s581_s17, 4294956032  ;;  %s4273_s22 = sshll.u32 %s582_s0, 8  ;;  %p679_p0 = scmp.lt.s32.totalorder %s5520_s28, 1 }
  0xc0   : > { %s7176_s12 = sld [smem:[#allocation23_spill]]  ;;  %s7177_s9 = sld [smem:[#allocation22_spill]] }
  0xc1   : > { %s5867_s15 = scalar_select %p679_p0, %s5520_s28, 1 }
  0xc2   : > { %s7178_s5 = sld [smem:[#allocation24_spill]]  ;;  %s7179_s25 = sld [smem:[#allocation25_spill]] }
  0xc3   : > { %s4419_s6 = sshll.u32 %s5867_s15, 6  ;;  %s4277_s16 = sshll.u32 %s5867_s15, 2 }
  0xc4   : > { %s7180_s11 = sld [smem:[#allocation27_spill]]  ;;  %s5907_s19 = scalar_lea.vmem [#allocation9], %s4273_s22 }
  0xc5   : > { %p4278_p7 = scmp.ne.s32.totalorder %s5520_s28, 0 }
  0xc6   : > { %s692_s24 = scalar_lea.vmem %s7176_s12, %s5867_s15  ;;  %s5885_s27 = scalar_lea.vmem %s7177_s9, %s4419_s6  ;;  %v712_v0 = vld [vmem:[#allocation2] sm:$0xff] (!%p4278_p7)  ;;  %v713_v1 = vld [vmem:[#allocation2 + $0x8] sm:$0xff] (!%p4278_p7)  ;;  %v714_v2 = vld [vmem:[#allocation2 + $0x10] sm:$0xff] (!%p4278_p7) }
  0xc7   : > { %s7181_s12 = sld [smem:[#allocation29_spill]]  ;;  %s5905_s6 = scalar_lea.vmem [#allocation8], %s4273_s22  ;;  %720 = vst [vmem:[#allocation10] sm:$0xff] (!%p4278_p7), %v712_v0  ;;  %721 = vst [vmem:[#allocation10 + $0x8] sm:$0xff] (!%p4278_p7), %v713_v1  ;;  %v715_v3 = vld [vmem:[#allocation2 + $0x18] sm:$0xff] (!%p4278_p7)  ;;  %v716_v4 = vld [vmem:[#allocation2 + $0x20] sm:$0xff] (!%p4278_p7) }
  0xc8   : > { %s695_s17 = scalar_lea.vmem %s7178_s5, %s5867_s15  ;;  %s698_s1 = scalar_lea.vmem %s7179_s25, %s5867_s15  ;;  %722 = vst [vmem:[#allocation10 + $0x10] sm:$0xff] (!%p4278_p7), %v714_v2  ;;  %v717_v5 = vld [vmem:[#allocation2 + $0x28] sm:$0xff] (!%p4278_p7)  ;;  %723 = vst [vmem:[#allocation10 + $0x18] sm:$0xff] (!%p4278_p7), %v715_v3  ;;  %v718_v6 = vld [vmem:[#allocation2 + $0x30] sm:$0xff] (!%p4278_p7) }
  0xc9   : > { %711 = sbr.rel (%p4278_p7) target bundleno = 208 (0xd0), region = 96  ;;  %724 = vst [vmem:[#allocation10 + $0x20] sm:$0xff] (!%p4278_p7), %v716_v4  ;;  %725 = vst [vmem:[#allocation10 + $0x28] sm:$0xff] (!%p4278_p7), %v717_v5  ;;  %v719_v7 = vld [vmem:[#allocation2 + $0x38] sm:$0xff] (!%p4278_p7) }
  0xca   : > { %s5899_s29 = scalar_lea.vmem %s7180_s11, %s4277_s16  ;;  %726 = vst [vmem:[#allocation10 + $0x30] sm:$0xff] (!%p4278_p7), %v718_v6  ;;  %727 = vst [vmem:[#allocation10 + $0x38] sm:$0xff] (!%p4278_p7), %v719_v7 }
  0xcd   : > { %s705_s8 = scalar_lea.vmem %s7181_s12, %s5867_s15 }
  0xd0 PF: > { %v728_v8 = vld [vmem:[#allocation10] sm:$0xff]  ;;  %v730_v10 = vld [vmem:[#allocation10 + $0x10] sm:$0xff]  ;;  %v729_v13 = vld [vmem:[#allocation10 + $0x8] sm:$0xff]  ;;  %s7183_s7 = scalar_lea.vmem %s7106_s3, %s5867_s15  ;;  %vm1281_vm0 = vcmask 261120   ;;  %s5544_s9 = smov 96   ;;  %vm2630_vm1 = vcmask 523264  }
  0xd1   : > { %v736_v9 = vld [vmem:[#allocation5] sm:$0xff]  ;;  %v738_v12 = vld [vmem:[#allocation5 + $0x10] sm:$0xff]  ;;  %v737_v14 = vld [vmem:[#allocation5 + $0x8] sm:$0xff]  ;;  %s5545_s21 = smov 64   ;;  %s5546_s0 = smov 32   ;;  %vm2635_vm2 = vcmask 785408  }
  0xd2   : > { %v5910_v11 = vadd.f32 %v736_v9, %v728_v8  ;;  %v5912_v15 = vadd.f32 %v738_v12, %v730_v10  ;;  %v731_v16 = vld [vmem:[#allocation10 + $0x18] sm:$0xff]  ;;  %v5915_v18 = vadd.f32 %v737_v14, %v729_v13  ;;  %v732_v20 = vld [vmem:[#allocation10 + $0x20] sm:$0xff]  ;;  %v733_v22 = vld [vmem:[#allocation10 + $0x28] sm:$0xff]  ;;  %p4823_p9 = scmp.eq.s32.totalorder %s5649_s14, 1 }
  0xd3   : > { %v739_v17 = vld [vmem:[#allocation5 + $0x18] sm:$0xff]  ;;  %v740_v21 = vld [vmem:[#allocation5 + $0x20] sm:$0xff]  ;;  %v741_v23 = vld [vmem:[#allocation5 + $0x28] sm:$0xff] }
  0xd4   : > { %754 = vadd.xlane.f32.xlu0 %v5910_v11  ;;  %758 = vadd.xlane.f32.xlu1 %v5912_v15  ;;  %v5918_v19 = vadd.f32 %v739_v17, %v731_v16  ;;  %v734_v24 = vld [vmem:[#allocation10 + $0x30] sm:$0xff]  ;;  %v5921_v26 = vadd.f32 %v740_v21, %v732_v20  ;;  %v735_v27 = vld [vmem:[#allocation10 + $0x38] sm:$0xff]  ;;  %v5924_v29 = vadd.f32 %v741_v23, %v733_v22  ;;  %v4952_v33 = vld [vmem:[%s5859_s23] ss:$12 sps:$4 sm:$0xff]  }
  0xd5   : > { %v742_v25 = vld [vmem:[#allocation5 + $0x30] sm:$0xff]  ;;  %v743_v28 = vld [vmem:[#allocation5 + $0x38] sm:$0xff]  ;;  %v4959_v6 = vld [vmem:[%s5859_s23 + $0x20] ss:$12 sps:$4 sm:$0xff]  }
  0xd6   : > { %v5927_v30 = vadd.f32 %v742_v25, %v734_v24  ;;  %v5930_v31 = vadd.f32 %v743_v28, %v735_v27  ;;  %v4950_v32 = vld [vmem:[%s5859_s23 + $0x4] ss:$12 sps:$4 sm:$0xff]   ;;  %v4953_v34 = vld [vmem:[%s5859_s23 + $0x1c] ss:$12 sps:$4 sm:$0xff]   ;;  %v4957_v5 = vld [vmem:[%s5859_s23 + $0x34] ss:$12 sps:$4 sm:$0xff]  }
  0xd7   : > { %v4955_v35 = vld [vmem:[%s5859_s23 + $0x8] ss:$12 sps:$4 sm:$0xff]   ;;  %1035 = vmatprep.subr.bf16.mxu0 %v4950_v32  ;;  %v4956_v4 = vld [vmem:[%s5859_s23 + $0x18] ss:$12 sps:$4 sm:$0xff]   ;;  %v4960_v7 = vld [vmem:[%s5859_s23 + $0x30] ss:$12 sps:$4 sm:$0xff]  }
  0xd8   : > { %756 = vadd.xlane.f32.xlu0 %v5915_v18  ;;  %760 = vadd.xlane.f32.xlu1 %v5918_v19  ;;  %v4961_v8 = vld [vmem:[%s5859_s23 + $0x4c] ss:$12 sps:$4 sm:$0xff]   ;;  %v4964_v10 = vld [vmem:[%s5859_s23 + $0x48] ss:$12 sps:$4 sm:$0xff]   ;;  %v4965_v12 = vld [vmem:[%s5859_s23 + $0x64] ss:$12 sps:$4 sm:$0xff]  }
  0xd9   : > { %1036 = vmatpush1.bf16.msra.mxu0 %v4952_v33  ;;  %4588 = vmatprep.subr.bf16.mxu1 %v4955_v35  ;;  %v4963_v9 = vld [vmem:[%s5859_s23 + $0x38] ss:$12 sps:$4 sm:$0xff]   ;;  %v4967_v13 = vld [vmem:[%s5859_s23 + $0x50] ss:$12 sps:$4 sm:$0xff]   ;;  %v4968_v14 = vld [vmem:[%s5859_s23 + $0x60] ss:$12 sps:$4 sm:$0xff]  }
  0xda   : > { %1037 = vmatprep.subr.bf16.mxu0 %v4953_v34  ;;  %4589 = vmatpush3.bf16.msra.mxu1 %v4955_v35  ;;  %v4969_v16 = vld [vmem:[%s5859_s23 + $0x7c] ss:$12 sps:$4 sm:$0xff]   ;;  %v4972_v20 = vld [vmem:[%s5859_s23 + $0x78] ss:$12 sps:$4 sm:$0xff]   ;;  %v4973_v21 = vld [vmem:[%s5859_s23 + $0x94] ss:$12 sps:$4 sm:$0xff]  }
  0xdb   : > { %4590 = vmatprep.subr.bf16.mxu1 %v4959_v6  ;;  %v4971_v17 = vld [vmem:[%s5859_s23 + $0x68] ss:$12 sps:$4 sm:$0xff]   ;;  %v4975_v22 = vld [vmem:[%s5859_s23 + $0x80] ss:$12 sps:$4 sm:$0xff]   ;;  %v4976_v23 = vld [vmem:[%s5859_s23 + $0x90] ss:$12 sps:$4 sm:$0xff]  }
  0xdc   : > { %762 = vadd.xlane.f32.xlu0 %v5921_v26  ;;  %764 = vadd.xlane.f32.xlu1 %v5924_v29  ;;  %v4977_v24 = vld [vmem:[%s5859_s23 + $0xac] ss:$12 sps:$4 sm:$0xff]   ;;  %v4980_v27 = vld [vmem:[%s5859_s23 + $0xa8] ss:$12 sps:$4 sm:$0xff]   ;;  %v7133_v28 = vmov 0  }
  0xdd   : > { %1038 = vmatpush1.bf16.msra.mxu0 %v4956_v4  ;;  %v4979_v25 = vld [vmem:[%s5859_s23 + $0x98] ss:$12 sps:$4 sm:$0xff]   ;;  %1067 = vmatprep.mubr.bf16.mxu0 %v7133_v28  ;;  %v4981_v32 = vld [vmem:[%s5859_s23 + $0xb0] ss:$12 sps:$4 sm:$0xff]   ;;  %s7182_s23 = scalar_lea.vmem %s7105_s2, %s5867_s15  ;;  %s5547_s15 = smov [#allocation10]  }
  0xde   : > { %1039 = vmatprep.subr.bf16.mxu0 %v4957_v5  ;;  %4591 = vmatpush3.bf16.msra.mxu1 %v4959_v6  ;;  %s4053_s12 = sshll.u32 %s5547_s15, 4  ;;  %s4054_s12 = int_to_ptr.vmem [resolvable:$true] %s4053_s12 }
  0xdf   : > { %4592 = vmatprep.subr.bf16.mxu1 %v4963_v9  ;;  %p5447_p8 = scmp.lt.s32.totalorder %s4054_s12, %s4054_s12 }
  0xe0   : > { %766 = vadd.xlane.f32.xlu0 %v5927_v30  ;;  %768 = vadd.xlane.f32.xlu1 %v5930_v31 }
  0xe1   : > { %1040 = vmatpush1.bf16.msra.mxu0 %v4960_v7 }
  0xe2   : > { %1041 = vmatprep.subr.bf16.mxu0 %v4961_v8  ;;  %4593 = vmatpush3.bf16.msra.mxu1 %v4963_v9 }
  0xe3   : > { %4594 = vmatprep.subr.bf16.mxu1 %v4967_v13 }
  0xe5   : > { %1042 = vmatpush1.bf16.msra.mxu0 %v4964_v10 }
  0xe6   : > { %1043 = vmatprep.subr.bf16.mxu0 %v4965_v12  ;;  %4595 = vmatpush3.bf16.msra.mxu1 %v4967_v13 }
  0xe7   : > { %4596 = vmatprep.subr.bf16.mxu1 %v4971_v17 }
  0xe9   : > { %1044 = vmatpush1.bf16.msra.mxu0 %v4968_v14 }
  0xea   : > { %1045 = vmatprep.subr.bf16.mxu0 %v4969_v16  ;;  %4597 = vmatpush3.bf16.msra.mxu1 %v4971_v17 }
  0xeb   : > { %4598 = vmatprep.subr.bf16.mxu1 %v4975_v22 }
  0xed   : > { %1046 = vmatpush1.bf16.msra.mxu0 %v4972_v20 }
  0xee   : > { %1047 = vmatprep.subr.bf16.mxu0 %v4973_v21  ;;  %4599 = vmatpush3.bf16.msra.mxu1 %v4975_v22 }
  0xef   : > { %4600 = vmatprep.subr.bf16.mxu1 %v4979_v25 }
  0xf1   : > { %1048 = vmatpush1.bf16.msra.mxu0 %v4976_v23 }
  0xf2   : > { %1049 = vmatprep.subr.bf16.mxu0 %v4977_v24  ;;  %4601 = vmatpush3.bf16.msra.mxu1 %v4979_v25 }
  0xf3   : > { %4602 = vmatprep.subr.bf16.mxu1 %v4981_v32 }
  0xf5   : > { %1050 = vmatpush1.bf16.msra.mxu0 %v4980_v27 }
  0xf6   : > { %4603 = vmatpush3.bf16.msra.mxu1 %v4981_v32 }
 0x161   : > { %v755_v36 = vpop.xlane.xlu0 %754  ;;  %v759_v38 = vpop.xlane.xlu1 %758 }
 0x162   : > { %v771_v37 = vmul.f32 0.0078125, %v755_v36  ;;  %v773_v39 = vmul.f32 0.0078125, %v759_v38 }
 0x164   : > { %v5939_v40 = vsub.f32 %v5910_v11, %v771_v37  ;;  %v5942_v42 = vsub.f32 %v5912_v15, %v773_v39 }
 0x165   : > { %v757_v41 = vpop.xlane.xlu0 %756  ;;  %v761_v45 = vpop.xlane.xlu1 %760 }
 0x166   : > { %v772_v43 = vmul.f32 0.0078125, %v757_v41  ;;  %v787_v44 = vmul.f32 %v5939_v40, %v5939_v40  ;;  %v774_v46 = vmul.f32 0.0078125, %v761_v45  ;;  %v789_v47 = vmul.f32 %v5942_v42, %v5942_v42 }
 0x168   : > { %795 = vadd.xlane.f32.xlu0 %v787_v44  ;;  %v5949_v48 = vsub.f32 %v5915_v18, %v772_v43  ;;  %v5952_v50 = vsub.f32 %v5918_v19, %v774_v46 }
 0x169   : > { %v763_v49 = vpop.xlane.xlu0 %762  ;;  %v765_v53 = vpop.xlane.xlu1 %764 }
 0x16a   : > { %v775_v51 = vmul.f32 0.0078125, %v763_v49  ;;  %v788_v52 = vmul.f32 %v5949_v48, %v5949_v48  ;;  %v776_v54 = vmul.f32 0.0078125, %v765_v53  ;;  %v790_v55 = vmul.f32 %v5952_v50, %v5952_v50 }
 0x16c   : > { %799 = vadd.xlane.f32.xlu0 %v789_v47  ;;  %797 = vadd.xlane.f32.xlu1 %v788_v52  ;;  %v5959_v56 = vsub.f32 %v5921_v26, %v775_v51  ;;  %v5962_v58 = vsub.f32 %v5924_v29, %v776_v54 }
 0x16d   : > { %v767_v57 = vpop.xlane.xlu0 %766  ;;  %v769_v61 = vpop.xlane.xlu1 %768 }
 0x16e   : > { %v777_v59 = vmul.f32 0.0078125, %v767_v57  ;;  %v791_v60 = vmul.f32 %v5959_v56, %v5959_v56  ;;  %v778_v62 = vmul.f32 0.0078125, %v769_v61  ;;  %v792_v63 = vmul.f32 %v5962_v58, %v5962_v58 }
 0x170   : > { %801 = vadd.xlane.f32.xlu1 %v790_v55  ;;  %803 = vadd.xlane.f32.xlu0 %v791_v60  ;;  %v5969_v0 = vsub.f32 %v5927_v30, %v777_v59  ;;  %v5972_v1 = vsub.f32 %v5930_v31, %v778_v62 }
 0x172   : > { %v793_v2 = vmul.f32 %v5969_v0, %v5969_v0  ;;  %v794_v3 = vmul.f32 %v5972_v1, %v5972_v1 }
 0x174   : > { %805 = vadd.xlane.f32.xlu1 %v792_v63  ;;  %807 = vadd.xlane.f32.xlu0 %v793_v2  ;;  %v4279_v2 = vld [vmem:[%s7182_s23] ss:$0 sm:$0xff] }
 0x178   : > { %809 = vadd.xlane.f32.xlu1 %v794_v3 }
 0x1f5   : > { %v796_v33 = vpop.xlane.xlu0 %795 }
 0x1f6   : > { %v811_v34 = vmul.f32 0.0078125, %v796_v33 }
 0x1f8   : > { %v819_v35 = vadd.f32 1e-05, %v811_v34 }
 0x1f9   : > { %v798_v36 = vpop.xlane.xlu1 %797  ;;  %v800_v37 = vpop.xlane.xlu0 %799 }
 0x1fa   : > { %5070 = vrsqrt.f32 %v819_v35  ;;  %v812_v38 = vmul.f32 0.0078125, %v798_v36  ;;  %v813_v39 = vmul.f32 0.0078125, %v800_v37 }
 0x1fc   : > { %v820_v41 = vadd.f32 1e-05, %v812_v38  ;;  %v821_v43 = vadd.f32 1e-05, %v813_v39 }
 0x1fd   : > { %v802_v44 = vpop.xlane.xlu1 %801  ;;  %v804_v45 = vpop.xlane.xlu0 %803 }
 0x1fe   : > { %5072 = vrsqrt.f32 %v820_v41  ;;  %v814_v46 = vmul.f32 0.0078125, %v802_v44  ;;  %v815_v47 = vmul.f32 0.0078125, %v804_v45 }
 0x1ff   : > { %5074 = vrsqrt.f32 %v821_v43 }
 0x200   : > { %v822_v49 = vadd.f32 1e-05, %v814_v46  ;;  %v823_v51 = vadd.f32 1e-05, %v815_v47 }
 0x201   : > { %v806_v52 = vpop.xlane.xlu1 %805  ;;  %v808_v53 = vpop.xlane.xlu0 %807 }
 0x202   : > { %5076 = vrsqrt.f32 %v822_v49  ;;  %v816_v54 = vmul.f32 0.0078125, %v806_v52  ;;  %v817_v55 = vmul.f32 0.0078125, %v808_v53 }
 0x203   : > { %5078 = vrsqrt.f32 %v823_v51 }
 0x204   : > { %v5071_v57 = vpop.eup %5070  ;;  %v824_v59 = vadd.f32 1e-05, %v816_v54  ;;  %v825_v60 = vadd.f32 1e-05, %v817_v55 }
 0x205   : > { %v810_v61 = vpop.xlane.xlu1 %809  ;;  %v835_v62 = vmul.f32 %v5071_v57, %v5939_v40  ;;  %v4280_v40 = vld [vmem:[%s7183_s7] ss:$0 sm:$0xff] }
 0x206   : > { %5080 = vrsqrt.f32 %v824_v59  ;;  %v818_v63 = vmul.f32 0.0078125, %v810_v61 }
 0x207   : > { %5082 = vrsqrt.f32 %v825_v60  ;;  %v849_v7 = vmul.f32 %v4279_v2, %v835_v62 }
 0x208   : > { %v5073_v3 = vpop.eup %5072  ;;  %v826_v4 = vadd.f32 1e-05, %v818_v63 }
 0x209   : > { %v5075_v5 = vpop.eup %5074  ;;  %v836_v6 = vmul.f32 %v5073_v3, %v5949_v48  ;;  %v863_v14 = vadd.f32 %v4280_v40, %v849_v7 }
 0x20a   : > { %5084 = vrsqrt.f32 %v826_v4  ;;  %v837_v8 = vmul.f32 %v5075_v5, %v5942_v42 }
 0x20b   : > { %v850_v9 = vmul.f32 %v4279_v2, %v836_v6 }
 0x20c   : > { %v5077_v10 = vpop.eup %5076  ;;  %v851_v12 = vmul.f32 %v4279_v2, %v837_v8 }
 0x20d   : > { %v5079_v13 = vpop.eup %5078  ;;  %v864_v16 = vadd.f32 %v4280_v40, %v850_v9  ;;  %v838_v17 = vmul.f32 %v5077_v10, %v5952_v50 }
 0x20e   : > { %v839_v20 = vmul.f32 %v5079_v13, %v5959_v56  ;;  %v865_v23 = vadd.f32 %v4280_v40, %v851_v12 }
 0x20f   : > { %v871_v48 = vpack.c.bf16 %v864_v16, %v863_v14  ;;  %v852_v21 = vmul.f32 %v4279_v2, %v838_v17 }
 0x210   : > { %v5081_v22 = vpop.eup %5080  ;;  %v853_v27 = vmul.f32 %v4279_v2, %v839_v20 }
 0x211   : > { %v5083_v24 = vpop.eup %5082  ;;  %1068 = vmatmul.mubr.bf16.vlgmr.msra.gmra.mrb[0].mxu0 %v871_v48  ;;  %4604 = vmatprep.mubr.bf16.mxu1 %v871_v48  ;;  %v866_v25 = vadd.f32 %v4280_v40, %v852_v21  ;;  %v840_v42 = vmul.f32 %v5081_v22, %v5962_v58 }
 0x212   : > { %1077 = vmatprep.mubr.bf16.mxu0 %v7133_v28  ;;  %v841_v32 = vmul.f32 %v5083_v24, %v5969_v0  ;;  %v867_v56 = vadd.f32 %v4280_v40, %v853_v27 }
 0x213   : > { %v872_v33 = vpack.c.bf16 %v866_v25, %v865_v23  ;;  %v854_v34 = vmul.f32 %v4279_v2, %v840_v42 }
 0x214   : > { %v5085_v50 = vpop.eup %5084  ;;  %v855_v37 = vmul.f32 %v4279_v2, %v841_v32 }
 0x215   : > { %4605 = vmatmul.mubr.bf16.vlgmr.msra.gmra.mrb[0].mxu1 %v872_v33  ;;  %v868_v35 = vadd.f32 %v4280_v40, %v854_v34  ;;  %v842_v36 = vmul.f32 %v5085_v50, %v5972_v1 }
 0x216   : > { %v869_v41 = vadd.f32 %v4280_v40, %v855_v37 }
 0x217   : > { %v873_v38 = vpack.c.bf16 %v868_v35, %v867_v56  ;;  %v856_v39 = vmul.f32 %v4279_v2, %v842_v36 }
 0x219   : > { %1078 = vmatmul.mubr.bf16.gmra.mrb[4].mxu0 %v872_v33  ;;  %4608 = vmatprep.mubr.bf16.mxu1 %v873_v38  ;;  %v870_v58 = vadd.f32 %v4280_v40, %v856_v39 }
 0x21a   : > { %1087 = vmatprep.mubr.bf16.mxu0 %v7133_v28 }
 0x21b   : > { %v874_v43 = vpack.c.bf16 %v870_v58, %v869_v41 }
 0x21d   : > { %4609 = vmatmul.mubr.bf16.gmra.mrb[4].mxu1 %v874_v43 }
 0x221   : > { %1088 = vmatmul.mubr.bf16.gmra.mrb[8].mxu0 %v873_v38 }
 0x222   : > { %1097 = vmatprep.mubr.bf16.mxu0 %v7133_v28 }
 0x229   : > { %1098 = vmatmul.mubr.bf16.gmra.mrb[12].mxu0 %v874_v43 }
 0x2e4   : > { %v1069_v0 = vpop.f32.mrb[0].mxu0 }
 0x2e5   : > { %v1071_v44 = vpop.f32.mrb[1].mxu0 }
 0x2e6   : > { %v1073_v45 = vpop.f32.mrb[2].mxu0 }
 0x2e7   : > { %v1173_v1 = vpack.c.bf16 %v1073_v45, %v1069_v0  ;;  %v1075_v46 = vpop.f32.mrb[3].mxu0 }
 0x2e8   : > { %v1174_v47 = vpack.c.bf16 %v1075_v46, %v1071_v44  ;;  %v4606_v49 = vpop.f32.mrb[0].mxu1 }
 0x2e9   : > { %v1142_v51 = vpop.f32.mrb[1].mxu1  ;;  %4616 = vmatprep.mubr.msk.bf16.mxu1 %vm1281_vm0, %v1173_v1 }
 0x2ea   : > { %1215 = vrot.lane.b32.xlu0 %v1174_v47, %s5544_s9  ;;  %v4607_v52 = vpop.f32.mrb[2].mxu1  ;;  %4764 = vmatprep.subr.msk.bf16.mxu1 %vm1281_vm0, %v1174_v47  ;;  %v1289_v53 = vsel %vm1281_vm0, %v1174_v47, 0 }
 0x2eb   : > { %v6024_v54 = vpack.c.bf16 %v4607_v52, %v4606_v49  ;;  %v1145_v55 = vpop.f32.mrb[3].mxu1  ;;  %4613 = vmatpush3.bf16.xpose.msra.mxu1 %v1289_v53 }
 0x2ec   : > { %v6026_v57 = vpack.c.bf16 %v1145_v55, %v1142_v51  ;;  %v1079_v59 = vpop.f32.mrb[4].mxu0 }
 0x2ed   : > { %v1081_v60 = vpop.f32.mrb[5].mxu0 }
 0x2ee   : > { %v1083_v61 = vpop.f32.mrb[6].mxu0 }
 0x2ef   : > { %v1176_v62 = vpack.c.bf16 %v1083_v61, %v1079_v59  ;;  %v1085_v63 = vpop.f32.mrb[7].mxu0 }
 0x2f0   : > { %v1177_v2 = vpack.c.bf16 %v1085_v63, %v1081_v60  ;;  %v4610_v3 = vpop.f32.mrb[4].mxu1 }
 0x2f1   : > { %1189 = vrot.lane.b32.xlu0 %v1176_v62, %s5544_s9  ;;  %v1158_v4 = vpop.f32.mrb[5].mxu1 }
 0x2f2   : > { %1217 = vrot.lane.b32.xlu1 %v1177_v2, %s5544_s9  ;;  %v4611_v5 = vpop.f32.mrb[6].mxu1  ;;  %4765 = vmatprep.subr.msk.bf16.mxu1 %vm1281_vm0, %v1177_v2  ;;  %v1292_v6 = vsel %vm1281_vm0, %v1177_v2, 0 }
 0x2f3   : > { %v6032_v7 = vpack.c.bf16 %v4611_v5, %v4610_v3  ;;  %v1161_v40 = vpop.f32.mrb[7].mxu1  ;;  %4615 = vmatpush3.bf16.xpose.msra.mxu1 %v1292_v6 }
 0x2f4   : > { %v6034_v8 = vpack.c.bf16 %v1161_v40, %v1158_v4  ;;  %v1089_v9 = vpop.f32.mrb[8].mxu0 }
 0x2f5   : > { %1221 = vrot.lane.b32.xlu0 %v1177_v2, %s5545_s21  ;;  %v1091_v10 = vpop.f32.mrb[9].mxu0 }
 0x2f6   : > { %1187 = vrot.lane.b32.xlu1 %v1173_v1, %s5544_s9  ;;  %v1093_v12 = vpop.f32.mrb[10].mxu0 }
 0x2f7   : > { %v6038_v13 = vpack.c.bf16 %v1093_v12, %v1089_v9  ;;  %v1095_v14 = vpop.f32.mrb[11].mxu0 }
 0x2f8   : > { %v6040_v16 = vpack.c.bf16 %v1095_v14, %v1091_v10 }
 0x2f9   : > { %1191 = vrot.lane.b32.xlu0 %v1173_v1, %s5545_s21 }
 0x2fa   : > { %1219 = vrot.lane.b32.xlu1 %v1174_v47, %s5545_s21  ;;  %4617 = vmatmul.mubr.msk.bf16.vlgmr.msra.gmra.mrb[8].mxu1 %vm1281_vm0, %v1176_v62 }
 0x2fc   : > { %v1099_v17 = vpop.f32.mrb[12].mxu0 }
 0x2fd   : > { %1195 = vrot.lane.b32.xlu0 %v1173_v1, %s5546_s0  ;;  %v1101_v20 = vpop.f32.mrb[13].mxu0  ;;  %v1533_v1 = vsel %vm1281_vm0, %v6040_v16, 0 }
 0x2fe   : > { %1223 = vrot.lane.b32.xlu1 %v1174_v47, %s5546_s0  ;;  %v1103_v48 = vpop.f32.mrb[14].mxu0 }
 0x2ff   : > { %v6047_v21 = vpack.c.bf16 %v1103_v48, %v1099_v17  ;;  %v1105_v22 = vpop.f32.mrb[15].mxu0 }
 0x300   : > { %v6049_v23 = vpack.c.bf16 %v1105_v22, %v1101_v20 }
 0x301   : > { %1197 = vrot.lane.b32.xlu0 %v1176_v62, %s5546_s0 }
 0x302   : > { %1225 = vrot.lane.b32.xlu1 %v1177_v2, %s5546_s0  ;;  %v1536_v53 = vsel %vm1281_vm0, %v6049_v23, 0 }
 0x305   : > { %1233 = vrot.lane.b32.xlu0 %v6040_v16, %s5545_s21 }
 0x306   : > { %1193 = vrot.lane.b32.xlu1 %v1176_v62, %s5545_s21 }
 0x309   : > { %1237 = vrot.lane.b32.xlu0 %v6040_v16, %s5546_s0 }
 0x30a   : > { %1229 = vrot.lane.b32.xlu1 %v6040_v16, %s5544_s9 }
 0x30d   : > { %1235 = vrot.lane.b32.xlu0 %v6049_v23, %s5545_s21 }
 0x30e   : > { %1231 = vrot.lane.b32.xlu1 %v6049_v23, %s5544_s9 }
 0x311   : > { %1205 = vrot.lane.b32.xlu0 %v6038_v13, %s5545_s21 }
 0x312   : > { %1201 = vrot.lane.b32.xlu1 %v6038_v13, %s5544_s9 }
 0x315   : > { %1209 = vrot.lane.b32.xlu0 %v6038_v13, %s5546_s0 }
 0x316   : > { %1203 = vrot.lane.b32.xlu1 %v6047_v21, %s5544_s9 }
 0x31a   : > { %1239 = vrot.lane.b32.xlu1 %v6049_v23, %s5546_s0 }
 0x31e   : > { %1207 = vrot.lane.b32.xlu1 %v6047_v21, %s5545_s21 }
 0x322   : > { %1211 = vrot.lane.b32.xlu1 %v6047_v21, %s5546_s0 }
 0x35c   : > { %v1216_v24 = vpop.permute.xlu0 %1215 }
 0x35d   : > { %4766 = vmatprep.subr.msk.bf16.mxu1 %vm1281_vm0, %v1216_v24  ;;  %v1350_v25 = vsel %vm1281_vm0, %v1216_v24, 0 }
 0x35e   : > { %4621 = vmatpush3.bf16.xpose.msra.mxu1 %v1350_v25 }
 0x363   : > { %v1190_v42 = vpop.permute.xlu0 %1189 }
 0x364   : > { %v1218_v27 = vpop.permute.xlu1 %1217 }
 0x365   : > { %4767 = vmatprep.subr.msk.bf16.mxu1 %vm1281_vm0, %v1218_v27  ;;  %v1353_v32 = vsel %vm1281_vm0, %v1218_v27, 0 }
 0x366   : > { %4623 = vmatpush3.bf16.xpose.msra.mxu1 %v1353_v32 }
 0x367   : > { %v1222_v33 = vpop.permute.xlu0 %1221 }
 0x368   : > { %v1188_v34 = vpop.permute.xlu1 %1187  ;;  %v1414_v58 = vsel %vm1281_vm0, %v1222_v33, 0 }
 0x369   : > { %4624 = vmatprep.mubr.msk.bf16.mxu1 %vm1281_vm0, %v1188_v34 }
 0x36b   : > { %v1192_v50 = vpop.permute.xlu0 %1191 }
 0x36c   : > { %v1220_v56 = vpop.permute.xlu1 %1219 }
 0x36d   : > { %4625 = vmatmul.mubr.msk.bf16.vlgmr.msra.gmra.mrb[12].mxu1 %vm1281_vm0, %v1190_v42  ;;  %4768 = vmatprep.subr.msk.bf16.mxu1 %vm1281_vm0, %v1220_v56  ;;  %v1411_v35 = vsel %vm1281_vm0, %v1220_v56, 0 }
 0x36e   : > { %4629 = vmatpush3.bf16.xpose.msra.mxu1 %v1411_v35  ;;  %4632 = vmatprep.mubr.msk.bf16.mxu1 %vm1281_vm0, %v1192_v50 }
 0x36f   : > { %4769 = vmatprep.subr.msk.bf16.mxu1 %vm1281_vm0, %v1222_v33  ;;  %v1196_v36 = vpop.permute.xlu0 %1195 }
 0x370   : > { %v1224_v37 = vpop.permute.xlu1 %1223  ;;  %4640 = vmatprep.mubr.msk.bf16.mxu0 %vm1281_vm0, %v1196_v36 }
 0x371   : > { %4770 = vmatprep.subr.msk.bf16.mxu0 %vm1281_vm0, %v1224_v37  ;;  %v1472_v38 = vsel %vm1281_vm0, %v1224_v37, 0 }
 0x372   : > { %4637 = vmatpush3.bf16.xpose.msra.mxu0 %v1472_v38 }
 0x373   : > { %v1198_v39 = vpop.permute.xlu0 %1197 }
 0x374   : > { %v1226_v41 = vpop.permute.xlu1 %1225 }
 0x375   : > { %4771 = vmatprep.subr.msk.bf16.mxu0 %vm1281_vm0, %v1226_v41  ;;  %v1475_v44 = vsel %vm1281_vm0, %v1226_v41, 0 }
 0x376   : > { %4631 = vmatpush3.bf16.xpose.msra.mxu1 %v1414_v58 }
 0x377   : > { %4772 = vmatprep.subr.msk.bf16.mxu1 %vm1281_vm0, %v6040_v16  ;;  %v1234_v0 = vpop.permute.xlu0 %1233 }
 0x378   : > { %v1194_v43 = vpop.permute.xlu1 %1193  ;;  %v1655_v61 = vsel %vm1281_vm0, %v1234_v0, 0 }
 0x37a   : > { %4639 = vmatpush3.bf16.xpose.msra.mxu0 %v1475_v44 }
 0x37b   : > { %v1238_v46 = vpop.permute.xlu0 %1237 }
 0x37c   : > { %v1230_v45 = vpop.permute.xlu1 %1229  ;;  %v1716_v63 = vsel %vm1281_vm0, %v1238_v46, 0 }
 0x37d   : > { %4633 = vmatmul.mubr.msk.bf16.vlgmr.msra.gmra.mrb[16].mxu1 %vm1281_vm0, %v1194_v43  ;;  %4774 = vmatprep.subr.msk.bf16.mxu0 %vm1281_vm0, %v1230_v45  ;;  %v1594_v49 = vsel %vm1281_vm0, %v1230_v45, 0 }
 0x37e   : > { %4645 = vmatpush3.bf16.xpose.msra.mxu1 %v1533_v1  ;;  %4648 = vmatprep.mubr.msk.bf16.mxu1 %vm1281_vm0, %v6038_v13 }
 0x37f   : > { %4773 = vmatprep.subr.msk.bf16.mxu1 %vm1281_vm0, %v6049_v23  ;;  %v1236_v52 = vpop.permute.xlu0 %1235 }
 0x380   : > { %v1232_v47 = vpop.permute.xlu1 %1231  ;;  %v1658_v3 = vsel %vm1281_vm0, %v1236_v52, 0 }
 0x381   : > { %4641 = vmatmul.mubr.msk.bf16.vlgmr.msra.gmra.mrb[16].mxu0 %vm1281_vm0, %v1198_v39  ;;  %v1597_v55 = vsel %vm1281_vm0, %v1232_v47, 0 }
 0x382   : > { %4653 = vmatpush3.bf16.xpose.msra.mxu0 %v1594_v49 }
 0x383   : > { %4775 = vmatprep.subr.msk.bf16.mxu0 %vm1281_vm0, %v1232_v47  ;;  %v1206_v59 = vpop.permute.xlu0 %1205 }
 0x384   : > { %v1202_v51 = vpop.permute.xlu1 %1201 }
 0x385   : > { %4656 = vmatprep.mubr.msk.bf16.mxu0 %vm1281_vm0, %v1202_v51 }
 0x386   : > { %4647 = vmatpush3.bf16.xpose.msra.mxu1 %v1536_v53 }
 0x387   : > { %4776 = vmatprep.subr.msk.bf16.mxu1 %vm1281_vm0, %v1234_v0  ;;  %v1210_v62 = vpop.permute.xlu0 %1209 }
 0x388   : > { %v1204_v60 = vpop.permute.xlu1 %1203 }
 0x38a   : > { %4655 = vmatpush3.bf16.xpose.msra.mxu0 %v1597_v55 }
 0x38b   : > { %4778 = vmatprep.subr.msk.bf16.mxu0 %vm1281_vm0, %v1238_v46 }
 0x38c   : > { %v1240_v2 = vpop.permute.xlu1 %1239 }
 0x38d   : > { %4649 = vmatmul.mubr.msk.bf16.vlgmr.msra.gmra.mrb[20].mxu1 %vm1281_vm0, %v6047_v21  ;;  %v1719_v4 = vsel %vm1281_vm0, %v1240_v2, 0 }
 0x38e   : > { %4661 = vmatpush3.bf16.xpose.msra.mxu1 %v1655_v61  ;;  %4664 = vmatprep.mubr.msk.bf16.mxu1 %vm1281_vm0, %v1206_v59 }
 0x38f   : > { %4777 = vmatprep.subr.msk.bf16.mxu1 %vm1281_vm0, %v1236_v52 }
 0x390   : > { %v1208_v5 = vpop.permute.xlu1 %1207 }
 0x391   : > { %4657 = vmatmul.mubr.msk.bf16.vlgmr.msra.gmra.mrb[20].mxu0 %vm1281_vm0, %v1204_v60 }
 0x392   : > { %4669 = vmatpush3.bf16.xpose.msra.mxu0 %v1716_v63  ;;  %4672 = vmatprep.mubr.msk.bf16.mxu0 %vm1281_vm0, %v1210_v62 }
 0x393   : > { %4779 = vmatprep.subr.msk.bf16.mxu0 %vm1281_vm0, %v1240_v2 }
 0x394   : > { %v1212_v6 = vpop.permute.xlu1 %1211 }
 0x396   : > { %4663 = vmatpush3.bf16.xpose.msra.mxu1 %v1658_v3 }
 0x397   : > { %4676 = vmatprep.subr.bf16.mxu1 %v6026_v57 }
 0x39a   : > { %4671 = vmatpush3.bf16.xpose.msra.mxu0 %v1719_v4 }
 0x39d   : > { %4665 = vmatmul.mubr.msk.bf16.vlgmr.msra.gmra.mrb[24].mxu1 %vm1281_vm0, %v1208_v5 }
 0x39e   : > { %4677 = vmatpush3.bf16.msra.mxu1 %v6026_v57 }
 0x39f   : > { %4678 = vmatprep.subr.bf16.mxu1 %v6024_v54 }
 0x3a1   : > { %4673 = vmatmul.mubr.msk.bf16.vlgmr.msra.gmra.mrb[24].mxu0 %vm1281_vm0, %v1212_v6 }
 0x3a2   : > { %4679 = vmatpush3.bf16.msra.mxu1 %v6024_v54 }
 0x3cd   : > { %v6130_v40 = vpop.f32.mrb[8].mxu1 }
 0x3ce   : > { %v6132_v9 = vpop.f32.mrb[9].mxu1  ;;  %v1776_v10 = vsel %vm1281_vm0, %v6130_v40, -inf }
 0x3cf   : > { %v6136_v12 = vpop.f32.mrb[10].mxu1  ;;  %1777 = vmax.xlane.f32.xlu0 %v1776_v10  ;;  %v1770_v16 = vsel %vm1281_vm0, %v6132_v9, -inf }
 0x3d0   : > { %v6138_v13 = vpop.f32.mrb[11].mxu1  ;;  %v1779_v17 = vsel %vm1281_vm0, %v6136_v12, -inf }
 0x3d1   : > { %v1773_v14 = vsel %vm1281_vm0, %v6138_v13, -inf }
 0x3d2   : > { %1774 = vmax.xlane.f32.xlu1 %v1773_v14 }
 0x3d3   : > { %1771 = vmax.xlane.f32.xlu0 %v1770_v16 }
 0x3d7   : > { %1780 = vmax.xlane.f32.xlu0 %v1779_v17 }
 0x440   : > { %v6146_v20 = vpop.f32.mrb[12].mxu1 }
 0x441   : > { %v6148_v48 = vpop.f32.mrb[13].mxu1  ;;  %v1788_v21 = vsel %vm1281_vm0, %v6146_v20, -inf }
 0x442   : > { %1789 = vmax.xlane.f32.xlu0 %v1788_v21  ;;  %v6152_v22 = vpop.f32.mrb[14].mxu1  ;;  %v1782_v37 = vsel %vm1281_vm0, %v6148_v48, -inf }
 0x443   : > { %v6154_v23 = vpop.f32.mrb[15].mxu1  ;;  %v1791_v24 = vsel %vm1281_vm0, %v6152_v22, -inf }
 0x444   : > { %1792 = vmax.xlane.f32.xlu1 %v1791_v24  ;;  %v1785_v38 = vsel %vm1281_vm0, %v6154_v23, -inf }
 0x450   : > { %v6158_v25 = vpop.f32.mrb[16].mxu1 }
 0x451   : > { %v6160_v42 = vpop.f32.mrb[17].mxu1  ;;  %v1800_v44 = vsel %vm1281_vm0, %v6158_v25, -inf }
 0x452   : > { %v6162_v27 = vpop.f32.mrb[18].mxu1  ;;  %v1794_v60 = vsel %vm1281_vm0, %v6160_v42, -inf }
 0x453   : > { %v6164_v32 = vpop.f32.mrb[19].mxu1  ;;  %v1803_v46 = vsel %vm1281_vm0, %v6162_v27, -inf }
 0x454   : > { %v6166_v33 = vpop.f32.mrb[16].mxu0  ;;  %v1797_v62 = vsel %vm1281_vm0, %v6164_v32, -inf }
 0x455   : > { %v6168_v34 = vpop.f32.mrb[17].mxu0  ;;  %v1812_v50 = vsel %vm1281_vm0, %v6166_v33, -inf }
 0x456   : > { %1813 = vmax.xlane.f32.xlu0 %v1812_v50  ;;  %v6172_v56 = vpop.f32.mrb[18].mxu0  ;;  %v1806_v39 = vsel %vm1281_vm0, %v6168_v34, -inf }
 0x457   : > { %v6174_v35 = vpop.f32.mrb[19].mxu0  ;;  %v1815_v36 = vsel %vm1281_vm0, %v6172_v56, -inf }
 0x458   : > { %1816 = vmax.xlane.f32.xlu1 %v1815_v36  ;;  %v1809_v58 = vsel %vm1281_vm0, %v6174_v35, -inf }
 0x45a   : > { %1783 = vmax.xlane.f32.xlu0 %v1782_v37 }
 0x45c   : > { %1786 = vmax.xlane.f32.xlu1 %v1785_v38  ;;  %v1778_v41 = vpop.xlane.xlu0 %1777 }
 0x45d   : > { %v1868_v63 = vsub.f32 %v6130_v40, %v1778_v41 }
 0x45e   : > { %1807 = vmax.xlane.f32.xlu0 %v1806_v39 }
 0x45f   : > { %v1775_v4 = vpop.xlane.xlu1 %1774  ;;  %v1902_v6 = vmul.f32 1.442695, %v1868_v63 }
 0x460   : > { %v6186_v43 = vpop.f32.mrb[20].mxu1  ;;  %1810 = vmax.xlane.f32.xlu1 %v1809_v58  ;;  %v1772_v49 = vpop.xlane.xlu0 %1771  ;;  %v1867_v17 = vsub.f32 %v6138_v13, %v1775_v4 }
 0x461   : > { %v6188_v0 = vpop.f32.mrb[21].mxu1  ;;  %v1866_v10 = vsub.f32 %v6132_v9, %v1772_v49  ;;  %v1824_v40 = vsel %vm1281_vm0, %v6186_v43, -inf  ;;  %5086 = vpow2.f32 %v1902_v6 }
 0x462   : > { %v6192_v45 = vpop.f32.mrb[22].mxu1  ;;  %1801 = vmax.xlane.f32.xlu0 %v1800_v44  ;;  %v1900_v13 = vmul.f32 1.442695, %v1867_v17  ;;  %v1818_v44 = vsel %vm1281_vm0, %v6188_v0, -inf }
 0x463   : > { %v6194_v1 = vpop.f32.mrb[23].mxu1  ;;  %v1827_v50 = vsel %vm1281_vm0, %v6192_v45, -inf  ;;  %v1898_v9 = vmul.f32 1.442695, %v1866_v10 }
 0x464   : > { %1804 = vmax.xlane.f32.xlu1 %v1803_v46  ;;  %v6198_v47 = vpop.f32.mrb[20].mxu0  ;;  %v1781_v61 = vpop.xlane.xlu0 %1780  ;;  %v1821_v46 = vsel %vm1281_vm0, %v6194_v1, -inf }
 0x465   : > { %v6200_v51 = vpop.f32.mrb[21].mxu0  ;;  %v1836_v52 = vsel %vm1281_vm0, %v6198_v47, -inf  ;;  %v1869_v3 = vsub.f32 %v6136_v12, %v1781_v61 }
 0x466   : > { %1837 = vmax.xlane.f32.xlu0 %v1836_v52  ;;  %v6204_v53 = vpop.f32.mrb[22].mxu0  ;;  %v1830_v2 = vsel %vm1281_vm0, %v6200_v51, -inf }
 0x467   : > { %v6206_v55 = vpop.f32.mrb[23].mxu0  ;;  %v1839_v59 = vsel %vm1281_vm0, %v6204_v53, -inf  ;;  %v1904_v21 = vmul.f32 1.442695, %v1869_v3 }
 0x468   : > { %1840 = vmax.xlane.f32.xlu1 %v1839_v59  ;;  %v1833_v5 = vsel %vm1281_vm0, %v6206_v55, -inf }
 0x469   : > { %5088 = vpow2.f32 %v1904_v21 }
 0x46a   : > { %1795 = vmax.xlane.f32.xlu0 %v1794_v60  ;;  %5090 = vpow2.f32 %v1898_v9 }
 0x46b   : > { %5092 = vpow2.f32 %v1900_v13  ;;  %v6252_v52 = vpop.eup %5086 }
 0x46c   : > { %1798 = vmax.xlane.f32.xlu1 %v1797_v62  ;;  %v1968_v61 = vsel %vm1281_vm0, %v6252_v52, 0.0 }
 0x46e   : > { %1831 = vmax.xlane.f32.xlu0 %v1830_v2 }
 0x470   : > { %1834 = vmax.xlane.f32.xlu1 %v1833_v5  ;;  %v6221_v14 = vpop.f32.mrb[24].mxu1 }
 0x471   : > { %v6223_v16 = vpop.f32.mrb[25].mxu1  ;;  %v1848_v5 = vsel %vm1281_vm0, %v6221_v14, -inf }
 0x472   : > { %1825 = vmax.xlane.f32.xlu0 %v1824_v40  ;;  %v6228_v12 = vpop.f32.mrb[26].mxu1  ;;  %v1842_v6 = vsel %vm1281_vm0, %v6223_v16, -inf }
 0x473   : > { %v6230_v24 = vpop.f32.mrb[27].mxu1  ;;  %v6256_v60 = vpop.eup %5088  ;;  %v1851_v10 = vsel %vm1281_vm0, %v6228_v12, -inf }
 0x474   : > { %1828 = vmax.xlane.f32.xlu1 %v1827_v50  ;;  %v6234_v36 = vpop.f32.mrb[24].mxu0  ;;  %v6260_v62 = vpop.eup %5090  ;;  %v1971_v63 = vsel %vm1281_vm0, %v6256_v60, 0.0  ;;  %v1845_v40 = vsel %vm1281_vm0, %v6230_v24, -inf }
 0x475   : > { %v6236_v37 = vpop.f32.mrb[25].mxu0  ;;  %v1860_v38 = vsel %vm1281_vm0, %v6234_v36, -inf  ;;  %v6264_v2 = vpop.eup %5092  ;;  %v1962_v3 = vsel %vm1281_vm0, %v6260_v62, 0.0 }
 0x476   : > { %1861 = vmax.xlane.f32.xlu0 %v1860_v38  ;;  %v6240_v39 = vpop.f32.mrb[26].mxu0  ;;  %v1854_v49 = vsel %vm1281_vm0, %v6236_v37, -inf  ;;  %v1965_v4 = vsel %vm1281_vm0, %v6264_v2, 0.0 }
 0x477   : > { %v6242_v41 = vpop.f32.mrb[27].mxu0  ;;  %v1863_v58 = vsel %vm1281_vm0, %v6240_v39, -inf }
 0x478   : > { %1864 = vmax.xlane.f32.xlu1 %v1863_v58  ;;  %v1857_v59 = vsel %vm1281_vm0, %v6242_v41, -inf }
 0x47a   : > { %1819 = vmax.xlane.f32.xlu0 %v1818_v44 }
 0x47c   : > { %1822 = vmax.xlane.f32.xlu1 %v1821_v46 }
 0x47e   : > { %1855 = vmax.xlane.f32.xlu0 %v1854_v49 }
 0x480   : > { %1858 = vmax.xlane.f32.xlu1 %v1857_v59 }
 0x482   : > { %1969 = vadd.xlane.f32.xlu0 %v1968_v61 }
 0x484   : > { %1972 = vadd.xlane.f32.xlu1 %v1971_v63 }
 0x486   : > { %1963 = vadd.xlane.f32.xlu0 %v1962_v3 }
 0x488   : > { %1966 = vadd.xlane.f32.xlu1 %v1965_v4 }
 0x48a   : > { %1849 = vmax.xlane.f32.xlu0 %v1848_v5 }
 0x48e   : > { %1843 = vmax.xlane.f32.xlu0 %v1842_v6 }
 0x499   : > { %1245 = vrot.lane.b32.xlu1 %v6024_v54, %s5544_s9 }
 0x49d   : > { %1249 = vrot.lane.b32.xlu1 %v6026_v57, %s5545_s21 }
 0x4a1   : > { %1255 = vrot.lane.b32.xlu1 %v6026_v57, %s5546_s0 }
 0x4a4   : > { %1243 = vrot.lane.b32.xlu0 %v6026_v57, %s5544_s9 }
 0x4c5   : > { %1852 = vmax.xlane.f32.xlu1 %v1851_v10 }
 0x4c9   : > { %1846 = vmax.xlane.f32.xlu1 %v1845_v40 }
 0x4cf   : > { %v1790_v17 = vpop.xlane.xlu0 %1789 }
 0x4d0   : > { %v1872_v21 = vsub.f32 %v6146_v20, %v1790_v17 }
 0x4d1   : > { %v1793_v50 = vpop.xlane.xlu1 %1792 }
 0x4d2   : > { %v1910_v9 = vmul.f32 1.442695, %v1872_v21  ;;  %v1873_v38 = vsub.f32 %v6152_v22, %v1793_v50 }
 0x4d4   : > { %5094 = vpow2.f32 %v1910_v9  ;;  %v1912_v13 = vmul.f32 1.442695, %v1873_v38 }
 0x4d6   : > { %5096 = vpow2.f32 %v1912_v13 }
 0x4de   : > { %v6288_v58 = vpop.eup %5094 }
 0x4df   : > { %v1980_v57 = vsel %vm1281_vm0, %v6288_v58, 0.0 }
 0x4e0   : > { %v6292_v44 = vpop.eup %5096  ;;  %1981 = vadd.xlane.f32.xlu0 %v1980_v57 }
 0x4e1   : > { %v1983_v46 = vsel %vm1281_vm0, %v6292_v44, 0.0 }
 0x4e2   : > { %1984 = vadd.xlane.f32.xlu1 %v1983_v46 }
 0x4e3   : > { %v1814_v20 = vpop.xlane.xlu0 %1813 }
 0x4e4   : > { %v1880_v49 = vsub.f32 %v6166_v33, %v1814_v20 }
 0x4e5   : > { %v1817_v59 = vpop.xlane.xlu1 %1816 }
 0x4e6   : > { %v1926_v22 = vmul.f32 1.442695, %v1880_v49  ;;  %v1881_v61 = vsub.f32 %v6172_v56, %v1817_v59 }
 0x4e7   : > { %v1784_v63 = vpop.xlane.xlu0 %1783 }
 0x4e8   : > { %5098 = vpow2.f32 %v1926_v22  ;;  %v1928_v3 = vmul.f32 1.442695, %v1881_v61  ;;  %v1870_v4 = vsub.f32 %v6148_v48, %v1784_v63 }
 0x4e9   : > { %v1787_v5 = vpop.xlane.xlu1 %1786 }
 0x4ea   : > { %5100 = vpow2.f32 %v1928_v3  ;;  %v1906_v6 = vmul.f32 1.442695, %v1870_v4  ;;  %v1871_v10 = vsub.f32 %v6154_v23, %v1787_v5 }
 0x4eb   : > { %v1808_v40 = vpop.xlane.xlu0 %1807 }
 0x4ec   : > { %5102 = vpow2.f32 %v1906_v6  ;;  %v1908_v17 = vmul.f32 1.442695, %v1871_v10  ;;  %v1878_v21 = vsub.f32 %v6168_v34, %v1808_v40 }
 0x4ed   : > { %v1811_v33 = vpop.xlane.xlu1 %1810 }
 0x4ee   : > { %5104 = vpow2.f32 %v1908_v17  ;;  %v1922_v50 = vmul.f32 1.442695, %v1878_v21  ;;  %v1879_v56 = vsub.f32 %v6174_v35, %v1811_v33 }
 0x4ef   : > { %v1802_v9 = vpop.xlane.xlu0 %1801 }
 0x4f0   : > { %5106 = vpow2.f32 %v1922_v50  ;;  %v1924_v38 = vmul.f32 1.442695, %v1879_v56  ;;  %v1876_v48 = vsub.f32 %v6158_v25, %v1802_v9 }
 0x4f1   : > { %v1805_v13 = vpop.xlane.xlu1 %1804 }
 0x4f2   : > { %v6303_v57 = vpop.eup %5098  ;;  %5108 = vpow2.f32 %v1924_v38  ;;  %v1918_v23 = vmul.f32 1.442695, %v1876_v48  ;;  %v1877_v46 = vsub.f32 %v6162_v27, %v1805_v13 }
 0x4f3   : > { %v1838_v20 = vpop.xlane.xlu0 %1837  ;;  %v2004_v34 = vsel %vm1281_vm0, %v6303_v57, 0.0 }
 0x4f4   : > { %v6308_v49 = vpop.eup %5100  ;;  %5110 = vpow2.f32 %v1918_v23  ;;  %v1920_v35 = vmul.f32 1.442695, %v1877_v46  ;;  %v1888_v59 = vsub.f32 %v6198_v47, %v1838_v20  ;;  %2005 = vadd.xlane.f32.xlu0 %v2004_v34 }
 0x4f5   : > { %v1841_v22 = vpop.xlane.xlu1 %1840  ;;  %v2007_v25 = vsel %vm1281_vm0, %v6308_v49, 0.0 }
 0x4f6   : > { %v6313_v61 = vpop.eup %5102  ;;  %5112 = vpow2.f32 %v1920_v35  ;;  %v1942_v63 = vmul.f32 1.442695, %v1888_v59  ;;  %v1889_v27 = vsub.f32 %v6204_v53, %v1841_v22  ;;  %2008 = vadd.xlane.f32.xlu1 %v2007_v25 }
 0x4f7   : > { %v1796_v3 = vpop.xlane.xlu0 %1795  ;;  %v1974_v4 = vsel %vm1281_vm0, %v6313_v61, 0.0 }
 0x4f8   : > { %v6318_v5 = vpop.eup %5104  ;;  %5114 = vpow2.f32 %v1942_v63  ;;  %v1944_v47 = vmul.f32 1.442695, %v1889_v27  ;;  %v1874_v6 = vsub.f32 %v6160_v42, %v1796_v3  ;;  %1975 = vadd.xlane.f32.xlu0 %v1974_v4 }
 0x4f9   : > { %v1799_v10 = vpop.xlane.xlu1 %1798  ;;  %v1977_v40 = vsel %vm1281_vm0, %v6318_v5, 0.0 }
 0x4fa   : > { %v6323_v17 = vpop.eup %5106  ;;  %5116 = vpow2.f32 %v1944_v47  ;;  %v1914_v53 = vmul.f32 1.442695, %v1874_v6  ;;  %v1875_v21 = vsub.f32 %v6164_v32, %v1799_v10  ;;  %1978 = vadd.xlane.f32.xlu1 %v1977_v40 }
 0x4fb   : > { %v1832_v33 = vpop.xlane.xlu0 %1831  ;;  %v1998_v50 = vsel %vm1281_vm0, %v6323_v17, 0.0 }
 0x4fc   : > { %v6328_v56 = vpop.eup %5108  ;;  %5118 = vpow2.f32 %v1914_v53  ;;  %v1916_v42 = vmul.f32 1.442695, %v1875_v21  ;;  %v1886_v9 = vsub.f32 %v6200_v51, %v1832_v33  ;;  %1999 = vadd.xlane.f32.xlu0 %v1998_v50 }
 0x4fd   : > { %v1835_v38 = vpop.xlane.xlu1 %1834  ;;  %v2001_v48 = vsel %vm1281_vm0, %v6328_v56, 0.0 }
 0x4fe   : > { %v6333_v13 = vpop.eup %5110  ;;  %5120 = vpow2.f32 %v1916_v42  ;;  %v1938_v32 = vmul.f32 1.442695, %v1886_v9  ;;  %v1887_v23 = vsub.f32 %v6206_v55, %v1835_v38  ;;  %2002 = vadd.xlane.f32.xlu1 %v2001_v48 }
 0x4ff   : > { %v1826_v46 = vpop.xlane.xlu0 %1825  ;;  %v1992_v20 = vsel %vm1281_vm0, %v6333_v13, 0.0 }
 0x500   : > { %v6338_v34 = vpop.eup %5112  ;;  %5122 = vpow2.f32 %v1938_v32  ;;  %v1940_v51 = vmul.f32 1.442695, %v1887_v23  ;;  %v1884_v35 = vsub.f32 %v6186_v43, %v1826_v46  ;;  %1993 = vadd.xlane.f32.xlu0 %v1992_v20 }
 0x501   : > { %v6341_v59 = vpop.xlane.xlu1 %1828  ;;  %v1995_v22 = vsel %vm1281_vm0, %v6338_v34, 0.0 }
 0x502   : > { %v6345_v25 = vpop.eup %5114  ;;  %5124 = vpow2.f32 %v1940_v51  ;;  %v1934_v55 = vmul.f32 1.442695, %v1884_v35  ;;  %v1885_v63 = vsub.f32 %v6192_v45, %v6341_v59  ;;  %1996 = vadd.xlane.f32.xlu1 %v1995_v22 }
 0x503   : > { %v1862_v27 = vpop.xlane.xlu0 %1861  ;;  %v2028_v3 = vsel %vm1281_vm0, %v6345_v25, 0.0 }
 0x504   : > { %v6351_v4 = vpop.eup %5116  ;;  %5126 = vpow2.f32 %v1934_v55  ;;  %v1896_v43 = vsub.f32 %v6234_v36, %v1862_v27  ;;  %2029 = vadd.xlane.f32.xlu0 %v2028_v3 }
 0x505   : > { %v6354_v47 = vpop.xlane.xlu1 %1864  ;;  %v2031_v6 = vsel %vm1281_vm0, %v6351_v4, 0.0 }
 0x506   : > { %v6358_v10 = vpop.eup %5118  ;;  %v1958_v40 = vmul.f32 1.442695, %v1896_v43  ;;  %v1897_v53 = vsub.f32 %v6240_v39, %v6354_v47  ;;  %2032 = vadd.xlane.f32.xlu1 %v2031_v6 }
 0x507   : > { %v1820_v21 = vpop.xlane.xlu0 %1819  ;;  %v1986_v33 = vsel %vm1281_vm0, %v6358_v10, 0.0 }
 0x508   : > { %v6364_v50 = vpop.eup %5120  ;;  %5128 = vpow2.f32 %v1958_v40  ;;  %v1882_v36 = vsub.f32 %v6188_v0, %v1820_v21  ;;  %1987 = vadd.xlane.f32.xlu0 %v1986_v33 }
 0x509   : > { %v6367_v42 = vpop.xlane.xlu1 %1822  ;;  %v1989_v9 = vsel %vm1281_vm0, %v6364_v50, 0.0 }
 0x50a   : > { %v6371_v38 = vpop.eup %5122  ;;  %v1930_v48 = vmul.f32 1.442695, %v1882_v36  ;;  %1990 = vadd.xlane.f32.xlu1 %v1989_v9 }
 0x50b   : > { %v1856_v23 = vpop.xlane.xlu0 %1855  ;;  %v2022_v46 = vsel %vm1281_vm0, %v6371_v38, 0.0 }
 0x50c   : > { %v6377_v20 = vpop.eup %5124  ;;  %5130 = vpow2.f32 %v1930_v48  ;;  %2023 = vadd.xlane.f32.xlu0 %v2022_v46 }
 0x50d   : > { %v6379_v0 = vpop.xlane.xlu1 %1858  ;;  %v2025_v51 = vsel %vm1281_vm0, %v6377_v20, 0.0 }
 0x50e   : > { %v6383_v35 = vpop.eup %5126  ;;  %v1895_v22 = vsub.f32 %v6242_v41, %v6379_v0  ;;  %2026 = vadd.xlane.f32.xlu1 %v2025_v51 }
 0x50f   : > { %v1970_v55 = vpop.xlane.xlu0 %1969  ;;  %v2016_v27 = vsel %vm1281_vm0, %v6383_v35, 0.0 }
 0x510   : > { %2017 = vadd.xlane.f32.xlu0 %v2016_v27 }
 0x511   : > { %v1973_v3 = vpop.xlane.xlu1 %1972 }
 0x512   : > { %v6389_v43 = vpop.eup %5128  ;;  %5132 = vrcp.f32 %v1973_v3 }
 0x513   : > { %v1964_v6 = vpop.xlane.xlu0 %1963  ;;  %v2052_v40 = vsel %vm1281_vm0, %v6389_v43, 0.0 }
 0x514   : > { %5134 = vrcp.f32 %v1964_v6  ;;  %2053 = vadd.xlane.f32.xlu0 %v2052_v40 }
 0x515   : > { %5136 = vrcp.f32 %v1970_v55  ;;  %v1967_v21 = vpop.xlane.xlu1 %1966 }
 0x516   : > { %v6393_v33 = vpop.eup %5130  ;;  %5138 = vrcp.f32 %v1967_v21 }
 0x517   : > { %v1850_v41 = vpop.xlane.xlu0 %1849  ;;  %v2010_v36 = vsel %vm1281_vm0, %v6393_v33, 0.0 }
 0x518   : > { %2011 = vadd.xlane.f32.xlu0 %v2010_v36 }
 0x519   : > { %v1246_v9 = vpop.permute.xlu1 %1245 }
 0x51b   : > { %v1844_v48 = vpop.xlane.xlu0 %1843 }
 0x51c   : > { %v5133_v46 = vpop.eup %5132  ;;  %v1890_v47 = vsub.f32 %v6223_v16, %v1844_v48 }
 0x51d   : > { %v1250_v0 = vpop.permute.xlu1 %1249  ;;  %v2093_v6 = vmul.f32 %v5133_v46, %v6256_v60 }
 0x51e   : > { %v5135_v51 = vpop.eup %5134  ;;  %4692 = vmatprep.subr.bf16.mxu0 %v1250_v0 }
 0x51f   : > { %v5137_v27 = vpop.eup %5136  ;;  %1257 = vrot.lane.b32.xlu1 %v6024_v54, %s5546_s0  ;;  %4693 = vmatpush3.bf16.msra.mxu0 %v1250_v0  ;;  %v1244_v55 = vpop.permute.xlu0 %1243  ;;  %v2090_v40 = vmul.f32 %v5135_v51, %v6260_v62  ;;  %v1936_v62 = vmul.f32 1.442695, %v1885_v63 }
 0x520   : > { %v5139_v3 = vpop.eup %5138  ;;  %4684 = vmatprep.subr.bf16.mxu1 %v1244_v55  ;;  %v2092_v36 = vmul.f32 %v5137_v27, %v6252_v52 }
 0x521   : > { %v2091_v21 = vmul.f32 %v5139_v3, %v6264_v2  ;;  %v6409_v60 = vpop.permute.xlu1 %1255  ;;  %v1960_v2 = vmul.f32 1.442695, %v1897_v53 }
 0x522   : > { %v2123_v32 = vpack.c.bf16 %v2093_v6, %v2092_v36 }
 0x523   : > { %1263 = vrot.lane.b32.xlu1 %v6034_v8, %s5544_s9  ;;  %v2122_v28 = vpack.c.bf16 %v2091_v21, %v2090_v40 }
 0x525   : > { %4680 = vmatprep.mubr.msk.bf16.mxu1 %vm1281_vm0, %v2122_v28  ;;  %v1894_v28 = vsub.f32 %v6236_v37, %v1856_v23  ;;  %v1956_v37 = vmul.f32 1.442695, %v1895_v22  ;;  %v1892_v23 = vsub.f32 %v6221_v14, %v1850_v41 }
 0x526   : > { %4681 = vmatmul.mubr.msk.bf16.vlgmr.msra.gmra.mrb[28].mxu1 %vm1281_vm0, %v2123_v32 }
 0x527   : > { %4685 = vmatpush3.bf16.msra.mxu1 %v1244_v55  ;;  %1265 = vrot.lane.b32.xlu1 %v6032_v7, %s5544_s9  ;;  %v1954_v52 = vmul.f32 1.442695, %v1894_v28  ;;  %v1950_v39 = vmul.f32 1.442695, %v1892_v23 }
 0x528   : > { %4686 = vmatprep.subr.bf16.mxu1 %v1246_v9 }
 0x529   : > { %5140 = vpow2.f32 %v1954_v52 }
 0x52a   : > { %5142 = vpow2.f32 %v1936_v62 }
 0x52b   : > { %4687 = vmatpush3.bf16.msra.mxu1 %v1246_v9  ;;  %1269 = vrot.lane.b32.xlu1 %v6034_v8, %s5545_s21  ;;  %5144 = vpow2.f32 %v1960_v2 }
 0x52c   : > { %4700 = vmatprep.subr.bf16.mxu1 %v6409_v60 }
 0x52e   : > { %1251 = vrot.lane.b32.xlu0 %v6024_v54, %s5545_s21  ;;  %v7184_v54 = vsub.f32 %v6194_v1, %v6367_v42  ;;  %v1946_v42 = vmul.f32 1.442695, %v1890_v47 }
 0x52f   : > { %1275 = vrot.lane.b32.xlu1 %v6034_v8, %s5546_s0 }
 0x530   : > { %v1932_v32 = vmul.f32 1.442695, %v7184_v54 }
 0x532   : > { %1277 = vrot.lane.b32.xlu0 %v6032_v7, %s5546_s0  ;;  %5146 = vpow2.f32 %v1932_v32 }
 0x533   : > { %v6430_v9 = vpop.eup %5140  ;;  %5148 = vpow2.f32 %v1956_v37 }
 0x534   : > { %v2046_v45 = vsel %vm1281_vm0, %v6430_v9, 0.0  ;;  %v6435_v59 = vpop.eup %5142  ;;  %5150 = vpow2.f32 %v1950_v39 }
 0x535   : > { %v2019_v1 = vsel %vm1281_vm0, %v6435_v59, 0.0  ;;  %v6440_v53 = vpop.eup %5144  ;;  %5152 = vpow2.f32 %v1946_v42 }
 0x536   : > { %v2055_v41 = vsel %vm1281_vm0, %v6440_v53, 0.0 }
 0x53c   : > { %v6445_v46 = vpop.eup %5146 }
 0x53d   : > { %v2013_v48 = vsel %vm1281_vm0, %v6445_v46, 0.0  ;;  %v6450_v51 = vpop.eup %5148 }
 0x53e   : > { %v6454_v55 = vpop.eup %5150 }
 0x53f   : > { %v2040_v3 = vsel %vm1281_vm0, %v6454_v55, 0.0  ;;  %v6458_v6 = vpop.eup %5152 }
 0x552   : > { %v1853_v63 = vpop.xlane.xlu1 %1852 }
 0x553   : > { %2047 = vadd.xlane.f32.xlu1 %v2046_v45  ;;  %v1893_v14 = vsub.f32 %v6228_v12, %v1853_v63  ;;  %v2049_v12 = vsel %vm1281_vm0, %v6450_v51, 0.0 }
 0x555   : > { %v1952_v0 = vmul.f32 1.442695, %v1893_v14 }
 0x556   : > { %v1847_v22 = vpop.xlane.xlu1 %1846 }
 0x557   : > { %2020 = vadd.xlane.f32.xlu1 %v2019_v1  ;;  %v1891_v16 = vsub.f32 %v6230_v24, %v1847_v22  ;;  %5154 = vpow2.f32 %v1952_v0  ;;  %v2034_v24 = vsel %vm1281_vm0, %v6458_v6, 0.0 }
 0x559   : > { %v1948_v27 = vmul.f32 1.442695, %v1891_v16 }
 0x55b   : > { %2056 = vadd.xlane.f32.xlu1 %v2055_v41  ;;  %5156 = vpow2.f32 %v1948_v27 }
 0x55f   : > { %2014 = vadd.xlane.f32.xlu1 %v2013_v48 }
 0x561   : > { %v6462_v40 = vpop.eup %5154 }
 0x562   : > { %v2043_v21 = vsel %vm1281_vm0, %v6462_v40, 0.0 }
 0x563   : > { %2050 = vadd.xlane.f32.xlu1 %v2049_v12 }
 0x565   : > { %v6466_v36 = vpop.eup %5156 }
 0x566   : > { %v2037_v28 = vsel %vm1281_vm0, %v6466_v36, 0.0 }
 0x567   : > { %2041 = vadd.xlane.f32.xlu1 %v2040_v3 }
 0x56b   : > { %2035 = vadd.xlane.f32.xlu1 %v2034_v24 }
 0x56d   : > { %v1982_v52 = vpop.xlane.xlu0 %1981 }
 0x56f   : > { %2044 = vadd.xlane.f32.xlu1 %v2043_v21  ;;  %v1985_v62 = vpop.xlane.xlu1 %1984 }
 0x570   : > { %5158 = vrcp.f32 %v1985_v62 }
 0x573   : > { %2038 = vadd.xlane.f32.xlu1 %v2037_v28 }
 0x57a   : > { %v5159_v39 = vpop.eup %5158 }
 0x57b   : > { %v2097_v41 = vmul.f32 %v5159_v39, %v6292_v44 }
 0x581   : > { %v2006_v2 = vpop.xlane.xlu0 %2005 }
 0x583   : > { %v2009_v54 = vpop.xlane.xlu1 %2008 }
 0x584   : > { %1271 = vrot.lane.b32.xlu1 %v6032_v7, %s5545_s21 }
 0x585   : > { %v1976_v32 = vpop.xlane.xlu0 %1975 }
 0x586   : > { %5160 = vrcp.f32 %v1976_v32 }
 0x587   : > { %5162 = vrcp.f32 %v1982_v52  ;;  %v1979_v37 = vpop.xlane.xlu1 %1978 }
 0x588   : > { %5164 = vrcp.f32 %v1979_v37 }
 0x589   : > { %v2000_v23 = vpop.xlane.xlu0 %1999 }
 0x58a   : > { %5166 = vrcp.f32 %v2000_v23 }
 0x58b   : > { %v2003_v45 = vpop.xlane.xlu1 %2002 }
 0x58c   : > { %5168 = vrcp.f32 %v2003_v45 }
 0x58d   : > { %v1994_v63 = vpop.xlane.xlu0 %1993  ;;  %5170 = vrcp.f32 %v2009_v54 }
 0x58e   : > { %5172 = vrcp.f32 %v2006_v2 }
 0x58f   : > { %v1997_v47 = vpop.xlane.xlu1 %1996 }
 0x590   : > { %v5161_v1 = vpop.eup %5160 }
 0x591   : > { %v5163_v42 = vpop.eup %5162  ;;  %v2030_v14 = vpop.xlane.xlu0 %2029  ;;  %v2094_v16 = vmul.f32 %v5161_v1, %v6313_v61 }
 0x592   : > { %v5165_v22 = vpop.eup %5164  ;;  %v2096_v12 = vmul.f32 %v5163_v42, %v6288_v58 }
 0x593   : > { %v2033_v0 = vpop.xlane.xlu1 %2032  ;;  %v2095_v48 = vmul.f32 %v5165_v22, %v6318_v5 }
 0x594   : > { %v5167_v27 = vpop.eup %5166  ;;  %v2125_v28 = vpack.c.bf16 %v2097_v41, %v2096_v12 }
 0x595   : > { %v1988_v3 = vpop.xlane.xlu0 %1987  ;;  %v2124_v24 = vpack.c.bf16 %v2095_v48, %v2094_v16  ;;  %v2102_v44 = vmul.f32 %v5167_v27, %v6323_v17 }
 0x596   : > { %v5169_v21 = vpop.eup %5168  ;;  %5174 = vrcp.f32 %v1988_v3 }
 0x597   : > { %5176 = vrcp.f32 %v1997_v47  ;;  %v1991_v52 = vpop.xlane.xlu1 %1990  ;;  %4688 = vmatprep.mubr.msk.bf16.mxu1 %vm1281_vm0, %v2124_v24  ;;  %v2103_v62 = vmul.f32 %v5169_v21, %v6328_v56  ;;  %v5171_v5 = vpop.eup %5170 }
 0x598   : > { %5178 = vrcp.f32 %v1991_v52  ;;  %4689 = vmatmul.mubr.msk.bf16.vlgmr.msra.gmra.mrb[32].mxu1 %vm1281_vm0, %v2125_v28  ;;  %v5173_v54 = vpop.eup %5172  ;;  %v2105_v56 = vmul.f32 %v5171_v5, %v6308_v49 }
 0x599   : > { %5180 = vrcp.f32 %v2033_v0  ;;  %4701 = vmatpush3.bf16.msra.mxu1 %v6409_v60  ;;  %v2024_v58 = vpop.xlane.xlu0 %2023  ;;  %v2128_v61 = vpack.c.bf16 %v2103_v62, %v2102_v44  ;;  %v2104_v23 = vmul.f32 %v5173_v54, %v6303_v57 }
 0x59a   : > { %5182 = vrcp.f32 %v2024_v58 }
 0x59b   : > { %5184 = vrcp.f32 %v2030_v14  ;;  %v2027_v2 = vpop.xlane.xlu1 %2026  ;;  %4704 = vmatprep.mubr.msk.bf16.mxu1 %vm1281_vm0, %v2128_v61  ;;  %v2129_v47 = vpack.c.bf16 %v2105_v56, %v2104_v23 }
 0x59c   : > { %5186 = vrcp.f32 %v2027_v2 }
 0x59d   : > { %5188 = vrcp.f32 %v1994_v63  ;;  %v2018_v17 = vpop.xlane.xlu0 %2017 }
 0x59f   : > { %v1258_v32 = vpop.permute.xlu1 %1257 }
 0x5a0   : > { %v5175_v37 = vpop.eup %5174  ;;  %4702 = vmatprep.subr.bf16.mxu1 %v1258_v32 }
 0x5a1   : > { %v5177_v60 = vpop.eup %5176  ;;  %4703 = vmatpush3.bf16.msra.mxu1 %v1258_v32  ;;  %v2054_v45 = vpop.xlane.xlu0 %2053  ;;  %v2098_v14 = vmul.f32 %v5175_v37, %v6358_v10 }
 0x5a2   : > { %v5179_v39 = vpop.eup %5178 }
 0x5a3   : > { %v5181_v1 = vpop.eup %5180  ;;  %v1264_v42 = vpop.permute.xlu1 %1263  ;;  %v2099_v22 = vmul.f32 %v5179_v39, %v6364_v50  ;;  %v2101_v50 = vmul.f32 %v5177_v60, %v6338_v34 }
 0x5a4   : > { %v5183_v63 = vpop.eup %5182  ;;  %4705 = vmatmul.mubr.msk.bf16.vlgmr.msra.gmra.mrb[36].mxu1 %vm1281_vm0, %v2129_v47  ;;  %4716 = vmatprep.subr.bf16.mxu1 %v1264_v42  ;;  %v2113_v16 = vmul.f32 %v5181_v1, %v6351_v4 }
 0x5a5   : > { %v5185_v49 = vpop.eup %5184  ;;  %4717 = vmatpush3.bf16.msra.mxu1 %v1264_v42  ;;  %v2012_v41 = vpop.xlane.xlu0 %2011  ;;  %v2126_v57 = vpack.c.bf16 %v2099_v22, %v2098_v14  ;;  %v2110_v12 = vmul.f32 %v5183_v63, %v6371_v38 }
 0x5a6   : > { %v5187_v0 = vpop.eup %5186  ;;  %v2112_v3 = vmul.f32 %v5185_v49, %v6345_v25 }
 0x5a7   : > { %v5189_v48 = vpop.eup %5188  ;;  %v1266_v27 = vpop.permute.xlu1 %1265  ;;  %4696 = vmatprep.mubr.msk.bf16.mxu0 %vm1281_vm0, %v2126_v57  ;;  %v2111_v10 = vmul.f32 %v5187_v0, %v6377_v20  ;;  %v7185_v0 = vmov 0  }
 0x5a8   : > { %4718 = vmatprep.subr.bf16.mxu1 %v1266_v27  ;;  %v2100_v28 = vmul.f32 %v5189_v48, %v6333_v13  ;;  %v2133_v4 = vpack.c.bf16 %v2113_v16, %v2112_v3 }
 0x5a9   : > { %4719 = vmatpush3.bf16.msra.mxu1 %v1266_v27  ;;  %v1252_v24 = vpop.permute.xlu0 %1251  ;;  %v2132_v21 = vpack.c.bf16 %v2111_v10, %v2110_v12 }
 0x5aa   : > { %4694 = vmatprep.subr.bf16.mxu0 %v1252_v24  ;;  %v2127_v38 = vpack.c.bf16 %v2101_v50, %v2100_v28  ;;  %v4983_v28 = vld [vmem:[%s5885_s27 + $0x8] sm:$0xff]  }
 0x5ab   : > { %v1270_v52 = vpop.permute.xlu1 %1269  ;;  %4695 = vmatpush3.bf16.msra.mxu0 %v1252_v24  ;;  %4720 = vmatprep.mubr.msk.bf16.mxu1 %vm1281_vm0, %v2132_v21  ;;  %v4982_v21 = vld [vmem:[%s5885_s27] sm:$0xff]  }
 0x5ac   : > { %4708 = vmatprep.subr.bf16.mxu0 %v6034_v8  ;;  %4721 = vmatmul.mubr.msk.bf16.vlgmr.msra.gmra.mrb[40].mxu1 %vm1281_vm0, %v2133_v4 }
 0x5ad   : > { %v1278_v13 = vpop.permute.xlu0 %1277 }
 0x5ae   : > { %4697 = vmatmul.mubr.msk.bf16.vlgmr.msra.gmra.mrb[28].mxu0 %vm1281_vm0, %v2127_v38  ;;  %v4985_v38 = vld [vmem:[%s5885_s27 + $0x18] sm:$0xff]  }
 0x5af   : > { %v1276_v34 = vpop.permute.xlu1 %1275  ;;  %4709 = vmatpush3.bf16.msra.mxu0 %v6034_v8 }
 0x5b0   : > { %4710 = vmatprep.subr.bf16.mxu0 %v6032_v7  ;;  %4732 = vmatprep.subr.bf16.mxu1 %v1276_v34 }
 0x5b1   : > { %4733 = vmatpush3.bf16.msra.mxu1 %v1276_v34 }
 0x5b2   : > { %4734 = vmatprep.subr.bf16.mxu1 %v1278_v13 }
 0x5b3   : > { %4711 = vmatpush3.bf16.msra.mxu0 %v6032_v7 }
 0x5b4   : > { %4724 = vmatprep.subr.bf16.mxu0 %v1270_v52 }
 0x5b5   : > { %4735 = vmatpush3.bf16.msra.mxu1 %v1278_v13  ;;  %v4986_v13 = vld [vmem:[%s5885_s27 + $0x20] sm:$0xff]  }
 0x5e0   : > { %v2048_v25 = vpop.xlane.xlu1 %2047 }
 0x5e4   : > { %v2021_v20 = vpop.xlane.xlu1 %2020 }
 0x5e5   : > { %5190 = vrcp.f32 %v2021_v20 }
 0x5e6   : > { %5192 = vrcp.f32 %v2012_v41 }
 0x5e7   : > { %5194 = vrcp.f32 %v2018_v17 }
 0x5e8   : > { %v2057_v44 = vpop.xlane.xlu1 %2056 }
 0x5ec   : > { %v2015_v62 = vpop.xlane.xlu1 %2014 }
 0x5ed   : > { %5196 = vrcp.f32 %v2015_v62 }
 0x5ee   : > { %5198 = vrcp.f32 %v2057_v44 }
 0x5ef   : > { %5200 = vrcp.f32 %v2048_v25  ;;  %v5191_v58 = vpop.eup %5190  ;;  %v4987_v25 = vld [vmem:[%s5885_s27 + $0x28] sm:$0xff]  }
 0x5f0   : > { %5202 = vrcp.f32 %v2054_v45  ;;  %v2051_v8 = vpop.xlane.xlu1 %2050  ;;  %v5193_v5 = vpop.eup %5192  ;;  %v2109_v54 = vmul.f32 %v5191_v58, %v6435_v59 }
 0x5f1   : > { %5204 = vrcp.f32 %v2051_v8  ;;  %v5195_v2 = vpop.eup %5194  ;;  %v2106_v37 = vmul.f32 %v5193_v5, %v6393_v33  ;;  %v4988_v5 = vld [vmem:[%s5885_s27 + $0x30] sm:$0xff]  }
 0x5f2   : > { %v2108_v60 = vmul.f32 %v5195_v2, %v6383_v35 }
 0x5f4   : > { %v2042_v61 = vpop.xlane.xlu1 %2041  ;;  %v2131_v59 = vpack.c.bf16 %v2109_v54, %v2108_v60 }
 0x5f7   : > { %v5197_v7 = vpop.eup %5196 }
 0x5f8   : > { %v5199_v56 = vpop.eup %5198  ;;  %v2036_v32 = vpop.xlane.xlu1 %2035  ;;  %v2107_v17 = vmul.f32 %v5197_v7, %v6445_v46  ;;  %v4989_v7 = vld [vmem:[%s5885_s27 + $0x38] sm:$0xff]  }
 0x5f9   : > { %v5201_v23 = vpop.eup %5200  ;;  %v6505_v39 = vpop.f32.mrb[28].mxu1  ;;  %v2121_v14 = vmul.f32 %v5199_v56, %v6440_v53 }
 0x5fa   : > { %v5203_v45 = vpop.eup %5202  ;;  %v6507_v47 = vpop.f32.mrb[29].mxu1  ;;  %v2130_v1 = vpack.c.bf16 %v2107_v17, %v2106_v37  ;;  %v2118_v46 = vmul.f32 %v5201_v23, %v6430_v9 }
 0x5fb   : > { %v5205_v42 = vpop.eup %5204  ;;  %v6510_v22 = vpop.f32.mrb[30].mxu1  ;;  %v2120_v49 = vmul.f32 %v5203_v45, %v6389_v43 }
 0x5fc   : > { %v6512_v63 = vpop.f32.mrb[31].mxu1  ;;  %v2045_v33 = vpop.xlane.xlu1 %2044  ;;  %4712 = vmatprep.mubr.msk.bf16.mxu0 %vm1281_vm0, %v2130_v1  ;;  %v2119_v35 = vmul.f32 %v5205_v42, %v6450_v51 }
 0x5fd   : > { %4713 = vmatmul.mubr.msk.bf16.vlgmr.msra.gmra.mrb[32].mxu0 %vm1281_vm0, %v2131_v59  ;;  %5206 = vrcp.f32 %v2045_v33  ;;  %v2137_v53 = vpack.c.bf16 %v2121_v14, %v2120_v49 }
 0x5fe   : > { %4725 = vmatpush3.bf16.msra.mxu0 %v1270_v52  ;;  %v2136_v41 = vpack.c.bf16 %v2119_v35, %v2118_v46  ;;  %5208 = vrcp.f32 %v2036_v32 }
 0x5ff   : > { %5210 = vrcp.f32 %v2042_v61 }
 0x600   : > { %v2039_v57 = vpop.xlane.xlu1 %2038  ;;  %4736 = vmatprep.mubr.msk.bf16.mxu1 %vm1281_vm0, %v2136_v41 }
 0x601   : > { %5212 = vrcp.f32 %v2039_v57  ;;  %4737 = vmatmul.mubr.msk.bf16.vlgmr.msra.gmra.mrb[44].mxu1 %vm1281_vm0, %v2137_v53 }
 0x602   : > { %3216 = vmatprep.mubr.bf16.mxu1 %v7185_v0 }
 0x604   : > { %v1272_v9 = vpop.permute.xlu1 %1271 }
 0x605   : > { %4726 = vmatprep.subr.bf16.mxu0 %v1272_v9 }
 0x606   : > { %4727 = vmatpush3.bf16.msra.mxu0 %v1272_v9 }
 0x607   : > { %v5207_v43 = vpop.eup %5206  ;;  %4740 = vmatprep.subr.bf16.mxu0 %v4982_v21 }
 0x608   : > { %v5209_v51 = vpop.eup %5208  ;;  %v2117_v27 = vmul.f32 %v5207_v43, %v6462_v40  ;;  %v4984_v40 = vld [vmem:[%s5885_s27 + $0x10] sm:$0xff]  }
 0x609   : > { %v5211_v16 = vpop.eup %5210  ;;  %v2114_v12 = vmul.f32 %v5209_v51, %v6458_v6 }
 0x60a   : > { %v2116_v50 = vmul.f32 %v5211_v16, %v6454_v55 }
 0x60b   : > { %v5213_v48 = vpop.eup %5212 }
 0x60c   : > { %v2115_v10 = vmul.f32 %v5213_v48, %v6466_v36  ;;  %v2135_v24 = vpack.c.bf16 %v2117_v27, %v2116_v50 }
 0x60e   : > { %v2134_v3 = vpack.c.bf16 %v2115_v10, %v2114_v12 }
 0x610   : > { %4728 = vmatprep.mubr.msk.bf16.mxu0 %vm1281_vm0, %v2134_v3 }
 0x611   : > { %4729 = vmatmul.mubr.msk.bf16.vlgmr.msra.gmra.mrb[36].mxu0 %vm1281_vm0, %v2135_v24 }
 0x612   : > { %4741 = vmatpush3.bf16.msra.mxu0 %v4982_v21 }
 0x613   : > { %4742 = vmatprep.subr.bf16.mxu0 %v4983_v28 }
 0x616   : > { %4743 = vmatpush3.bf16.msra.mxu0 %v4983_v28 }
 0x617   : > { %4744 = vmatprep.subr.bf16.mxu0 %v4984_v40 }
 0x61a   : > { %4745 = vmatpush3.bf16.msra.mxu0 %v4984_v40 }
 0x61b   : > { %4746 = vmatprep.subr.bf16.mxu0 %v4985_v38 }
 0x61e   : > { %4747 = vmatpush3.bf16.msra.mxu0 %v4985_v38 }
 0x61f   : > { %4748 = vmatprep.subr.bf16.mxu0 %v4986_v13 }
 0x622   : > { %4749 = vmatpush3.bf16.msra.mxu0 %v4986_v13 }
 0x623   : > { %4750 = vmatprep.subr.bf16.mxu0 %v4987_v25 }
 0x626   : > { %4751 = vmatpush3.bf16.msra.mxu0 %v4987_v25 }
 0x627   : > { %4752 = vmatprep.subr.bf16.mxu0 %v4988_v5 }
 0x62a   : > { %4753 = vmatpush3.bf16.msra.mxu0 %v4988_v5 }
 0x62b   : > { %4754 = vmatprep.subr.bf16.mxu0 %v4989_v7 }
 0x62e   : > { %4755 = vmatpush3.bf16.msra.mxu0 %v4989_v7 }
 0x66b   : > { %v4690_v6 = vpop.f32.mrb[32].mxu1 }
 0x66c   : > { %v2233_v36 = vpop.f32.mrb[33].mxu1 }
 0x66d   : > { %v4691_v55 = vpop.f32.mrb[34].mxu1 }
 0x66e   : > { %v4890_v4 = vpack.i.bf16 %v4691_v55, %v4690_v6  ;;  %v2236_v52 = vpop.f32.mrb[35].mxu1 }
 0x66f   : > { %v4895_v34 = vpack.i.bf16 %v2236_v52, %v2233_v36 }
 0x670   : > { %4891 = vrot.lane.b32.xlu0 %v4890_v4, %s5546_s0 }
 0x671   : > { %4896 = vrot.lane.b32.xlu1 %v4895_v34, %s5546_s0 }
 0x677   : > { %v4706_v20 = vpop.f32.mrb[36].mxu1 }
 0x678   : > { %v2343_v44 = vpop.f32.mrb[37].mxu1 }
 0x679   : > { %v4707_v62 = vpop.f32.mrb[38].mxu1 }
 0x67a   : > { %v4915_v8 = vpack.i.bf16 %v4707_v62, %v4706_v20  ;;  %v2346_v58 = vpop.f32.mrb[39].mxu1 }
 0x67b   : > { %v4910_v61 = vpack.i.bf16 %v2346_v58, %v2343_v44 }
 0x67f   : > { %v4722_v2 = vpop.f32.mrb[40].mxu1 }
 0x680   : > { %v2453_v54 = vpop.f32.mrb[41].mxu1 }
 0x681   : > { %v4698_v56 = vpop.f32.mrb[28].mxu0  ;;  %v4723_v32 = vpop.f32.mrb[42].mxu1 }
 0x682   : > { %v4920_v37 = vpack.i.bf16 %v4723_v32, %v4722_v2  ;;  %v2288_v17 = vpop.f32.mrb[29].mxu0  ;;  %v2456_v23 = vpop.f32.mrb[43].mxu1 }
 0x683   : > { %v4925_v60 = vpack.i.bf16 %v2456_v23, %v2453_v54  ;;  %v4699_v45 = vpop.f32.mrb[30].mxu0 }
 0x684   : > { %v4900_v1 = vpack.i.bf16 %v4699_v45, %v4698_v56  ;;  %v2291_v42 = vpop.f32.mrb[31].mxu0 }
 0x685   : > { %v4905_v14 = vpack.i.bf16 %v2291_v42, %v2288_v17 }
 0x686   : > { %4901 = vrot.lane.b32.xlu0 %v4900_v1, %s5545_s21 }
 0x687   : > { %4906 = vrot.lane.b32.xlu1 %v4905_v14, %s5545_s21 }
 0x68a   : > { %4916 = vrot.lane.b32.xlu0 %v4915_v8, %s5544_s9 }
 0x68b   : > { %4911 = vrot.lane.b32.xlu1 %v4910_v61, %s5544_s9 }
 0x68e   : > { %4921 = vrot.lane.b32.xlu0 %v4920_v37, %s5546_s0 }
 0x68f   : > { %4926 = vrot.lane.b32.xlu1 %v4925_v60, %s5546_s0 }
 0x6d0   : > { %v6544_v59 = vpop.f32.mrb[32].mxu0 }
 0x6d1   : > { %v6546_v33 = vpop.f32.mrb[33].mxu0 }
 0x6d2   : > { %v6548_v46 = vpop.f32.mrb[34].mxu0 }
 0x6d3   : > { %v6550_v35 = vpop.f32.mrb[35].mxu0 }
 0x6d4   : > { %v4738_v49 = vpop.f32.mrb[44].mxu1 }
 0x6d5   : > { %v2563_v41 = vpop.f32.mrb[45].mxu1 }
 0x6d6   : > { %v4739_v53 = vpop.f32.mrb[46].mxu1 }
 0x6d7   : > { %v4945_v57 = vpack.i.bf16 %v4739_v53, %v4738_v49  ;;  %v2566_v9 = vpop.f32.mrb[47].mxu1 }
 0x6d8   : > { %v4940_v43 = vpack.i.bf16 %v2566_v9, %v2563_v41 }
 0x6e2   : > { %v4892_v50 = vpop.permute.xlu0 %4891 }
 0x6e3   : > { %v4897_v3 = vpop.permute.xlu1 %4896  ;;  %v4894_v24 = vunpack.i.h.bf16 %v4892_v50  ;;  %v4893_v21 = vunpack.i.l.bf16 %v4892_v50 }
 0x6e4   : > { %v4730_v51 = vpop.f32.mrb[36].mxu0  ;;  %v4899_v40 = vunpack.i.h.bf16 %v4897_v3  ;;  %v4898_v6 = vunpack.i.l.bf16 %v4897_v3 }
 0x6e5   : > { %v2508_v16 = vpop.f32.mrb[37].mxu0  ;;  %v2629_v34 = vsel %vm1281_vm0, %v6510_v22, %v4894_v24  ;;  %v2628_v13 = vsel %vm1281_vm0, %v6505_v39, %v4893_v21 }
 0x6e6   : > { %v4731_v48 = vpop.f32.mrb[38].mxu0  ;;  %v2627_v20 = vsel %vm1281_vm0, %v6512_v63, %v4899_v40  ;;  %v2626_v44 = vsel %vm1281_vm0, %v6507_v47, %v4898_v6 }
 0x6e7   : > { %v4930_v27 = vpack.i.bf16 %v4731_v48, %v4730_v51  ;;  %v2511_v12 = vpop.f32.mrb[39].mxu0 }
 0x6e8   : > { %v4935_v10 = vpack.i.bf16 %v2511_v12, %v2508_v16 }
 0x6e9   : > { %4931 = vrot.lane.b32.xlu0 %v4930_v27, %s5545_s21 }
 0x6ea   : > { %4936 = vrot.lane.b32.xlu1 %v4935_v10, %s5545_s21 }
 0x6ed   : > { %4946 = vrot.lane.b32.xlu0 %v4945_v57, %s5544_s9 }
 0x6ee   : > { %4941 = vrot.lane.b32.xlu1 %v4940_v43, %s5544_s9 }
 0x6f8   : > { %v4902_v28 = vpop.permute.xlu0 %4901 }
 0x6f9   : > { %v4907_v36 = vpop.permute.xlu1 %4906  ;;  %v4904_v55 = vunpack.i.h.bf16 %v4902_v28  ;;  %v4903_v4 = vunpack.i.l.bf16 %v4902_v28 }
 0x6fa   : > { %v4909_v52 = vunpack.i.h.bf16 %v4907_v36  ;;  %v4908_v38 = vunpack.i.l.bf16 %v4907_v36 }
 0x6fb   : > { %v2633_v61 = vsel %vm2630_vm1, %v2628_v13, %v4903_v4  ;;  %v2634_v5 = vsel %vm2630_vm1, %v2629_v34, %v4904_v55  ;;  %v4337_v4 = vld [vmem:[%s692_s24] ss:$0 sm:$0xff] }
 0x6fc   : > { %v4917_v25 = vpop.permute.xlu0 %4916  ;;  %v2632_v7 = vsel %vm2630_vm1, %v2627_v20, %v4909_v52  ;;  %v2631_v39 = vsel %vm2630_vm1, %v2626_v44, %v4908_v38 }
 0x6fd   : > { %v4919_v62 = vunpack.i.h.bf16 %v4917_v25  ;;  %v4918_v8 = vunpack.i.l.bf16 %v4917_v25  ;;  %v4912_v58 = vpop.permute.xlu1 %4911 }
 0x6fe   : > { %v4914_v2 = vunpack.i.h.bf16 %v4912_v58  ;;  %v4913_v22 = vunpack.i.l.bf16 %v4912_v58 }
 0x6ff   : > { %v2638_v54 = vsel %vm2635_vm2, %v2633_v61, %v4918_v8  ;;  %v2639_v63 = vsel %vm2635_vm2, %v2634_v5, %v4919_v62 }
 0x700   : > { %v2701_v56 = vpack.c.bf16 %v2639_v63, %v2638_v54  ;;  %v2636_v47 = vsel %vm2635_vm2, %v2631_v39, %v4913_v22  ;;  %v2637_v32 = vsel %vm2635_vm2, %v2632_v7, %v4914_v2  ;;  %v4922_v17 = vpop.permute.xlu0 %4921 }
 0x701   : > { %v2700_v37 = vpack.c.bf16 %v2637_v32, %v2636_v47  ;;  %v4927_v23 = vpop.permute.xlu1 %4926  ;;  %v4924_v60 = vunpack.i.h.bf16 %v4922_v17  ;;  %v4923_v45 = vunpack.i.l.bf16 %v4922_v17  ;;  %v4992_v32 = vld [vmem:[%s5905_s6 + $0x4] ss:$16 sps:$4 sm:$0xff]  }
 0x702   : > { %v4929_v42 = vunpack.i.h.bf16 %v4927_v23  ;;  %v4928_v14 = vunpack.i.l.bf16 %v4927_v23  ;;  %v4998_v17 = vld [vmem:[%s5905_s6 + $0x24] ss:$16 sps:$4 sm:$0xff]   ;;  %3184 = vmatprep.subr.bf16.mxu1 %v4992_v32  ;;  %v5001_v23 = vld [vmem:[%s5905_s6 + $0x2c] ss:$16 sps:$4 sm:$0xff]  }
 0x703   : > { %4756 = vmatprep.mubr.bf16.mxu0 %v2700_v37  ;;  %v2691_v43 = vsel %vm1281_vm0, %v6548_v46, %v4924_v60  ;;  %v2690_v51 = vsel %vm1281_vm0, %v6544_v59, %v4923_v45  ;;  %v4995_v37 = vld [vmem:[%s5905_s6 + $0xc] ss:$16 sps:$4 sm:$0xff]   ;;  %v4999_v60 = vld [vmem:[%s5905_s6 + $0x28] ss:$16 sps:$4 sm:$0xff]  }
 0x704   : > { %4757 = vmatmul.mubr.bf16.vlgmr.msra.gmra.mrb[40].mxu0 %v2701_v56  ;;  %v2688_v48 = vsel %vm1281_vm0, %v6546_v33, %v4928_v14  ;;  %v2689_v27 = vsel %vm1281_vm0, %v6550_v35, %v4929_v42  ;;  %3257 = vmatprep.subr.bf16.mxu0 %v4995_v37 }
 0x75b   : > { %v4932_v1 = vpop.permute.xlu0 %4931 }
 0x75c   : > { %v4937_v49 = vpop.permute.xlu1 %4936  ;;  %v4934_v41 = vunpack.i.h.bf16 %v4932_v1  ;;  %v4933_v53 = vunpack.i.l.bf16 %v4932_v1 }
 0x75d   : > { %v4939_v57 = vunpack.i.h.bf16 %v4937_v49  ;;  %v4938_v9 = vunpack.i.l.bf16 %v4937_v49 }
 0x75e   : > { %v2694_v3 = vsel %vm2630_vm1, %v2690_v51, %v4933_v53  ;;  %v2695_v24 = vsel %vm2630_vm1, %v2691_v43, %v4934_v41 }
 0x75f   : > { %v4947_v16 = vpop.permute.xlu0 %4946  ;;  %v2693_v28 = vsel %vm2630_vm1, %v2689_v27, %v4939_v57  ;;  %v2692_v59 = vsel %vm2630_vm1, %v2688_v48, %v4938_v9 }
 0x760   : > { %v4949_v12 = vunpack.i.h.bf16 %v4947_v16  ;;  %v4948_v10 = vunpack.i.l.bf16 %v4947_v16  ;;  %v4942_v50 = vpop.permute.xlu1 %4941 }
 0x761   : > { %v4944_v21 = vunpack.i.h.bf16 %v4942_v50  ;;  %v4943_v46 = vunpack.i.l.bf16 %v4942_v50  ;;  %v5007_v50 = vld [vmem:[%s5905_s6 + $0x4c] ss:$16 sps:$4 sm:$0xff]  }
 0x762   : > { %v2698_v40 = vsel %vm2635_vm2, %v2694_v3, %v4948_v10  ;;  %v2699_v33 = vsel %vm2635_vm2, %v2695_v24, %v4949_v12  ;;  %v5004_v10 = vld [vmem:[%s5905_s6 + $0x44] ss:$16 sps:$4 sm:$0xff]   ;;  %v5002_v3 = vld [vmem:[%s5905_s6 + $0x40] ss:$16 sps:$4 sm:$0xff]   ;;  %v5005_v24 = vld [vmem:[%s5905_s6 + $0x48] ss:$16 sps:$4 sm:$0xff]  }
 0x763   : > { %v2696_v35 = vsel %vm2635_vm2, %v2692_v59, %v4943_v46  ;;  %v2697_v6 = vsel %vm2635_vm2, %v2693_v28, %v4944_v21  ;;  %v2703_v36 = vpack.c.bf16 %v2699_v33, %v2698_v40  ;;  %v5010_v21 = vld [vmem:[%s5905_s6 + $0x64] ss:$16 sps:$4 sm:$0xff]   ;;  %v5013_v46 = vld [vmem:[%s5905_s6 + $0x6c] ss:$16 sps:$4 sm:$0xff]   ;;  %v5008_v28 = vld [vmem:[%s5905_s6 + $0x60] ss:$16 sps:$4 sm:$0xff]  }
 0x764   : > { %v2702_v55 = vpack.c.bf16 %v2697_v6, %v2696_v35  ;;  %v5011_v59 = vld [vmem:[%s5905_s6 + $0x68] ss:$16 sps:$4 sm:$0xff]   ;;  %v5016_v40 = vld [vmem:[%s5905_s6 + $0x84] ss:$16 sps:$4 sm:$0xff]   ;;  %v5019_v33 = vld [vmem:[%s5905_s6 + $0x8c] ss:$16 sps:$4 sm:$0xff]  }
 0x765   : > { %v5014_v35 = vld [vmem:[%s5905_s6 + $0x80] ss:$16 sps:$4 sm:$0xff]   ;;  %v5017_v6 = vld [vmem:[%s5905_s6 + $0x88] ss:$16 sps:$4 sm:$0xff]  }
 0x766   : > { %4760 = vmatprep.mubr.bf16.mxu0 %v2702_v55  ;;  %v5025_v55 = vld [vmem:[%s5905_s6 + $0xac] ss:$16 sps:$4 sm:$0xff]  }
 0x767   : > { %4761 = vmatmul.mubr.bf16.gmra.mrb[44].mxu0 %v2703_v36  ;;  %v5022_v36 = vld [vmem:[%s5905_s6 + $0xa4] ss:$16 sps:$4 sm:$0xff]  }
 0x768   : > { %3289 = vmatprep.mubr.bf16.mxu0 %v7185_v0 }
 0x7d7   : > { %v4758_v52 = vpop.f32.mrb[40].mxu0 }
 0x7d8   : > { %v2809_v38 = vpop.f32.mrb[41].mxu0  ;;  %v2818_v8 = vadd.f32 %v4758_v52, %v4337_v4  ;;  %v5023_v52 = vld [vmem:[%s5905_s6 + $0xa8] ss:$16 sps:$4 sm:$0xff]  }
 0x7d9   : > { %v2810_v34 = vadd.f32 %v4337_v4, %v2809_v38  ;;  %v4759_v13 = vpop.f32.mrb[42].mxu0  ;;  %v5028_v38 = vld [vmem:[%s5905_s6 + $0xc4] ss:$16 sps:$4 sm:$0xff]  }
 0x7da   : > { %v2812_v25 = vpop.f32.mrb[43].mxu0  ;;  %v2821_v44 = vadd.f32 %v4759_v13, %v4337_v4  ;;  %v6606_v5 = vadd.f32 %v2818_v8, %v5912_v15  ;;  %v5026_v13 = vld [vmem:[%s5905_s6 + $0xc0] ss:$16 sps:$4 sm:$0xff]  }
 0x7db   : > { %v6595_v20 = vadd.f32 %v2810_v34, %v5910_v11  ;;  %v2813_v62 = vadd.f32 %v4337_v4, %v2812_v25  ;;  %v5031_v34 = vld [vmem:[%s5905_s6 + $0xcc] ss:$16 sps:$4 sm:$0xff]   ;;  %v5029_v25 = vld [vmem:[%s5905_s6 + $0xc8] ss:$16 sps:$4 sm:$0xff]   ;;  %v5032_v8 = vld [vmem:[%s5905_s6 + $0xe0] ss:$16 sps:$4 sm:$0xff]  }
 0x7dc   : > { %v6602_v61 = vadd.f32 %v2821_v44, %v5918_v19  ;;  %v5034_v44 = vld [vmem:[%s5905_s6 + $0xe4] ss:$16 sps:$4 sm:$0xff]  }
 0x7dd   : > { %v6598_v58 = vadd.f32 %v2813_v62, %v5915_v18  ;;  %2850 = vadd.xlane.f32.xlu1 %v6595_v20  ;;  %v5037_v62 = vld [vmem:[%s5905_s6 + $0xec] ss:$16 sps:$4 sm:$0xff]  }
 0x7df   : > { %2852 = vadd.xlane.f32.xlu0 %v6598_v58 }
 0x7e1   : > { %2856 = vadd.xlane.f32.xlu1 %v6602_v61 }
 0x7e3   : > { %2854 = vadd.xlane.f32.xlu0 %v6606_v5 }
 0x83a   : > { %v4762_v11 = vpop.f32.mrb[44].mxu0 }
 0x83b   : > { %v2825_v2 = vpop.f32.mrb[45].mxu0  ;;  %v2834_v19 = vadd.f32 %v4762_v11, %v4337_v4  ;;  %v5035_v11 = vld [vmem:[%s5905_s6 + $0xe8] ss:$16 sps:$4 sm:$0xff]  }
 0x83c   : > { %v2826_v18 = vadd.f32 %v4337_v4, %v2825_v2  ;;  %v4763_v22 = vpop.f32.mrb[46].mxu0 }
 0x83d   : > { %v2828_v7 = vpop.f32.mrb[47].mxu0  ;;  %v2837_v54 = vadd.f32 %v4763_v22, %v4337_v4  ;;  %v6618_v56 = vadd.f32 %v2834_v19, %v5927_v30  ;;  %v4996_v30 = vld [vmem:[%s5905_s6 + $0x20] ss:$16 sps:$4 sm:$0xff]  }
 0x83e   : > { %v6611_v39 = vadd.f32 %v2826_v18, %v5921_v26  ;;  %v2829_v15 = vadd.f32 %v4337_v4, %v2828_v7  ;;  %v4990_v26 = vld [vmem:[%s5905_s6] ss:$16 sps:$4 sm:$0xff]  }
 0x83f   : > { %v6622_v47 = vadd.f32 %v2837_v54, %v5930_v31  ;;  %3185 = vmatpush1.bf16.msra.mxu1 %v4990_v26  ;;  %v5020_v4 = vld [vmem:[%s5905_s6 + $0xa0] ss:$16 sps:$4 sm:$0xff]  }
 0x840   : > { %v6614_v63 = vadd.f32 %v2829_v15, %v5924_v29  ;;  %2858 = vadd.xlane.f32.xlu0 %v6611_v39  ;;  %v4993_v29 = vld [vmem:[%s5905_s6 + $0x8] ss:$16 sps:$4 sm:$0xff]   ;;  %3186 = vmatprep.subr.bf16.mxu1 %v4998_v17 }
 0x841   : > { %3258 = vmatpush1.bf16.msra.mxu0 %v4993_v29 }
 0x842   : > { %2860 = vadd.xlane.f32.xlu1 %v6614_v63  ;;  %3259 = vmatprep.subr.bf16.mxu0 %v5001_v23 }
 0x843   : > { %3187 = vmatpush1.bf16.msra.mxu1 %v4996_v30 }
 0x844   : > { %2862 = vadd.xlane.f32.xlu0 %v6618_v56  ;;  %3188 = vmatprep.subr.bf16.mxu1 %v5004_v10 }
 0x845   : > { %3260 = vmatpush1.bf16.msra.mxu0 %v4999_v60 }
 0x846   : > { %2864 = vadd.xlane.f32.xlu1 %v6622_v47  ;;  %3261 = vmatprep.subr.bf16.mxu0 %v5007_v50 }
 0x847   : > { %3189 = vmatpush1.bf16.msra.mxu1 %v5002_v3  ;;  %v6703_v3 = vld [vmem:[%s695_s17] ss:$0 sm:$0xff] }
 0x848   : > { %3190 = vmatprep.subr.bf16.mxu1 %v5010_v21 }
 0x849   : > { %3262 = vmatpush1.bf16.msra.mxu0 %v5005_v24 }
 0x84a   : > { %3263 = vmatprep.subr.bf16.mxu0 %v5013_v46 }
 0x84b   : > { %3191 = vmatpush1.bf16.msra.mxu1 %v5008_v28 }
 0x84c   : > { %3192 = vmatprep.subr.bf16.mxu1 %v5016_v40 }
 0x84d   : > { %3264 = vmatpush1.bf16.msra.mxu0 %v5011_v59  ;;  %v6713_v59 = vld [vmem:[%s698_s1] ss:$0 sm:$0xff] }
 0x84e   : > { %3265 = vmatprep.subr.bf16.mxu0 %v5019_v33 }
 0x84f   : > { %3193 = vmatpush1.bf16.msra.mxu1 %v5014_v35 }
 0x850   : > { %3194 = vmatprep.subr.bf16.mxu1 %v5022_v36 }
 0x851   : > { %3266 = vmatpush1.bf16.msra.mxu0 %v5017_v6 }
 0x852   : > { %3267 = vmatprep.subr.bf16.mxu0 %v5025_v55 }
 0x853   : > { %3195 = vmatpush1.bf16.msra.mxu1 %v5020_v4 }
 0x854   : > { %3196 = vmatprep.subr.bf16.mxu1 %v5028_v38 }
 0x855   : > { %3268 = vmatpush1.bf16.msra.mxu0 %v5023_v52 }
 0x856   : > { %3269 = vmatprep.subr.bf16.mxu0 %v5031_v34 }
 0x857   : > { %3197 = vmatpush1.bf16.msra.mxu1 %v5026_v13 }
 0x858   : > { %3198 = vmatprep.subr.bf16.mxu1 %v5034_v44 }
 0x859   : > { %3270 = vmatpush1.bf16.msra.mxu0 %v5029_v25 }
 0x85a   : > { %3271 = vmatprep.subr.bf16.mxu0 %v5037_v62 }
 0x85b   : > { %3199 = vmatpush1.bf16.msra.mxu1 %v5032_v8 }
 0x85d   : > { %3272 = vmatpush1.bf16.msra.mxu0 %v5035_v11 }
 0x86a   : > { %v2851_v31 = vpop.xlane.xlu1 %2850 }
 0x86b   : > { %v2866_v45 = vmul.f32 0.0078125, %v2851_v31 }
 0x86c   : > { %v2853_v1 = vpop.xlane.xlu0 %2852 }
 0x86d   : > { %v6635_v42 = vsub.f32 %v6595_v20, %v2866_v45  ;;  %v2867_v14 = vmul.f32 0.0078125, %v2853_v1 }
 0x86e   : > { %v2857_v49 = vpop.xlane.xlu1 %2856 }
 0x86f   : > { %v6638_v41 = vsub.f32 %v6598_v58, %v2867_v14  ;;  %v2869_v53 = vmul.f32 0.0078125, %v2857_v49  ;;  %v2882_v57 = vmul.f32 %v6635_v42, %v6635_v42 }
 0x870   : > { %v2855_v9 = vpop.xlane.xlu0 %2854 }
 0x871   : > { %v6643_v43 = vsub.f32 %v6602_v61, %v2869_v53  ;;  %v2868_v51 = vmul.f32 0.0078125, %v2855_v9  ;;  %2890 = vadd.xlane.f32.xlu0 %v2882_v57  ;;  %v2883_v16 = vmul.f32 %v6638_v41, %v6638_v41 }
 0x873   : > { %v6648_v48 = vsub.f32 %v6606_v5, %v2868_v51  ;;  %2892 = vadd.xlane.f32.xlu1 %v2883_v16  ;;  %v2885_v12 = vmul.f32 %v6643_v43, %v6643_v43 }
 0x875   : > { %v2884_v27 = vmul.f32 %v6648_v48, %v6648_v48 }
 0x877   : > { %2894 = vadd.xlane.f32.xlu0 %v2884_v27  ;;  %2896 = vadd.xlane.f32.xlu1 %v2885_v12 }
 0x8cd   : > { %v2859_v2 = vpop.xlane.xlu0 %2858 }
 0x8ce   : > { %v2870_v18 = vmul.f32 0.0078125, %v2859_v2 }
 0x8cf   : > { %v2861_v22 = vpop.xlane.xlu1 %2860 }
 0x8d0   : > { %v6679_v7 = vsub.f32 %v6611_v39, %v2870_v18  ;;  %v2871_v19 = vmul.f32 0.0078125, %v2861_v22 }
 0x8d1   : > { %v2863_v15 = vpop.xlane.xlu0 %2862 }
 0x8d2   : > { %v6682_v54 = vsub.f32 %v6614_v63, %v2871_v19  ;;  %v2872_v26 = vmul.f32 0.0078125, %v2863_v15  ;;  %v2886_v32 = vmul.f32 %v6679_v7, %v6679_v7 }
 0x8d3   : > { %v2865_v29 = vpop.xlane.xlu1 %2864 }
 0x8d4   : > { %v6687_v37 = vsub.f32 %v6618_v56, %v2872_v26  ;;  %v2873_v17 = vmul.f32 0.0078125, %v2865_v29  ;;  %2898 = vadd.xlane.f32.xlu0 %v2886_v32  ;;  %v2887_v23 = vmul.f32 %v6682_v54, %v6682_v54  ;;  %v5038_v29 = vld [vmem:[%s5907_s19 + $0x40] sm:$0xff]  }
 0x8d5   : > { %4508 = vmatprep.subr.bf16.mxu1 %v5038_v29 }
 0x8d6   : > { %v6692_v30 = vsub.f32 %v6622_v47, %v2873_v17  ;;  %2900 = vadd.xlane.f32.xlu1 %v2887_v23  ;;  %v2888_v60 = vmul.f32 %v6687_v37, %v6687_v37  ;;  %v5039_v17 = vld [vmem:[%s5907_s19 + $0xc0] sm:$0xff]  }
 0x8d7   : > { %4548 = vmatprep.subr.bf16.mxu0 %v5039_v17 }
 0x8d8   : > { %2902 = vadd.xlane.f32.xlu0 %v2888_v60  ;;  %v2889_v31 = vmul.f32 %v6692_v30, %v6692_v30  ;;  %v5040_v60 = vld [vmem:[%s5907_s19] sm:$0xff]  }
 0x8da   : > { %2904 = vadd.xlane.f32.xlu1 %v2889_v31  ;;  %v5041_v31 = vld [vmem:[%s5907_s19 + $0x80] sm:$0xff]  }
 0x8fe   : > { %v2891_v45 = vpop.xlane.xlu0 %2890 }
 0x8ff   : > { %v2906_v1 = vmul.f32 0.0078125, %v2891_v45 }
 0x900   : > { %v2893_v14 = vpop.xlane.xlu1 %2892 }
 0x901   : > { %v2914_v49 = vadd.f32 1e-05, %v2906_v1  ;;  %v2907_v53 = vmul.f32 0.0078125, %v2893_v14 }
 0x903   : > { %5214 = vrsqrt.f32 %v2914_v49  ;;  %v2915_v57 = vadd.f32 1e-05, %v2907_v53  ;;  %v5042_v53 = vld [vmem:[%s5907_s19 + $0x48] sm:$0xff]  }
 0x904   : > { %v2895_v9 = vpop.xlane.xlu0 %2894  ;;  %v2897_v51 = vpop.xlane.xlu1 %2896 }
 0x905   : > { %5216 = vrsqrt.f32 %v2915_v57  ;;  %v2908_v16 = vmul.f32 0.0078125, %v2895_v9  ;;  %v2909_v27 = vmul.f32 0.0078125, %v2897_v51  ;;  %v5043_v57 = vld [vmem:[%s5907_s19 + $0xc8] sm:$0xff]  }
 0x907   : > { %v2916_v12 = vadd.f32 1e-05, %v2908_v16  ;;  %v2917_v10 = vadd.f32 1e-05, %v2909_v27  ;;  %v5044_v27 = vld [vmem:[%s5907_s19 + $0x8] sm:$0xff]  }
 0x909   : > { %5218 = vrsqrt.f32 %v2916_v12  ;;  %v5045_v12 = vld [vmem:[%s5907_s19 + $0x88] sm:$0xff]  }
 0x90a   : > { %5220 = vrsqrt.f32 %v2917_v10 }
 0x90d   : > { %v5215_v50 = vpop.eup %5214 }
 0x90e   : > { %v2930_v24 = vmul.f32 %v5215_v50, %v6635_v42 }
 0x90f   : > { %v5217_v21 = vpop.eup %5216 }
 0x910   : > { %v2931_v46 = vmul.f32 %v5217_v21, %v6638_v41  ;;  %v2944_v28 = vmul.f32 %v6703_v3, %v2930_v24 }
 0x912   : > { %v2945_v40 = vmul.f32 %v6703_v3, %v2931_v46  ;;  %v2958_v6 = vadd.f32 %v6713_v59, %v2944_v28  ;;  %v5046_v46 = vld [vmem:[%s5907_s19 + $0x50] sm:$0xff]  }
 0x913   : > { %v5219_v33 = vpop.eup %5218  ;;  %v5047_v28 = vld [vmem:[%s5907_s19 + $0xd0] sm:$0xff]  }
 0x914   : > { %v5221_v35 = vpop.eup %5220  ;;  %v2959_v36 = vadd.f32 %v6713_v59, %v2945_v40  ;;  %v2932_v42 = vmul.f32 %v5219_v33, %v6648_v48  ;;  %v5049_v40 = vld [vmem:[%s5907_s19 + $0x90] sm:$0xff]   ;;  %v5051_v33 = vld [vmem:[%s5907_s19 + $0xd8] sm:$0xff]  }
 0x915   : > { %v2933_v41 = vmul.f32 %v5221_v35, %v6643_v43  ;;  %v5053_v35 = vld [vmem:[%s5907_s19 + $0x98] sm:$0xff]  }
 0x916   : > { %v2966_v55 = vpack.c.bf16 %v2959_v36, %v2958_v6  ;;  %v2946_v4 = vmul.f32 %v6703_v3, %v2932_v42  ;;  %v5054_v6 = vld [vmem:[%s5907_s19 + $0x60] sm:$0xff]  }
 0x917   : > { %v2947_v52 = vmul.f32 %v6703_v3, %v2933_v41  ;;  %v5055_v36 = vld [vmem:[%s5907_s19 + $0xe0] sm:$0xff]  }
 0x918   : > { %3217 = vmatmul.mubr.bf16.vlgmr.msra.gmra.mrb[48].mxu1 %v2966_v55  ;;  %3290 = vmatmul.mubr.bf16.vlgmr.msra.gmra.mrb[48].mxu0 %v2966_v55  ;;  %v2960_v38 = vadd.f32 %v6713_v59, %v2946_v4  ;;  %v5056_v42 = vld [vmem:[%s5907_s19 + $0x20] sm:$0xff]   ;;  %v5058_v55 = vld [vmem:[%s5907_s19 + $0x68] sm:$0xff]  }
 0x919   : > { %3226 = vmatprep.mubr.bf16.mxu1 %v7185_v0  ;;  %3299 = vmatprep.mubr.bf16.mxu0 %v7185_v0  ;;  %v2961_v34 = vadd.f32 %v6713_v59, %v2947_v52  ;;  %v5057_v41 = vld [vmem:[%s5907_s19 + $0xa0] sm:$0xff]   ;;  %v5059_v4 = vld [vmem:[%s5907_s19 + $0xe8] sm:$0xff]  }
 0x91a   : > { %4509 = vmatpush3.bf16.msra.mxu1 %v5040_v60  ;;  %4549 = vmatpush3.bf16.msra.mxu0 %v5041_v31  ;;  %v5060_v52 = vld [vmem:[%s5907_s19 + $0x28] sm:$0xff]  }
 0x91b   : > { %v2967_v13 = vpack.c.bf16 %v2961_v34, %v2960_v38  ;;  %4510 = vmatprep.subr.bf16.mxu1 %v5042_v53  ;;  %4550 = vmatprep.subr.bf16.mxu0 %v5043_v57  ;;  %v5061_v38 = vld [vmem:[%s5907_s19 + $0xa8] sm:$0xff]   ;;  %v5062_v34 = vld [vmem:[%s5907_s19 + $0x70] sm:$0xff]  }
 0x91e   : > { %4511 = vmatpush3.bf16.msra.mxu1 %v5044_v27  ;;  %4551 = vmatpush3.bf16.msra.mxu0 %v5045_v12 }
 0x91f   : > { %4512 = vmatprep.subr.bf16.mxu1 %v5046_v46  ;;  %4552 = vmatprep.subr.bf16.mxu0 %v5047_v28 }
 0x920   : > { %3227 = vmatmul.mubr.bf16.gmra.mrb[52].mxu1 %v2967_v13  ;;  %3300 = vmatmul.mubr.bf16.gmra.mrb[52].mxu0 %v2967_v13  ;;  %v5063_v13 = vld [vmem:[%s5907_s19 + $0xf0] sm:$0xff]  }
 0x921   : > { %3236 = vmatprep.mubr.bf16.mxu1 %v7185_v0  ;;  %3309 = vmatprep.mubr.bf16.mxu0 %v7185_v0 }
 0x922   : > { %4553 = vmatpush3.bf16.msra.mxu0 %v5049_v40 }
 0x923   : > { %4554 = vmatprep.subr.bf16.mxu0 %v5051_v33 }
 0x926   : > { %4555 = vmatpush3.bf16.msra.mxu0 %v5053_v35 }
 0x927   : > { %4556 = vmatprep.subr.bf16.mxu0 %v5055_v36 }
 0x92a   : > { %4557 = vmatpush3.bf16.msra.mxu0 %v5057_v41 }
 0x92b   : > { %4558 = vmatprep.subr.bf16.mxu0 %v5059_v4 }
 0x92e   : > { %4559 = vmatpush3.bf16.msra.mxu0 %v5061_v38 }
 0x92f   : > { %4560 = vmatprep.subr.bf16.mxu0 %v5063_v13 }
 0x961   : > { %v2899_v43 = vpop.xlane.xlu0 %2898 }
 0x962   : > { %v2910_v48 = vmul.f32 0.0078125, %v2899_v43  ;;  %v5064_v43 = vld [vmem:[%s5907_s19 + $0x30] sm:$0xff]  }
 0x963   : > { %v2901_v25 = vpop.xlane.xlu1 %2900 }
 0x964   : > { %v2918_v44 = vadd.f32 1e-05, %v2910_v48  ;;  %v2911_v62 = vmul.f32 0.0078125, %v2901_v25  ;;  %v5065_v48 = vld [vmem:[%s5907_s19 + $0xb0] sm:$0xff]   ;;  %v5066_v25 = vld [vmem:[%s5907_s19 + $0x78] sm:$0xff]  }
 0x965   : > { %v2903_v8 = vpop.xlane.xlu0 %2902  ;;  %4561 = vmatpush3.bf16.msra.mxu0 %v5065_v48 }
 0x966   : > { %5222 = vrsqrt.f32 %v2918_v44  ;;  %v2919_v11 = vadd.f32 1e-05, %v2911_v62  ;;  %v2912_v2 = vmul.f32 0.0078125, %v2903_v8  ;;  %v5067_v44 = vld [vmem:[%s5907_s19 + $0xf8] sm:$0xff]  }
 0x967   : > { %v2905_v18 = vpop.xlane.xlu1 %2904  ;;  %v5068_v62 = vld [vmem:[%s5907_s19 + $0x38] sm:$0xff]   ;;  %4562 = vmatprep.subr.bf16.mxu0 %v5067_v44 }
 0x968   : > { %5224 = vrsqrt.f32 %v2919_v11  ;;  %v2920_v22 = vadd.f32 1e-05, %v2912_v2  ;;  %v2913_v19 = vmul.f32 0.0078125, %v2905_v18  ;;  %v5069_v8 = vld [vmem:[%s5907_s19 + $0xb8] sm:$0xff]   ;;  %v3004_v11 = vlaneseq }
 0x969   : > { %4563 = vmatpush3.bf16.msra.mxu0 %v5069_v8 }
 0x96a   : > { %5226 = vrsqrt.f32 %v2920_v22  ;;  %v2921_v15 = vadd.f32 1e-05, %v2913_v19  ;;  %v3005_v2 = vshrl.u32 %v3004_v11, 7  ;;  %v3002_v19 = vld [vmem:[%s5899_s29] sm:$0xf] }
 0x96c   : > { %5228 = vrsqrt.f32 %v2921_v15  ;;  %v3006_v18 = vsub.s32 0, %v3005_v2  ;;  %v3014_v22 = vsub.s32 2, %v3005_v2  ;;  %v3010_v15 = vsub.s32 1, %v3005_v2 }
 0x96e   : > { %v6777_v29 = vrot.slane %v3002_v19, %v3014_v22  ;;  %v6779_v17 = vrot.slane %v3002_v19, %v3010_v15 }
 0x970   : > { %v5223_v26 = vpop.eup %5222 }
 0x971   : > { %v2934_v32 = vmul.f32 %v5223_v26, %v6679_v7  ;;  %v3018_v26 = vsub.s32 3, %v3005_v2 }
 0x972   : > { %v5225_v23 = vpop.eup %5224 }
 0x973   : > { %v2935_v45 = vmul.f32 %v5225_v23, %v6682_v54  ;;  %v2948_v1 = vmul.f32 %v6703_v3, %v2934_v32  ;;  %v6775_v32 = vrot.slane %v3002_v19, %v3006_v18  ;;  %v6781_v23 = vrot.slane %v3002_v19, %v3018_v26 }
 0x974   : > { %v5227_v14 = vpop.eup %5226 }
 0x975   : > { %v2949_v49 = vmul.f32 %v6703_v3, %v2935_v45  ;;  %v2962_v9 = vadd.f32 %v6713_v59, %v2948_v1  ;;  %v2936_v54 = vmul.f32 %v5227_v14, %v6687_v37 }
 0x976   : > { %v5229_v7 = vpop.eup %5228 }
 0x977   : > { %v2963_v51 = vadd.f32 %v6713_v59, %v2949_v49  ;;  %v2937_v16 = vmul.f32 %v5229_v7, %v6692_v30  ;;  %v2950_v24 = vmul.f32 %v6703_v3, %v2936_v54 }
 0x979   : > { %v2968_v10 = vpack.c.bf16 %v2963_v51, %v2962_v9  ;;  %v2951_v50 = vmul.f32 %v6703_v3, %v2937_v16  ;;  %v2964_v30 = vadd.f32 %v6713_v59, %v2950_v24  ;;  %v5048_v3 = vld [vmem:[%s5907_s19 + $0x10] sm:$0xff]  }
 0x97a   : > { %4513 = vmatpush3.bf16.msra.mxu1 %v5048_v3 }
 0x97b   : > { %3237 = vmatmul.mubr.bf16.gmra.mrb[56].mxu1 %v2968_v10  ;;  %3310 = vmatmul.mubr.bf16.gmra.mrb[56].mxu0 %v2968_v10  ;;  %v2965_v37 = vadd.f32 %v6713_v59, %v2951_v50  ;;  %v5052_v59 = vld [vmem:[%s5907_s19 + $0x18] sm:$0xff]  }
 0x97c   : > { %3246 = vmatprep.mubr.bf16.mxu1 %v7185_v0  ;;  %3319 = vmatprep.mubr.bf16.mxu0 %v7185_v0  ;;  %v5050_v0 = vld [vmem:[%s5907_s19 + $0x58] sm:$0xff]  }
 0x97d   : > { %v2969_v21 = vpack.c.bf16 %v2965_v37, %v2964_v30  ;;  %4514 = vmatprep.subr.bf16.mxu1 %v5050_v0 }
 0x97e   : > { %4515 = vmatpush3.bf16.msra.mxu1 %v5052_v59 }
 0x97f   : > { %4516 = vmatprep.subr.bf16.mxu1 %v5054_v6 }
 0x982   : > { %4517 = vmatpush3.bf16.msra.mxu1 %v5056_v42 }
 0x983   : > { %3247 = vmatmul.mubr.bf16.gmra.mrb[60].mxu1 %v2969_v21  ;;  %3320 = vmatmul.mubr.bf16.gmra.mrb[60].mxu0 %v2969_v21 }
 0x984   : > { %4518 = vmatprep.subr.bf16.mxu1 %v5058_v55 }
 0x986   : > { %4519 = vmatpush3.bf16.msra.mxu1 %v5060_v52 }
 0x987   : > { %4520 = vmatprep.subr.bf16.mxu1 %v5062_v34 }
 0x98a   : > { %4521 = vmatpush3.bf16.msra.mxu1 %v5064_v43 }
 0x98b   : > { %4522 = vmatprep.subr.bf16.mxu1 %v5066_v25 }
 0x98e   : > { %4523 = vmatpush3.bf16.msra.mxu1 %v5068_v62 }
 0x9eb   : > { %v3218_v60 = vpop.f32.mrb[48].mxu1  ;;  %v3291_v31 = vpop.f32.mrb[48].mxu0 }
 0x9ec   : > { %v6784_v45 = vadd.f32 %v3218_v60, %v6775_v32  ;;  %v6787_v1 = vadd.f32 %v3291_v31, %v6777_v29  ;;  %v3220_v14 = vpop.f32.mrb[49].mxu1  ;;  %v3293_v49 = vpop.f32.mrb[49].mxu0 }
 0x9ed   : > { %v6790_v7 = vadd.f32 %v3220_v14, %v6779_v17  ;;  %v6793_v53 = vadd.f32 %v3293_v49, %v6781_v23  ;;  %v3222_v57 = vpop.f32.mrb[50].mxu1  ;;  %v3295_v9 = vpop.f32.mrb[50].mxu0 }
 0x9ee   : > { %v3330_v51 = vmul.f32 %v6784_v45, %v6784_v45  ;;  %v3332_v54 = vmul.f32 %v6787_v1, %v6787_v1  ;;  %v6800_v16 = vadd.f32 %v3222_v57, %v6775_v32  ;;  %v6803_v27 = vadd.f32 %v3295_v9, %v6777_v29  ;;  %v3224_v12 = vpop.f32.mrb[51].mxu1  ;;  %v3297_v10 = vpop.f32.mrb[51].mxu0 }
 0x9ef   : > { %v3331_v50 = vmul.f32 %v6790_v7, %v6790_v7  ;;  %v3333_v24 = vmul.f32 %v6793_v53, %v6793_v53  ;;  %v6810_v37 = vadd.f32 %v3224_v12, %v6779_v17  ;;  %v6813_v30 = vadd.f32 %v3297_v10, %v6781_v23 }
 0x9f0   : > { %v3362_v21 = vmul.f32 %v3330_v51, %v6784_v45  ;;  %v3364_v46 = vmul.f32 %v3332_v54, %v6787_v1  ;;  %v3334_v28 = vmul.f32 %v6800_v16, %v6800_v16  ;;  %v3336_v3 = vmul.f32 %v6803_v27, %v6803_v27 }
 0x9f1   : > { %v3363_v40 = vmul.f32 %v3331_v50, %v6790_v7  ;;  %v3365_v0 = vmul.f32 %v3333_v24, %v6793_v53  ;;  %v3335_v33 = vmul.f32 %v6810_v37, %v6810_v37  ;;  %v3337_v59 = vmul.f32 %v6813_v30, %v6813_v30 }
 0x9f2   : > { %v3394_v35 = vmul.f32 0.044715, %v3362_v21  ;;  %v3396_v6 = vmul.f32 0.044715, %v3364_v46  ;;  %v3366_v36 = vmul.f32 %v3334_v28, %v6800_v16  ;;  %v3368_v42 = vmul.f32 %v3336_v3, %v6803_v27 }
 0x9f3   : > { %v3395_v41 = vmul.f32 0.044715, %v3363_v40  ;;  %v3397_v55 = vmul.f32 0.044715, %v3365_v0  ;;  %v3367_v4 = vmul.f32 %v3335_v33, %v6810_v37  ;;  %v3369_v52 = vmul.f32 %v3337_v59, %v6813_v30  ;;  %v3228_v38 = vpop.f32.mrb[52].mxu1  ;;  %v3301_v34 = vpop.f32.mrb[52].mxu0 }
 0x9f4   : > { %v3426_v13 = vadd.f32 %v3394_v35, %v6784_v45  ;;  %v3428_v43 = vadd.f32 %v3396_v6, %v6787_v1  ;;  %v3398_v48 = vmul.f32 0.044715, %v3366_v36  ;;  %v3400_v25 = vmul.f32 0.044715, %v3368_v42  ;;  %v3230_v44 = vpop.f32.mrb[53].mxu1  ;;  %v3303_v62 = vpop.f32.mrb[53].mxu0 }
 0x9f5   : > { %v3427_v8 = vadd.f32 %v3395_v41, %v6790_v7  ;;  %v3429_v11 = vadd.f32 %v3397_v55, %v6793_v53  ;;  %v3399_v2 = vmul.f32 0.044715, %v3367_v4  ;;  %v3401_v18 = vmul.f32 0.044715, %v3369_v52  ;;  %v3232_v22 = vpop.f32.mrb[54].mxu1  ;;  %v3305_v19 = vpop.f32.mrb[54].mxu0 }
 0x9f6   : > { %v3458_v15 = vmul.f32 0.7978846, %v3426_v13  ;;  %v3460_v26 = vmul.f32 0.7978846, %v3428_v43  ;;  %v3430_v60 = vadd.f32 %v3398_v48, %v6800_v16  ;;  %v3432_v31 = vadd.f32 %v3400_v25, %v6803_v27  ;;  %v3234_v14 = vpop.f32.mrb[55].mxu1  ;;  %v3307_v49 = vpop.f32.mrb[55].mxu0 }
 0x9f7   : > { %v3459_v57 = vmul.f32 0.7978846, %v3427_v8  ;;  %v3461_v9 = vmul.f32 0.7978846, %v3429_v11  ;;  %v3431_v51 = vadd.f32 %v3399_v2, %v6810_v37  ;;  %v3433_v54 = vadd.f32 %v3401_v18, %v6813_v30 }
 0x9f8   : > { %5230 = vtanh.f32 %v3458_v15  ;;  %v3462_v12 = vmul.f32 0.7978846, %v3430_v60  ;;  %v3464_v10 = vmul.f32 0.7978846, %v3432_v31  ;;  %v6840_v50 = vadd.f32 %v3228_v38, %v6775_v32 }
 0x9f9   : > { %5232 = vtanh.f32 %v3460_v26  ;;  %v3463_v24 = vmul.f32 0.7978846, %v3431_v51  ;;  %v3465_v21 = vmul.f32 0.7978846, %v3433_v54  ;;  %v6843_v46 = vadd.f32 %v3301_v34, %v6777_v29 }
 0x9fa   : > { %5234 = vtanh.f32 %v3459_v57  ;;  %v3338_v28 = vmul.f32 %v6840_v50, %v6840_v50  ;;  %v6848_v3 = vadd.f32 %v3230_v44, %v6779_v17  ;;  %v6851_v40 = vadd.f32 %v3303_v62, %v6781_v23 }
 0x9fb   : > { %5236 = vtanh.f32 %v3461_v9  ;;  %v3340_v0 = vmul.f32 %v6843_v46, %v6843_v46  ;;  %v6856_v33 = vadd.f32 %v3232_v22, %v6775_v32  ;;  %v6859_v59 = vadd.f32 %v3305_v19, %v6777_v29 }
 0x9fc   : > { %5238 = vtanh.f32 %v3462_v12  ;;  %v3370_v35 = vmul.f32 %v3338_v28, %v6840_v50  ;;  %v3339_v6 = vmul.f32 %v6848_v3, %v6848_v3  ;;  %v3341_v36 = vmul.f32 %v6851_v40, %v6851_v40 }
 0x9fd   : > { %5240 = vtanh.f32 %v3464_v10  ;;  %v3372_v42 = vmul.f32 %v3340_v0, %v6843_v46  ;;  %v3342_v41 = vmul.f32 %v6856_v33, %v6856_v33  ;;  %v3344_v55 = vmul.f32 %v6859_v59, %v6859_v59 }
 0x9fe   : > { %5242 = vtanh.f32 %v3463_v24  ;;  %v3402_v4 = vmul.f32 0.044715, %v3370_v35  ;;  %v3371_v52 = vmul.f32 %v3339_v6, %v6848_v3  ;;  %v3373_v38 = vmul.f32 %v3341_v36, %v6851_v40 }
 0x9ff   : > { %5244 = vtanh.f32 %v3465_v21  ;;  %v3404_v34 = vmul.f32 0.044715, %v3372_v42  ;;  %v3374_v13 = vmul.f32 %v3342_v41, %v6856_v33  ;;  %v3376_v43 = vmul.f32 %v3344_v55, %v6859_v59 }
 0xa00   : > { %v3434_v48 = vadd.f32 %v3402_v4, %v6840_v50  ;;  %v3403_v25 = vmul.f32 0.044715, %v3371_v52  ;;  %v3405_v44 = vmul.f32 0.044715, %v3373_v38  ;;  %v6877_v62 = vadd.f32 %v3234_v14, %v6779_v17 }
 0xa01   : > { %v3436_v8 = vadd.f32 %v3404_v34, %v6843_v46  ;;  %v3406_v11 = vmul.f32 0.044715, %v3374_v13  ;;  %v3408_v2 = vmul.f32 0.044715, %v3376_v43  ;;  %v6881_v18 = vadd.f32 %v3307_v49, %v6781_v23 }
 0xa02   : > { %v5231_v22 = vpop.eup %5230  ;;  %v3466_v19 = vmul.f32 0.7978846, %v3434_v48  ;;  %v3435_v15 = vadd.f32 %v3403_v25, %v6848_v3  ;;  %v3437_v26 = vadd.f32 %v3405_v44, %v6851_v40  ;;  %v3343_v60 = vmul.f32 %v6877_v62, %v6877_v62 }
 0xa03   : > { %v5233_v31 = vpop.eup %5232  ;;  %v3522_v57 = vadd.f32 1.0, %v5231_v22  ;;  %v3468_v14 = vmul.f32 0.7978846, %v3436_v8  ;;  %v3438_v9 = vadd.f32 %v3406_v11, %v6856_v33  ;;  %v3440_v51 = vadd.f32 %v3408_v2, %v6859_v59 }
 0xa04   : > { %v5235_v54 = vpop.eup %5234  ;;  %v3524_v12 = vadd.f32 1.0, %v5233_v31  ;;  %5246 = vtanh.f32 %v3466_v19  ;;  %v3467_v49 = vmul.f32 0.7978846, %v3435_v15  ;;  %v3469_v10 = vmul.f32 0.7978846, %v3437_v26 }
 0xa05   : > { %v5237_v24 = vpop.eup %5236  ;;  %v3554_v21 = vmul.f32 0.5, %v3522_v57  ;;  %5248 = vtanh.f32 %v3468_v14  ;;  %v3470_v28 = vmul.f32 0.7978846, %v3438_v9  ;;  %v3472_v0 = vmul.f32 0.7978846, %v3440_v51 }
 0xa06   : > { %v5239_v35 = vpop.eup %5238  ;;  %v3556_v6 = vmul.f32 0.5, %v3524_v12  ;;  %5250 = vtanh.f32 %v3467_v49  ;;  %v3375_v36 = vmul.f32 %v3343_v60, %v6877_v62  ;;  %v3345_v42 = vmul.f32 %v6881_v18, %v6881_v18 }
 0xa07   : > { %v5241_v41 = vpop.eup %5240  ;;  %v3586_v55 = vmul.f32 %v3554_v21, %v6784_v45  ;;  %v3526_v4 = vadd.f32 1.0, %v5239_v35  ;;  %5252 = vtanh.f32 %v3469_v10  ;;  %v3523_v52 = vadd.f32 1.0, %v5235_v54 }
 0xa08   : > { %v5243_v38 = vpop.eup %5242  ;;  %v3588_v34 = vmul.f32 %v3556_v6, %v6787_v1  ;;  %v3528_v13 = vadd.f32 1.0, %v5241_v41  ;;  %5254 = vtanh.f32 %v3470_v28  ;;  %v3407_v43 = vmul.f32 0.044715, %v3375_v36 }
 0xa09   : > { %v5245_v48 = vpop.eup %5244  ;;  %v3558_v25 = vmul.f32 0.5, %v3526_v4  ;;  %5256 = vtanh.f32 %v3472_v0  ;;  %v3377_v44 = vmul.f32 %v3345_v42, %v6881_v18  ;;  %v3527_v8 = vadd.f32 1.0, %v5243_v38 }
 0xa0a   : > { %v3560_v11 = vmul.f32 0.5, %v3528_v13  ;;  %v3439_v2 = vadd.f32 %v3407_v43, %v6877_v62  ;;  %v3555_v22 = vmul.f32 0.5, %v3523_v52  ;;  %v3525_v45 = vadd.f32 1.0, %v5237_v24 }
 0xa0b   : > { %v3590_v19 = vmul.f32 %v3558_v25, %v6800_v16  ;;  %v3409_v15 = vmul.f32 0.044715, %v3377_v44  ;;  %v3559_v26 = vmul.f32 0.5, %v3527_v8  ;;  %v3529_v60 = vadd.f32 1.0, %v5245_v48 }
 0xa0c   : > { %v3592_v1 = vmul.f32 %v3560_v11, %v6803_v27  ;;  %v3471_v31 = vmul.f32 0.7978846, %v3439_v2  ;;  %v3587_v57 = vmul.f32 %v3555_v22, %v6790_v7  ;;  %v3557_v14 = vmul.f32 0.5, %v3525_v45 }
 0xa0d   : > { %v3618_v9 = vpack.c.bf16 %v3590_v19, %v3586_v55  ;;  %v3441_v51 = vadd.f32 %v3409_v15, %v6881_v18  ;;  %v3591_v54 = vmul.f32 %v3559_v26, %v6810_v37  ;;  %v3561_v12 = vmul.f32 0.5, %v3529_v60 }
 0xa0e   : > { %v5247_v49 = vpop.eup %5246  ;;  %v3620_v10 = vpack.c.bf16 %v3592_v1, %v3588_v34  ;;  %5258 = vtanh.f32 %v3471_v31  ;;  %v3589_v16 = vmul.f32 %v3557_v14, %v6793_v53 }
 0xa0f   : > { %v5249_v24 = vpop.eup %5248  ;;  %v3473_v21 = vmul.f32 0.7978846, %v3441_v51  ;;  %v3619_v28 = vpack.c.bf16 %v3591_v54, %v3587_v57  ;;  %v3593_v27 = vmul.f32 %v3561_v12, %v6813_v30  ;;  %v3530_v0 = vadd.f32 1.0, %v5247_v49 }
 0xa10   : > { %v5251_v35 = vpop.eup %5250  ;;  %v3532_v7 = vadd.f32 1.0, %v5249_v24 }
 0xa11   : > { %v5253_v6 = vpop.eup %5252  ;;  %5260 = vtanh.f32 %v3473_v21  ;;  %3929 = vmatprep.mubr.bf16.mxu1 %v3619_v28  ;;  %v3621_v36 = vpack.c.bf16 %v3593_v27, %v3589_v16  ;;  %v3562_v55 = vmul.f32 0.5, %v3530_v0  ;;  %v3531_v52 = vadd.f32 1.0, %v5251_v35 }
 0xa12   : > { %v5255_v42 = vpop.eup %5254  ;;  %3930 = vmatmul.mubr.bf16.vlgmr.msra.gmra.mrb[64].mxu1 %v3618_v9  ;;  %v3564_v4 = vmul.f32 0.5, %v3532_v7  ;;  %v3533_v48 = vadd.f32 1.0, %v5253_v6 }
 0xa13   : > { %v5257_v37 = vpop.eup %5256  ;;  %3994 = vmatprep.mubr.bf16.mxu0 %v3621_v36  ;;  %v3534_v41 = vadd.f32 1.0, %v5255_v42  ;;  %v3594_v30 = vmul.f32 %v3562_v55, %v6840_v50  ;;  %v3563_v11 = vmul.f32 0.5, %v3531_v52 }
 0xa14   : > { %3995 = vmatmul.mubr.bf16.vlgmr.msra.gmra.mrb[64].mxu0 %v3620_v10  ;;  %v3536_v53 = vadd.f32 1.0, %v5257_v37  ;;  %v3596_v25 = vmul.f32 %v3564_v4, %v6843_v46  ;;  %v3565_v26 = vmul.f32 0.5, %v3533_v48 }
 0xa15   : > { %v3566_v38 = vmul.f32 0.5, %v3534_v41  ;;  %v3595_v60 = vmul.f32 %v3563_v11, %v6848_v3 }
 0xa16   : > { %v3568_v34 = vmul.f32 0.5, %v3536_v53  ;;  %v3597_v31 = vmul.f32 %v3565_v26, %v6851_v40 }
 0xa17   : > { %v3598_v13 = vmul.f32 %v3566_v38, %v6856_v33 }
 0xa18   : > { %v5259_v43 = vpop.eup %5258  ;;  %v3600_v44 = vmul.f32 %v3568_v34, %v6859_v59 }
 0xa19   : > { %v3535_v8 = vadd.f32 1.0, %v5259_v43  ;;  %v3622_v2 = vpack.c.bf16 %v3598_v13, %v3594_v30 }
 0xa1a   : > { %v3624_v22 = vpack.c.bf16 %v3600_v44, %v3596_v25 }
 0xa1b   : > { %v5261_v45 = vpop.eup %5260  ;;  %v3567_v19 = vmul.f32 0.5, %v3535_v8 }
 0xa1c   : > { %v3537_v15 = vadd.f32 1.0, %v5261_v45 }
 0xa1d   : > { %v3599_v50 = vmul.f32 %v3567_v19, %v6877_v62 }
 0xa1e   : > { %v3569_v1 = vmul.f32 0.5, %v3537_v15 }
 0xa1f   : > { %v3623_v33 = vpack.c.bf16 %v3599_v50, %v3595_v60 }
 0xa20   : > { %v3601_v46 = vmul.f32 %v3569_v1, %v6881_v18 }
 0xa21   : > { %3937 = vmatprep.mubr.bf16.mxu1 %v3623_v33 }
 0xa22   : > { %v3625_v59 = vpack.c.bf16 %v3601_v46, %v3597_v31  ;;  %3938 = vmatmul.mubr.bf16.gmra.mrb[68].mxu1 %v3622_v2 }
 0xa24   : > { %4002 = vmatprep.mubr.bf16.mxu0 %v3625_v59 }
 0xa25   : > { %4003 = vmatmul.mubr.bf16.gmra.mrb[68].mxu0 %v3624_v22 }
 0xa4e   : > { %v3238_v57 = vpop.f32.mrb[56].mxu1  ;;  %v3311_v14 = vpop.f32.mrb[56].mxu0 }
 0xa4f   : > { %v6912_v9 = vadd.f32 %v3238_v57, %v6775_v32  ;;  %v6915_v3 = vadd.f32 %v3311_v14, %v6777_v29  ;;  %v3240_v62 = vpop.f32.mrb[57].mxu1  ;;  %v3313_v51 = vpop.f32.mrb[57].mxu0 }
 0xa50   : > { %v6918_v54 = vadd.f32 %v3240_v62, %v6779_v17  ;;  %v6921_v40 = vadd.f32 %v3313_v51, %v6781_v23  ;;  %v3242_v18 = vpop.f32.mrb[58].mxu1  ;;  %v3315_v12 = vpop.f32.mrb[58].mxu0 }
 0xa51   : > { %v3346_v49 = vmul.f32 %v6912_v9, %v6912_v9  ;;  %v3348_v10 = vmul.f32 %v6915_v3, %v6915_v3  ;;  %v6928_v16 = vadd.f32 %v3242_v18, %v6775_v32  ;;  %v6931_v24 = vadd.f32 %v3315_v12, %v6777_v29  ;;  %v3244_v21 = vpop.f32.mrb[59].mxu1  ;;  %v3317_v28 = vpop.f32.mrb[59].mxu0 }
 0xa52   : > { %v3347_v27 = vmul.f32 %v6918_v54, %v6918_v54  ;;  %v3349_v0 = vmul.f32 %v6921_v40, %v6921_v40  ;;  %v6938_v35 = vadd.f32 %v3244_v21, %v6779_v17  ;;  %v6941_v7 = vadd.f32 %v3317_v28, %v6781_v23 }
 0xa53   : > { %v3378_v6 = vmul.f32 %v3346_v49, %v6912_v9  ;;  %v3380_v36 = vmul.f32 %v3348_v10, %v6915_v3  ;;  %v3350_v42 = vmul.f32 %v6928_v16, %v6928_v16  ;;  %v3352_v37 = vmul.f32 %v6931_v24, %v6931_v24 }
 0xa54   : > { %v3379_v41 = vmul.f32 %v3347_v27, %v6918_v54  ;;  %v3381_v55 = vmul.f32 %v3349_v0, %v6921_v40  ;;  %v3351_v53 = vmul.f32 %v6938_v35, %v6938_v35  ;;  %v3353_v4 = vmul.f32 %v6941_v7, %v6941_v7 }
 0xa55   : > { %v3410_v52 = vmul.f32 0.044715, %v3378_v6  ;;  %v3412_v38 = vmul.f32 0.044715, %v3380_v36  ;;  %v3382_v34 = vmul.f32 %v3350_v42, %v6928_v16  ;;  %v3384_v30 = vmul.f32 %v3352_v37, %v6931_v24 }
 0xa56   : > { %v3411_v13 = vmul.f32 0.044715, %v3379_v41  ;;  %v3413_v43 = vmul.f32 0.044715, %v3381_v55  ;;  %v3383_v48 = vmul.f32 %v3351_v53, %v6938_v35  ;;  %v3385_v25 = vmul.f32 %v3353_v4, %v6941_v7  ;;  %v3248_v44 = vpop.f32.mrb[60].mxu1  ;;  %v3321_v8 = vpop.f32.mrb[60].mxu0 }
 0xa57   : > { %v3442_v11 = vadd.f32 %v3410_v52, %v6912_v9  ;;  %v3444_v2 = vadd.f32 %v3412_v38, %v6915_v3  ;;  %v3414_v22 = vmul.f32 0.044715, %v3382_v34  ;;  %v3416_v45 = vmul.f32 0.044715, %v3384_v30  ;;  %v3250_v19 = vpop.f32.mrb[61].mxu1  ;;  %v3323_v15 = vpop.f32.mrb[61].mxu0 }
 0xa58   : > { %v3443_v26 = vadd.f32 %v3411_v13, %v6918_v54  ;;  %v3445_v60 = vadd.f32 %v3413_v43, %v6921_v40  ;;  %v3415_v50 = vmul.f32 0.044715, %v3383_v48  ;;  %v3417_v1 = vmul.f32 0.044715, %v3385_v25  ;;  %v3252_v33 = vpop.f32.mrb[62].mxu1  ;;  %v3325_v31 = vpop.f32.mrb[62].mxu0 }
 0xa59   : > { %v3474_v46 = vmul.f32 0.7978846, %v3442_v11  ;;  %v3476_v59 = vmul.f32 0.7978846, %v3444_v2  ;;  %v3446_v57 = vadd.f32 %v3414_v22, %v6928_v16  ;;  %v3448_v14 = vadd.f32 %v3416_v45, %v6931_v24  ;;  %v3254_v62 = vpop.f32.mrb[63].mxu1  ;;  %v3327_v51 = vpop.f32.mrb[63].mxu0 }
 0xa5a   : > { %v3475_v18 = vmul.f32 0.7978846, %v3443_v26  ;;  %v3477_v12 = vmul.f32 0.7978846, %v3445_v60  ;;  %v3447_v49 = vadd.f32 %v3415_v50, %v6938_v35  ;;  %v3449_v10 = vadd.f32 %v3417_v1, %v6941_v7 }
 0xa5b   : > { %5262 = vtanh.f32 %v3474_v46  ;;  %v3478_v21 = vmul.f32 0.7978846, %v3446_v57  ;;  %v3480_v28 = vmul.f32 0.7978846, %v3448_v14  ;;  %v6968_v27 = vadd.f32 %v3248_v44, %v6775_v32 }
 0xa5c   : > { %5264 = vtanh.f32 %v3476_v59  ;;  %v3479_v0 = vmul.f32 0.7978846, %v3447_v49  ;;  %v3481_v6 = vmul.f32 0.7978846, %v3449_v10  ;;  %v6971_v36 = vadd.f32 %v3321_v8, %v6777_v29 }
 0xa5d   : > { %5266 = vtanh.f32 %v3475_v18  ;;  %v3354_v42 = vmul.f32 %v6968_v27, %v6968_v27  ;;  %v6976_v37 = vadd.f32 %v3250_v19, %v6779_v17  ;;  %v6979_v41 = vadd.f32 %v3323_v15, %v6781_v23 }
 0xa5e   : > { %5268 = vtanh.f32 %v3477_v12  ;;  %v3356_v55 = vmul.f32 %v6971_v36, %v6971_v36  ;;  %v6984_v53 = vadd.f32 %v3252_v33, %v6775_v32  ;;  %v6987_v4 = vadd.f32 %v3325_v31, %v6777_v29 }
 0xa5f   : > { %5270 = vtanh.f32 %v3478_v21  ;;  %v3386_v52 = vmul.f32 %v3354_v42, %v6968_v27  ;;  %v3355_v38 = vmul.f32 %v6976_v37, %v6976_v37  ;;  %v3357_v34 = vmul.f32 %v6979_v41, %v6979_v41 }
 0xa60   : > { %5272 = vtanh.f32 %v3480_v28  ;;  %v3388_v30 = vmul.f32 %v3356_v55, %v6971_v36  ;;  %v3358_v13 = vmul.f32 %v6984_v53, %v6984_v53  ;;  %v3360_v32 = vmul.f32 %v6987_v4, %v6987_v4 }
 0xa61   : > { %5274 = vtanh.f32 %v3479_v0  ;;  %v3418_v29 = vmul.f32 0.044715, %v3386_v52  ;;  %v3387_v43 = vmul.f32 %v3355_v38, %v6976_v37  ;;  %v3389_v48 = vmul.f32 %v3357_v34, %v6979_v41 }
 0xa62   : > { %5276 = vtanh.f32 %v3481_v6  ;;  %v3420_v25 = vmul.f32 0.044715, %v3388_v30  ;;  %v3390_v44 = vmul.f32 %v3358_v13, %v6984_v53  ;;  %v3392_v8 = vmul.f32 %v3360_v32, %v6987_v4 }
 0xa63   : > { %v3450_v11 = vadd.f32 %v3418_v29, %v6968_v27  ;;  %v3419_v2 = vmul.f32 0.044715, %v3387_v43  ;;  %v3421_v22 = vmul.f32 0.044715, %v3389_v48  ;;  %v7005_v45 = vadd.f32 %v3254_v62, %v6779_v17 }
 0xa64   : > { %v3452_v19 = vadd.f32 %v3420_v25, %v6971_v36  ;;  %v3422_v15 = vmul.f32 0.044715, %v3390_v44  ;;  %v3424_v26 = vmul.f32 0.044715, %v3392_v8  ;;  %v7009_v60 = vadd.f32 %v3327_v51, %v6781_v23 }
 0xa65   : > { %v5263_v50 = vpop.eup %5262  ;;  %v3482_v1 = vmul.f32 0.7978846, %v3450_v11  ;;  %v3451_v33 = vadd.f32 %v3419_v2, %v6976_v37  ;;  %v3453_v31 = vadd.f32 %v3421_v22, %v6979_v41  ;;  %v3359_v46 = vmul.f32 %v7005_v45, %v7005_v45 }
 0xa66   : > { %v5265_v59 = vpop.eup %5264  ;;  %v3484_v57 = vmul.f32 0.7978846, %v3452_v19  ;;  %v3454_v17 = vadd.f32 %v3422_v15, %v6984_v53  ;;  %v3456_v14 = vadd.f32 %v3424_v26, %v6987_v4  ;;  %v3361_v62 = vmul.f32 %v7009_v60, %v7009_v60 }
 0xa67   : > { %v5267_v23 = vpop.eup %5266  ;;  %5278 = vtanh.f32 %v3482_v1  ;;  %v3483_v51 = vmul.f32 0.7978846, %v3451_v33  ;;  %v3485_v18 = vmul.f32 0.7978846, %v3453_v31  ;;  %v3391_v12 = vmul.f32 %v3359_v46, %v7005_v45 }
 0xa68   : > { %v5269_v49 = vpop.eup %5268  ;;  %5280 = vtanh.f32 %v3484_v57  ;;  %v3486_v10 = vmul.f32 0.7978846, %v3454_v17  ;;  %v3488_v21 = vmul.f32 0.7978846, %v3456_v14  ;;  %v3393_v28 = vmul.f32 %v3361_v62, %v7009_v60 }
 0xa69   : > { %v5271_v0 = vpop.eup %5270  ;;  %5282 = vtanh.f32 %v3483_v51  ;;  %v3423_v6 = vmul.f32 0.044715, %v3391_v12  ;;  %v3539_v42 = vadd.f32 1.0, %v5267_v23  ;;  %v3541_v55 = vadd.f32 1.0, %v5269_v49 }
 0xa6a   : > { %v5273_v52 = vpop.eup %5272  ;;  %5284 = vtanh.f32 %v3485_v18  ;;  %v3425_v38 = vmul.f32 0.044715, %v3393_v28  ;;  %v3538_v34 = vadd.f32 1.0, %v5263_v50  ;;  %v3542_v30 = vadd.f32 1.0, %v5271_v0 }
 0xa6b   : > { %v5275_v13 = vpop.eup %5274  ;;  %5286 = vtanh.f32 %v3486_v10  ;;  %v3455_v32 = vadd.f32 %v3423_v6, %v7005_v45  ;;  %v3571_v29 = vmul.f32 0.5, %v3539_v42  ;;  %v3573_v2 = vmul.f32 0.5, %v3541_v55 }
 0xa6c   : > { %v5277_v43 = vpop.eup %5276  ;;  %5288 = vtanh.f32 %v3488_v21  ;;  %v3457_v48 = vadd.f32 %v3425_v38, %v7009_v60  ;;  %v3543_v25 = vadd.f32 1.0, %v5275_v13  ;;  %v3570_v44 = vmul.f32 0.5, %v3538_v34 }
 0xa6d   : > { %v3487_v8 = vmul.f32 0.7978846, %v3455_v32  ;;  %v3545_v11 = vadd.f32 1.0, %v5277_v43  ;;  %v3603_v15 = vmul.f32 %v3571_v29, %v6918_v54  ;;  %v3574_v26 = vmul.f32 0.5, %v3542_v30 }
 0xa6e   : > { %v3489_v22 = vmul.f32 0.7978846, %v3457_v48  ;;  %v3575_v19 = vmul.f32 0.5, %v3543_v25  ;;  %v3540_v1 = vadd.f32 1.0, %v5265_v59  ;;  %v3544_v33 = vadd.f32 1.0, %v5273_v52 }
 0xa6f   : > { %5290 = vtanh.f32 %v3487_v8  ;;  %v3577_v50 = vmul.f32 0.5, %v3545_v11  ;;  %v3602_v46 = vmul.f32 %v3570_v44, %v6912_v9  ;;  %v3606_v57 = vmul.f32 %v3574_v26, %v6928_v16 }
 0xa70   : > { %5292 = vtanh.f32 %v3489_v22  ;;  %v3607_v31 = vmul.f32 %v3575_v19, %v6938_v35  ;;  %v3605_v14 = vmul.f32 %v3573_v2, %v6921_v40  ;;  %v3572_v23 = vmul.f32 0.5, %v3540_v1 }
 0xa71   : > { %v5279_v17 = vpop.eup %5278  ;;  %v3609_v62 = vmul.f32 %v3577_v50, %v6941_v7  ;;  %v3576_v51 = vmul.f32 0.5, %v3544_v33  ;;  %v3626_v12 = vpack.c.bf16 %v3606_v57, %v3602_v46 }
 0xa72   : > { %v5281_v54 = vpop.eup %5280  ;;  %v3627_v18 = vpack.c.bf16 %v3607_v31, %v3603_v15  ;;  %v3546_v49 = vadd.f32 1.0, %v5279_v17  ;;  %v3604_v21 = vmul.f32 %v3572_v23, %v6915_v3 }
 0xa73   : > { %v5283_v59 = vpop.eup %5282  ;;  %v3629_v10 = vpack.c.bf16 %v3609_v62, %v3605_v14  ;;  %v3608_v35 = vmul.f32 %v3576_v51, %v6931_v24  ;;  %v3548_v9 = vadd.f32 1.0, %v5281_v54 }
 0xa74   : > { %v5285_v28 = vpop.eup %5284  ;;  %3945 = vmatprep.mubr.bf16.mxu1 %v3627_v18  ;;  %v3547_v0 = vadd.f32 1.0, %v5283_v59  ;;  %v3578_v42 = vmul.f32 0.5, %v3546_v49 }
 0xa75   : > { %v5287_v16 = vpop.eup %5286  ;;  %4010 = vmatprep.mubr.bf16.mxu0 %v3629_v10  ;;  %3946 = vmatmul.mubr.bf16.gmra.mrb[72].mxu1 %v3626_v12  ;;  %v3628_v40 = vpack.c.bf16 %v3608_v35, %v3604_v21  ;;  %v3549_v55 = vadd.f32 1.0, %v5285_v28  ;;  %v3580_v38 = vmul.f32 0.5, %v3548_v9 }
 0xa76   : > { %v5289_v7 = vpop.eup %5288  ;;  %v3550_v6 = vadd.f32 1.0, %v5287_v16  ;;  %v3579_v32 = vmul.f32 0.5, %v3547_v0  ;;  %v3610_v29 = vmul.f32 %v3578_v42, %v6968_v27 }
 0xa77   : > { %4011 = vmatmul.mubr.bf16.gmra.mrb[72].mxu0 %v3628_v40  ;;  %v3552_v52 = vadd.f32 1.0, %v5289_v7  ;;  %v3581_v25 = vmul.f32 0.5, %v3549_v55  ;;  %v3612_v44 = vmul.f32 %v3580_v38, %v6971_v36 }
 0xa78   : > { %v3582_v34 = vmul.f32 0.5, %v3550_v6  ;;  %v3611_v15 = vmul.f32 %v3579_v32, %v6976_v37 }
 0xa79   : > { %v5291_v30 = vpop.eup %5290  ;;  %v3584_v3 = vmul.f32 0.5, %v3552_v52  ;;  %v3613_v50 = vmul.f32 %v3581_v25, %v6979_v41 }
 0xa7a   : > { %v5293_v13 = vpop.eup %5292  ;;  %v3551_v24 = vadd.f32 1.0, %v5291_v30  ;;  %v3614_v43 = vmul.f32 %v3582_v34, %v6984_v53 }
 0xa7b   : > { %v3553_v48 = vadd.f32 1.0, %v5293_v13  ;;  %v3616_v8 = vmul.f32 %v3584_v3, %v6987_v4  ;;  %v7044_v4 = vld [vmem:[%s705_s8] ss:$0 sm:$0xff]  ;;  %s5440_s8 = scalar_lea.vmem %s4054_s12, 1024 }
 0xa7c   : > { %v3583_v11 = vmul.f32 0.5, %v3551_v24  ;;  %v3630_v2 = vpack.c.bf16 %v3614_v43, %v3610_v29  ;;  %p5441_p2 = scmp.ne.s32.totalorder %s4054_s12, %s5440_s8  ;;  %p5448_p6 = scmp.lt.s32.totalorder %s5440_s8, %s5440_s8 }
 0xa7d   : > { %v3585_v22 = vmul.f32 0.5, %v3553_v48  ;;  %v3632_v19 = vpack.c.bf16 %v3616_v8, %v3612_v44 }
 0xa7e   : > { %v3615_v26 = vmul.f32 %v3583_v11, %v7005_v45  ;;  %p5442_p12 = pnand %p5441_p2, %p4823_p9  ;;  %p5449_p13 = por %p5448_p6, %p5447_p8 }
 0xa7f   : > { %v3617_v27 = vmul.f32 %v3585_v22, %v7009_v60 }
 0xa80   : > { %v3631_v53 = vpack.c.bf16 %v3615_v26, %v3611_v15  ;;  %p5443_p3 = pneg %p5442_p12 }
 0xa81   : > { %v3633_v1 = vpack.c.bf16 %v3617_v27, %v3613_v50 }
 0xa82   : > { %3953 = vmatprep.mubr.bf16.mxu1 %v3631_v53  ;;  %p5450_p1 = pnand %p5449_p13, %p5443_p3 }
 0xa83   : > { %4018 = vmatprep.mubr.bf16.mxu0 %v3633_v1  ;;  %3954 = vmatmul.mubr.bf16.gmra.mrb[76].mxu1 %v3630_v2 }
 0xa84   : > { %4019 = vmatmul.mubr.bf16.gmra.mrb[76].mxu0 %v3632_v19 }
 0xae5   : > { %v4524_v36 = vpop.f32.mrb[64].mxu1 }
 0xae6   : > { %v4525_v37 = vpop.f32.mrb[65].mxu1 }
 0xae7   : > { %v4564_v33 = vpop.f32.mrb[64].mxu0  ;;  %v4526_v45 = vadd.f32 %v4525_v37, %v4524_v36  ;;  %v4527_v31 = vpop.f32.mrb[66].mxu1 }
 0xae8   : > { %v4565_v41 = vpop.f32.mrb[65].mxu0  ;;  %v4528_v46 = vpop.f32.mrb[67].mxu1 }
 0xae9   : > { %v3932_v60 = vadd.f32 %v4526_v45, %v7044_v4  ;;  %v4566_v57 = vadd.f32 %v4565_v41, %v4564_v33  ;;  %v4567_v17 = vpop.f32.mrb[66].mxu0  ;;  %v4529_v14 = vadd.f32 %v4528_v46, %v4527_v31 }
 0xaea   : > { %v4568_v62 = vpop.f32.mrb[67].mxu0 }
 0xaeb   : > { %v3997_v23 = vadd.f32 %v4566_v57, %v3932_v60  ;;  %v3935_v51 = vadd.f32 %v4529_v14, %v7044_v4  ;;  %v4569_v54 = vadd.f32 %v4568_v62, %v4567_v17 }
 0xaed   : > { %v4027_v18 = vadd.f32 %v3997_v23, %v6595_v20  ;;  %v4000_v12 = vadd.f32 %v4569_v54, %v3935_v51 }
 0xaef   : > { %4035 = vst [vmem:[#allocation10] sm:$0xff] %v4027_v18  ;;  %v4028_v49 = vadd.f32 %v4000_v12, %v6598_v58 }
 0xaf1   : > { %4036 = vst [vmem:[#allocation10 + $0x8] sm:$0xff] %v4028_v49 }
 0xaf5   : > { %v4530_v59 = vpop.f32.mrb[68].mxu1 }
 0xaf6   : > { %v4531_v10 = vpop.f32.mrb[69].mxu1 }
 0xaf7   : > { %v4532_v21 = vadd.f32 %v4531_v10, %v4530_v59  ;;  %v4533_v35 = vpop.f32.mrb[70].mxu1 }
 0xaf8   : > { %v4570_v9 = vpop.f32.mrb[68].mxu0  ;;  %v4534_v28 = vpop.f32.mrb[71].mxu1 }
 0xaf9   : > { %v3940_v16 = vadd.f32 %v4532_v21, %v7044_v4  ;;  %v4571_v40 = vpop.f32.mrb[69].mxu0  ;;  %v4535_v7 = vadd.f32 %v4534_v28, %v4533_v35 }
 0xafa   : > { %v4572_v0 = vadd.f32 %v4571_v40, %v4570_v9  ;;  %v4573_v6 = vpop.f32.mrb[70].mxu0 }
 0xafb   : > { %v3943_v42 = vadd.f32 %v4535_v7, %v7044_v4  ;;  %v4574_v20 = vpop.f32.mrb[71].mxu0 }
 0xafc   : > { %v4005_v55 = vadd.f32 %v4572_v0, %v3940_v16  ;;  %v4575_v52 = vadd.f32 %v4574_v20, %v4573_v6 }
 0xafe   : > { %v4029_v58 = vadd.f32 %v4005_v55, %v6606_v5  ;;  %v4008_v38 = vadd.f32 %v4575_v52, %v3943_v42 }
 0xb00   : > { %4037 = vst [vmem:[#allocation10 + $0x10] sm:$0xff] %v4029_v58  ;;  %v4030_v34 = vadd.f32 %v4008_v38, %v6602_v61 }
 0xb02   : > { %4038 = vst [vmem:[#allocation10 + $0x18] sm:$0xff] %v4030_v34 }
 0xb48   : > { %v4536_v30 = vpop.f32.mrb[72].mxu1 }
 0xb49   : > { %v4537_v3 = vpop.f32.mrb[73].mxu1 }
 0xb4a   : > { %v4576_v13 = vpop.f32.mrb[72].mxu0  ;;  %v4538_v24 = vadd.f32 %v4537_v3, %v4536_v30  ;;  %v4539_v32 = vpop.f32.mrb[74].mxu1 }
 0xb4b   : > { %v4577_v29 = vpop.f32.mrb[73].mxu0  ;;  %v4540_v43 = vpop.f32.mrb[75].mxu1 }
 0xb4c   : > { %v3948_v48 = vadd.f32 %v4538_v24, %v7044_v4  ;;  %v4578_v25 = vadd.f32 %v4577_v29, %v4576_v13  ;;  %v4579_v44 = vpop.f32.mrb[74].mxu0  ;;  %v4541_v8 = vadd.f32 %v4540_v43, %v4539_v32 }
 0xb4d   : > { %v4580_v11 = vpop.f32.mrb[75].mxu0 }
 0xb4e   : > { %v4013_v2 = vadd.f32 %v4578_v25, %v3948_v48  ;;  %v3951_v5 = vadd.f32 %v4541_v8, %v7044_v4  ;;  %v4581_v22 = vadd.f32 %v4580_v11, %v4579_v44 }
 0xb50   : > { %v4031_v61 = vadd.f32 %v4013_v2, %v6611_v39  ;;  %v4016_v19 = vadd.f32 %v4581_v22, %v3951_v5 }
 0xb52   : > { %4039 = vst [vmem:[#allocation10 + $0x20] sm:$0xff] %v4031_v61  ;;  %v4032_v15 = vadd.f32 %v4016_v19, %v6614_v63 }
 0xb54   : > { %4040 = vst [vmem:[#allocation10 + $0x28] sm:$0xff] %v4032_v15 }
 0xb56   : > { %v4542_v26 = vpop.f32.mrb[76].mxu1 }
 0xb57   : > { %v4582_v50 = vpop.f32.mrb[76].mxu0  ;;  %v4543_v27 = vpop.f32.mrb[77].mxu1 }
 0xb58   : > { %v4544_v53 = vadd.f32 %v4543_v27, %v4542_v26  ;;  %v4583_v1 = vpop.f32.mrb[77].mxu0  ;;  %v4545_v36 = vpop.f32.mrb[78].mxu1 }
 0xb59   : > { %v4584_v37 = vadd.f32 %v4583_v1, %v4582_v50  ;;  %v4585_v33 = vpop.f32.mrb[78].mxu0  ;;  %v4546_v45 = vpop.f32.mrb[79].mxu1 }
 0xb5a   : > { %v3956_v31 = vadd.f32 %v4544_v53, %v7044_v4  ;;  %v4547_v41 = vadd.f32 %v4546_v45, %v4545_v36  ;;  %v4586_v39 = vpop.f32.mrb[79].mxu0 }
 0xb5b   : > { %v4587_v46 = vadd.f32 %v4586_v39, %v4585_v33 }
 0xb5c   : > { %v4021_v60 = vadd.f32 %v4584_v37, %v3956_v31  ;;  %v3959_v63 = vadd.f32 %v4547_v41, %v7044_v4 }
 0xb5e   : > { %v4033_v57 = vadd.f32 %v4021_v60, %v6618_v56  ;;  %v4024_v17 = vadd.f32 %v4587_v46, %v3959_v63 }
 0xb60   : > { %4041 = vst [vmem:[#allocation10 + $0x30] sm:$0xff] %v4033_v57  ;;  %v4034_v14 = vadd.f32 %v4024_v17, %v6622_v47 }
 0xb62   : > { %4042 = vst [vmem:[#allocation10 + $0x38] sm:$0xff] %v4034_v14 }
 0xb63   : > { %5453 = shalt.err (!%p5450_p1)
}
 0xb64   : > { %s7190_s11 = sld [smem:[#allocation30_spill]] }
 0xb6a   : > { %s5454_s28 = scalar_lea.hbm %s7190_s11, 1024 }
 0xb6b   : > { %p5455_p4 = scmp.ne.s32.totalorder %s7190_s11, %s5454_s28  ;;  %p5460_p11 = scmp.lt.u32.totalorder %s5454_s28, %s7190_s11 }
 0xb6d   : > { %p5456_p10 = pnand %p5455_p4, %p4823_p9 }
 0xb6f   : > { %p5457_p5 = pneg %p5456_p10 }
 0xb71   : > { %p5462_p0 = pnand %p5460_p11, %p5457_p5 }
 0xb73   : > { %5465 = shalt.err (!%p5462_p0)
}
 0xb74   : > { %s5548_s9 = smov 128   ;;  %s5549_s21 = smov 8  }
 0xb75   : > { %4798 = dma.vmem_to_hbm [thread:$0]  (%p4823_p9), %s4054_s12, 1024, %s7190_s11, [#allocation4], %s5548_s9, %s5548_s9, %s5549_s21  }
 0xb76   : > { %5503 = dma.done.wait (%p4823_p9), [#allocation4], 1024  }
 0xb77   : > { %5505 = vsyncadd (%p4823_p9), [#allocation4], 4294966272 }
 0xb78 PF: > { %s26_s30 = sadd.s32 1, %s5528_s30   ;;  %s7191_s5 = sld [smem:[#allocation15_spill]] }
 0xb79   : > { %p23_p7 = scmp.ge.s32.totalorder %s26_s30, 4   ;;  %s7192_s27 = sld [smem:[#allocation18_spill]] }
 0xb7a   : > { %s7193_s28 = sld [smem:[#allocation16_spill]]  ;;  %s7194_s29 = sld [smem:[#allocation17_spill]] }
 0xb7b   : > { %s7195_s25 = smov %s5512_s26  ;;  %25 = sbr.rel (!%p23_p7) target bundleno = 18 (0x12), region = 169 }
 0xb7e   : > { %s7196_s26 = smov %s7191_s5 }
 0xb82   :  { %4069 = vsyncpa [#allocation3], 1 }
 0xb83   :  { %4071 = vsyncpa [#allocation3 + $0x1], 1 }
 0xb84   :  { %4072 = vsyncpa [#allocation6], 1 }
 0xb85   :  { %4073 = vsyncpa [#allocation4], 1 }
 0xb86   :  { %4075 = vsyncpa [#allocation4 + $0x1], 1 }

</bundles_post_ra>
